<compile_context>
chip_gen: v6e
topology: v6e:2x2x1
jax: 0.10.0
libtpu: 0.0.40
codegen_flags: <defaults>
</compile_context>

<pallas_src>
import functools

import jax
import jax.numpy as jnp
from jax import lax
from jax.experimental import pallas as pl
from jax.experimental.pallas import tpu as pltpu


def _decoder_kernel(enc_ref, skp_ref, wup_ref, bup_ref, wsd_ref, bsd_ref,
                    w1_ref, b1_ref, w2_ref, b2_ref, wfc1_ref, wfc2_ref,
                    out_ref, x1_pad, h_pad, *, h, w):
    """One batch element of Decoder.forward, fully in VMEM (channels-first)."""
    f32 = jnp.float32
    c_out = out_ref.shape[1]
    h2, w2 = 2 * h, 2 * w
    wp = w2 + 2                       # padded row width (1-px halo each side)
    lo = h2 * wp                      # conv-output length in padded-width space

    # Fresh zero halos every step.  Interior + touched halo columns are fully
    # rewritten below; this keeps the kernel correct even when the parallel
    # batch axis is split across TensorCores (no reliance on program_id==0).
    x1_pad[...] = jnp.zeros_like(x1_pad)
    h_pad[...] = jnp.zeros_like(h_pad)

    # Lane masks (cheap VPU work, built in registers).
    col = lax.broadcasted_iota(jnp.int32, (c_out, lo), 1)
    valid = (col % wp) < w2           # drops the 2 wrap-around columns per row
    lane_even = (lax.broadcasted_iota(jnp.int32, (c_out, h * w2), 1) % 2) == 0

    # ---- ConvTranspose2d(k=2, s=2) ----------------------------------------
    # enc_ref[0] is (Cin, H*W2) with every pixel duplicated along x (wrapper),
    # so the x-interleave of the upsample is a lane-parity select; the y phases
    # are placed by the contiguous per-row stores below.
    m = jnp.dot(wup_ref[...], enc_ref[0], preferred_element_type=f32)  # (4*Cout, H*W2)
    bup = bup_ref[...]                                                 # (Cout, 1) f32
    for dy in range(2):
        ph0 = m[(2 * dy) * c_out:(2 * dy + 1) * c_out, :]
        ph1 = m[(2 * dy + 1) * c_out:(2 * dy + 2) * c_out, :]
        up_dy = (jnp.where(lane_even, ph0, ph1) + bup).astype(x1_pad.dtype)
        for y in range(h):            # contiguous (Cout, W2) store per out row
            dst = (1 + 2 * y + dy) * wp + 1
            x1_pad[0:c_out, dst:dst + w2] = up_dy[:, y * w2:(y + 1) * w2]

    def conv3x3(tap, w_t, bias):
        # tap(off) -> (cin, lo) contiguous lane-offset slice of a flat padded image.
        taps = [tap(ky * wp + kx) for ky in range(3) for kx in range(3)]
        patches = jnp.concatenate(taps, axis=0)              # (9*cin, lo) bf16
        return jnp.dot(w_t, patches, preferred_element_type=f32) + bias

    # ---- skipdown: Conv3x3(2*Cin -> Cout) on the pre-padded skip -----------
    sd = conv3x3(lambda off: skp_ref[0, :, off:off + lo], wsd_ref[...], bsd_ref[...])
    sd = jnp.where(valid, sd, 0.0)    # masked garbage cols land on (re-zeroed) halo
    x1_pad[c_out:2 * c_out, wp + 1:wp + 1 + lo] = sd.astype(x1_pad.dtype)

    # ---- conv[0]: Conv3x3(2*Cout -> Cout) + ReLU ----------------------------
    h1 = conv3x3(lambda off: x1_pad[:, off:off + lo], w1_ref[...], b1_ref[...])
    h1 = jnp.where(valid, jnp.maximum(h1, 0.0), 0.0)
    h_pad[:, wp + 1:wp + 1 + lo] = h1.astype(h_pad.dtype)

    # ---- conv[2]: Conv3x3(Cout -> Cout), no activation ----------------------
    o = conv3x3(lambda off: h_pad[:, off:off + lo], w2_ref[...], b2_ref[...])

    # ---- SEAttention: avgpool -> fc1 -> ReLU -> fc2 -> sigmoid -> scale -----
    pooled = jnp.sum(jnp.where(valid, o, 0.0), axis=1, keepdims=True) / (h2 * w2)
    hid = jnp.maximum(jnp.sum(wfc1_ref[...] * pooled, axis=0, keepdims=True), 0.0)
    logits = jnp.sum(wfc2_ref[...] * hid, axis=1, keepdims=True)       # (Cout, 1)
    o = o * jax.nn.sigmoid(logits)

    # ---- lane-dense flat-NCHW store (Cout, H2*W2); drop 2 pad cols per row --
    o = o.astype(out_ref.dtype)
    for r in range(h2):
        out_ref[0, :, r * w2:(r + 1) * w2] = o[:, r * wp:r * wp + w2]


@jax.jit
def decoder_forward(encoded, skip, params):
    """Decoder.forward.  encoded: (N, Cin, H, W); skip: (N, 2*Cin, 2H, 2W) (NCHW).

    Returns (N, Cout, 2H, 2W) NCHW, matching the PyTorch module.
    """
    n, c_in, h, w = encoded.shape
    h2, w2 = 2 * h, 2 * w
    hp, wp = h2 + 2, w2 + 2
    lo = h2 * wp
    lf = (hp + 1) * wp                          # flat padded length (+1 slack row)
    c_out = params["bup"].shape[0]
    c_red = params["wfc1"].shape[0]
    mxu_dt = jnp.bfloat16
    f32 = jnp.float32

    # ---- inputs, pre-shaped for the kernel (cheap XLA ops, no big constants)
    enc_dup = jnp.repeat(encoded.reshape(n, c_in, h * w), 2, axis=2).astype(mxu_dt)
    skp_pad = jnp.pad(skip, ((0, 0), (0, 0), (1, 2), (1, 1)))
    skp_pad = skp_pad.reshape(n, 2 * c_in, lf).astype(mxu_dt)

    # ---- weights pre-flattened into (Cout, K) matmul slabs (tiny, per call)
    wup = params["wup"].reshape(c_in, 4 * c_out).T.astype(mxu_dt)      # (4*Cout, Cin)
    wsd = params["wsd"].reshape(9 * 2 * c_in, c_out).T.astype(mxu_dt)  # (Cout, 18*Cin)
    w1 = params["w1"].reshape(9 * 2 * c_out, c_out).T.astype(mxu_dt)   # (Cout, 18*Cout)
    w2_ = params["w2"].reshape(9 * c_out, c_out).T.astype(mxu_dt)      # (Cout, 9*Cout)
    bup = params["bup"].reshape(c_out, 1).astype(f32)
    bsd = params["bsd"].reshape(c_out, 1).astype(f32)
    b1 = params["b1"].reshape(c_out, 1).astype(f32)
    b2 = params["b2"].reshape(c_out, 1).astype(f32)
    wfc1t = params["wfc1"].T.astype(f32)                               # (Cout, Cred)
    wfc2 = params["wfc2"].astype(f32)                                  # (Cout, Cred)

    kernel = functools.partial(_decoder_kernel, h=h, w=w)
    full2 = lambda i: (0, 0)

    flops = int(n * (2 * 4 * c_out * c_in * h * w2
                     + 2 * c_out * lo * (9 * 2 * c_in + 9 * 2 * c_out + 9 * c_out)))
    bytes_accessed = int(enc_dup.size * 2 + skp_pad.size * 2
                         + n * c_out * h2 * w2 * 4
                         + (wup.size + wsd.size + w1.size + w2_.size) * 2
                         + (bup.size + bsd.size + b1.size + b2.size
                            + wfc1t.size + wfc2.size) * 4)

    out_flat = pl.pallas_call(
        kernel,
        out_shape=jax.ShapeDtypeStruct((n, c_out, h2 * w2), encoded.dtype),
        grid=(n,),
        in_specs=[
            pl.BlockSpec((1, c_in, h * w2), lambda i: (i, 0, 0)),
            pl.BlockSpec((1, 2 * c_in, lf), lambda i: (i, 0, 0)),
            pl.BlockSpec((4 * c_out, c_in), full2),
            pl.BlockSpec((c_out, 1), full2),
            pl.BlockSpec((c_out, 9 * 2 * c_in), full2),
            pl.BlockSpec((c_out, 1), full2),
            pl.BlockSpec((c_out, 9 * 2 * c_out), full2),
            pl.BlockSpec((c_out, 1), full2),
            pl.BlockSpec((c_out, 9 * c_out), full2),
            pl.BlockSpec((c_out, 1), full2),
            pl.BlockSpec((c_out, c_red), full2),
            pl.BlockSpec((c_out, c_red), full2),
        ],
        out_specs=pl.BlockSpec((1, c_out, h2 * w2), lambda i: (i, 0, 0)),
        scratch_shapes=[
            pltpu.VMEM((2 * c_out, lf), mxu_dt),   # zero-padded concat [up, sd]
            pltpu.VMEM((c_out, lf), mxu_dt),       # zero-padded ReLU(conv1) out
        ],
        compiler_params=pltpu.CompilerParams(
            dimension_semantics=("parallel",),     # megacore splits the batch
            vmem_limit_bytes=16 * 1024 * 1024),
        cost_estimate=pl.CostEstimate(
            flops=flops, transcendentals=int(n * c_out),
            bytes_accessed=bytes_accessed),
    )(enc_dup, skp_pad, wup, bup, wsd, bsd, w1, b1, w2_, b2, wfc1t, wfc2)

    return out_flat.reshape(n, c_out, h2, w2)


def init_decoder_params(key, in_channels, out_channels, reduction=16,
                        dtype=jnp.float32):
    """Deterministic synthetic parameters (conv weights in HWIO layout)."""
    ks = jax.random.split(key, 10)

    def uni(k, shape, fan_in):
        bound = float(fan_in) ** -0.5
        return jax.random.uniform(k, shape, dtype, -bound, bound)

    c_red = max(out_channels // reduction, 1)
    return dict(
        # ConvTranspose2d(Cin, Cout, k=2, s=2): stored as (Cin, 2, 2, Cout)
        wup=uni(ks[0], (in_channels, 2, 2, out_channels), in_channels * 4),
        bup=uni(ks[1], (out_channels,), in_channels * 4),
        # skipdown: Conv2d(2*Cin, Cout, 3, pad=1)
        wsd=uni(ks[2], (3, 3, 2 * in_channels, out_channels), 2 * in_channels * 9),
        bsd=uni(ks[3], (out_channels,), 2 * in_channels * 9),
        # conv[0]: Conv2d(2*Cout, Cout, 3, pad=1)
        w1=uni(ks[4], (3, 3, 2 * out_channels, out_channels), 2 * out_channels * 9),
        b1=uni(ks[5], (out_channels,), 2 * out_channels * 9),
        # conv[2]: Conv2d(Cout, Cout, 3, pad=1)
        w2=uni(ks[6], (3, 3, out_channels, out_channels), out_channels * 9),
        b2=uni(ks[7], (out_channels,), out_channels * 9),
        # SEAttention Linear weights (no bias), PyTorch layouts
        wfc1=uni(ks[8], (c_red, out_channels), out_channels),
        wfc2=uni(ks[9], (out_channels, c_red), c_red),
    )


def _reference_forward(encoded, skip, params):
    """Pure-JAX (XLA, f32) reference. NCHW in / NCHW out."""
    n, c_in, h, w = encoded.shape
    c_out = params["bup"].shape[0]
    hp = lax.Precision.HIGHEST

    # ConvTranspose2d(k=2, s=2)
    u = jnp.einsum("ncyx,cpqo->noypxq", encoded, params["wup"], precision=hp)
    u = u.reshape(n, c_out, 2 * h, 2 * w) + params["bup"][None, :, None, None]

    def conv3(x, wt, b):
        y = lax.conv_general_dilated(
            x, wt, (1, 1), "SAME",
            dimension_numbers=("NCHW", "HWIO", "NCHW"), precision=hp)
        return y + b[None, :, None, None]

    sd = conv3(skip, params["wsd"], params["bsd"])
    x1 = jnp.concatenate([u, sd], axis=1)
    h1 = jnp.maximum(conv3(x1, params["w1"], params["b1"]), 0.0)
    o = conv3(h1, params["w2"], params["b2"])

    pooled = o.mean(axis=(2, 3))                                   # (N, Cout)
    hid = jnp.maximum(pooled @ params["wfc1"].T, 0.0)              # (N, Cred)
    scale = jax.nn.sigmoid(hid @ params["wfc2"].T)                 # (N, Cout)
    return o * scale[:, :, None, None]


if __name__ == "__main__":
    N, C_IN, C_OUT, H, W = 2, 4, 16, 16, 16

    key = jax.random.PRNGKey(0)
    k_enc, k_skip, k_p = jax.random.split(key, 3)

    # PyTorch convention: encoded (N, Cin, H, W); skip carries 2*Cin channels
    # at (2H, 2W) because Decoder.skipdown = Conv2d(2*Cin, ...).
    encoded = jax.random.normal(k_enc, (N, C_IN, H, W), jnp.float32)
    skip = jax.random.normal(k_skip, (N, 2 * C_IN, 2 * H, 2 * W), jnp.float32)
    params = init_decoder_params(k_p, C_IN, C_OUT)

    y = decoder_forward(encoded, skip, params)
    y = jax.block_until_ready(y)

    y_ref = _reference_forward(encoded, skip, params)
    assert y.shape == (N, C_OUT, 2 * H, 2 * W)
    # Tolerance budgets the intentional bf16 MXU inputs (f32 accumulation).
    err = float(jnp.max(jnp.abs(y - y_ref)))
    assert jnp.allclose(y, y_ref, atol=2e-2, rtol=2e-2), f"max abs err {err}"

    print("KERNEL_OK")
</pallas_src>

<mosaic_0001>
module attributes {stable_mosaic.version = 11 : i64} {
  func.func @_decoder_kernel(%arg0: i32, %arg1: memref<1x4x512xbf16, #tpu.memory_space<vmem>>, %arg2: memref<1x8x1190xbf16, #tpu.memory_space<vmem>>, %arg3: memref<64x4xbf16, #tpu.memory_space<vmem>>, %arg4: memref<16x1xf32, #tpu.memory_space<vmem>>, %arg5: memref<16x72xbf16, #tpu.memory_space<vmem>>, %arg6: memref<16x1xf32, #tpu.memory_space<vmem>>, %arg7: memref<16x288xbf16, #tpu.memory_space<vmem>>, %arg8: memref<16x1xf32, #tpu.memory_space<vmem>>, %arg9: memref<16x144xbf16, #tpu.memory_space<vmem>>, %arg10: memref<16x1xf32, #tpu.memory_space<vmem>>, %arg11: memref<16x1xf32, #tpu.memory_space<vmem>>, %arg12: memref<16x1xf32, #tpu.memory_space<vmem>>, %arg13: memref<1x16x1024xf32, #tpu.memory_space<vmem>>, %arg14: memref<32x1190xbf16, #tpu.memory_space<vmem>>, %arg15: memref<16x1190xbf16, #tpu.memory_space<vmem>>) attributes {dimension_semantics = [#tpu.dimension_semantics<parallel>], iteration_bounds = array<i64: 2>, scalar_prefetch = 0 : i64, scratch_operands = 2 : i64, tpu.core_type = #tpu.core_type<tc>, window_params = [{transform_indices = @transform_0, window_bounds = array<i64: 1, 4, 512>}, {transform_indices = @transform_1, window_bounds = array<i64: 1, 8, 1190>}, {pipeline_mode = #tpu.pipeline_mode<synchronous>, transform_indices = @transform_2, window_bounds = array<i64: 64, 4>}, {pipeline_mode = #tpu.pipeline_mode<synchronous>, transform_indices = @transform_3, window_bounds = array<i64: 16, 1>}, {pipeline_mode = #tpu.pipeline_mode<synchronous>, transform_indices = @transform_4, window_bounds = array<i64: 16, 72>}, {pipeline_mode = #tpu.pipeline_mode<synchronous>, transform_indices = @transform_5, window_bounds = array<i64: 16, 1>}, {pipeline_mode = #tpu.pipeline_mode<synchronous>, transform_indices = @transform_6, window_bounds = array<i64: 16, 288>}, {pipeline_mode = #tpu.pipeline_mode<synchronous>, transform_indices = @transform_7, window_bounds = array<i64: 16, 1>}, {pipeline_mode = #tpu.pipeline_mode<synchronous>, transform_indices = @transform_8, window_bounds = array<i64: 16, 144>}, {pipeline_mode = #tpu.pipeline_mode<synchronous>, transform_indices = @transform_9, window_bounds = array<i64: 16, 1>}, {pipeline_mode = #tpu.pipeline_mode<synchronous>, transform_indices = @transform_10, window_bounds = array<i64: 16, 1>}, {pipeline_mode = #tpu.pipeline_mode<synchronous>, transform_indices = @transform_11, window_bounds = array<i64: 16, 1>}, {transform_indices = @transform_12, window_bounds = array<i64: 1, 16, 1024>}]} {
    %cst = arith.constant 0.000000e+00 : bf16
    %0 = vector.broadcast %cst : bf16 to vector<32x1190xbf16>
    %c0 = arith.constant 0 : index
    %c0_0 = arith.constant 0 : index
    %1 = vector.load %arg14[%c0, %c0_0] : memref<32x1190xbf16, #tpu.memory_space<vmem>>, vector<32x1190xbf16>
    tpu.vector_store %arg14[%c0, %c0_0], %0 {strides = array<i32>} : memref<32x1190xbf16, #tpu.memory_space<vmem>>, vector<32x1190xbf16>,
    %cst_1 = arith.constant 0.000000e+00 : bf16
    %2 = vector.broadcast %cst_1 : bf16 to vector<16x1190xbf16>
    %c0_2 = arith.constant 0 : index
    %c0_3 = arith.constant 0 : index
    %3 = vector.load %arg15[%c0_2, %c0_3] : memref<16x1190xbf16, #tpu.memory_space<vmem>>, vector<16x1190xbf16>
    tpu.vector_store %arg15[%c0_2, %c0_3], %2 {strides = array<i32>} : memref<16x1190xbf16, #tpu.memory_space<vmem>>, vector<16x1190xbf16>,
    %4 = tpu.iota {dimensions = array<i32: 1>} : vector<16x1088xi32>
    %c34_i32 = arith.constant 34 : i32
    %c0_i32 = arith.constant 0 : i32
    %5 = arith.cmpi eq, %c34_i32, %c0_i32 : i32
    %c1_i32 = arith.constant 1 : i32
    %6 = arith.select %5, %c1_i32, %c34_i32 : i32
    %7 = vector.broadcast %6 : i32 to vector<16x1088xi32>
    %8 = arith.remsi %4, %7 : vector<16x1088xi32>
    %c0_i32_4 = arith.constant 0 : i32
    %9 = vector.broadcast %c0_i32_4 : i32 to vector<16x1088xi32>
    %10 = arith.cmpi ne, %8, %9 : vector<16x1088xi32>
    %c0_i32_5 = arith.constant 0 : i32
    %11 = vector.broadcast %c0_i32_5 : i32 to vector<16x1088xi32>
    %12 = arith.cmpi slt, %8, %11 : vector<16x1088xi32>
    %c0_i32_6 = arith.constant 0 : i32
    %13 = arith.cmpi slt, %6, %c0_i32_6 : i32
    %14 = vector.broadcast %13 : i1 to vector<16x1088xi1>
    %15 = vector.broadcast %14 : vector<16x1088xi1> to vector<16x1088xi1>
    %16 = arith.xori %12, %15 : vector<16x1088xi1>
    %17 = arith.andi %16, %10 : vector<16x1088xi1>
    %18 = vector.broadcast %6 : i32 to vector<16x1088xi32>
    %19 = arith.addi %8, %18 : vector<16x1088xi32>
    %20 = arith.select %17, %19, %8 : vector<16x1088xi1>, vector<16x1088xi32>
    %c32_i32 = arith.constant 32 : i32
    %21 = vector.broadcast %c32_i32 : i32 to vector<16x1088xi32>
    %22 = arith.cmpi slt, %20, %21 : vector<16x1088xi32>
    %23 = tpu.iota {dimensions = array<i32: 1>} : vector<16x512xi32>
    %c2_i32 = arith.constant 2 : i32
    %c0_i32_7 = arith.constant 0 : i32
    %24 = arith.cmpi eq, %c2_i32, %c0_i32_7 : i32
    %c1_i32_8 = arith.constant 1 : i32
    %25 = arith.select %24, %c1_i32_8, %c2_i32 : i32
    %26 = vector.broadcast %25 : i32 to vector<16x512xi32>
    %27 = arith.remsi %23, %26 : vector<16x512xi32>
    %c0_i32_9 = arith.constant 0 : i32
    %28 = vector.broadcast %c0_i32_9 : i32 to vector<16x512xi32>
    %29 = arith.cmpi ne, %27, %28 : vector<16x512xi32>
    %c0_i32_10 = arith.constant 0 : i32
    %30 = vector.broadcast %c0_i32_10 : i32 to vector<16x512xi32>
    %31 = arith.cmpi slt, %27, %30 : vector<16x512xi32>
    %c0_i32_11 = arith.constant 0 : i32
    %32 = arith.cmpi slt, %25, %c0_i32_11 : i32
    %33 = vector.broadcast %32 : i1 to vector<16x512xi1>
    %34 = vector.broadcast %33 : vector<16x512xi1> to vector<16x512xi1>
    %35 = arith.xori %31, %34 : vector<16x512xi1>
    %36 = arith.andi %35, %29 : vector<16x512xi1>
    %37 = vector.broadcast %25 : i32 to vector<16x512xi32>
    %38 = arith.addi %27, %37 : vector<16x512xi32>
    %39 = arith.select %36, %38, %27 : vector<16x512xi1>, vector<16x512xi32>
    %c0_i32_12 = arith.constant 0 : i32
    %40 = vector.broadcast %c0_i32_12 : i32 to vector<16x512xi32>
    %41 = arith.cmpi eq, %39, %40 : vector<16x512xi32>
    %c0_13 = arith.constant 0 : index
    %c0_14 = arith.constant 0 : index
    %42 = vector.load %arg3[%c0_13, %c0_14] : memref<64x4xbf16, #tpu.memory_space<vmem>>, vector<64x4xbf16>
    %c0_15 = arith.constant 0 : index
    %c0_16 = arith.constant 0 : index
    %c0_17 = arith.constant 0 : index
    %43 = vector.load %arg1[%c0_15, %c0_16, %c0_17] : memref<1x4x512xbf16, #tpu.memory_space<vmem>>, vector<1x4x512xbf16>
    %44 = vector.shape_cast %43 : vector<1x4x512xbf16> to vector<4x512xbf16>
    %cst_18 = arith.constant dense<0.000000e+00> : vector<64x512xf32>
    %45 = tpu.matmul %42, %44, %cst_18 {dimension_numbers = #tpu.dot_dimension_numbers<[1], [0], [0], [1], [0, 0, 1, 1], [], []>} : vector<64x4xbf16>, vector<4x512xbf16>, vector<64x512xf32> -> vector<64x512xf32>
    %c0_19 = arith.constant 0 : index
    %c0_20 = arith.constant 0 : index
    %46 = vector.load %arg4[%c0_19, %c0_20] : memref<16x1xf32, #tpu.memory_space<vmem>>, vector<16x1xf32>
    %47 = vector.extract_strided_slice %45 {offsets = [0, 0], sizes = [16, 512], strides = [1, 1]} : vector<64x512xf32> to vector<16x512xf32>
    %48 = vector.extract_strided_slice %45 {offsets = [16, 0], sizes = [16, 512], strides = [1, 1]} : vector<64x512xf32> to vector<16x512xf32>
    %49 = arith.select %41, %47, %48 : vector<16x512xi1>, vector<16x512xf32>
    %50 = vector.broadcast %46 : vector<16x1xf32> to vector<16x512xf32>
    %51 = arith.addf %49, %50 : vector<16x512xf32>
    %52 = arith.truncf %51 : vector<16x512xf32> to vector<16x512xbf16>
    %53 = vector.extract_strided_slice %52 {offsets = [0, 0], sizes = [16, 32], strides = [1, 1]} : vector<16x512xbf16> to vector<16x32xbf16>
    %c0_21 = arith.constant 0 : index
    %c35 = arith.constant 35 : index
    %54 = vector.load %arg14[%c0_21, %c35] : memref<32x1190xbf16, #tpu.memory_space<vmem>>, vector<16x32xbf16>
    tpu.vector_store %arg14[%c0_21, %c35], %53 {strides = array<i32>} : memref<32x1190xbf16, #tpu.memory_space<vmem>>, vector<16x32xbf16>,
    %55 = vector.extract_strided_slice %52 {offsets = [0, 32], sizes = [16, 32], strides = [1, 1]} : vector<16x512xbf16> to vector<16x32xbf16>
    %c0_22 = arith.constant 0 : index
    %c103 = arith.constant 103 : index
    %56 = vector.load %arg14[%c0_22, %c103] : memref<32x1190xbf16, #tpu.memory_space<vmem>>, vector<16x32xbf16>
    tpu.vector_store %arg14[%c0_22, %c103], %55 {strides = array<i32>} : memref<32x1190xbf16, #tpu.memory_space<vmem>>, vector<16x32xbf16>,
    %57 = vector.extract_strided_slice %52 {offsets = [0, 64], sizes = [16, 32], strides = [1, 1]} : vector<16x512xbf16> to vector<16x32xbf16>
    %c0_23 = arith.constant 0 : index
    %c171 = arith.constant 171 : index
    %58 = vector.load %arg14[%c0_23, %c171] : memref<32x1190xbf16, #tpu.memory_space<vmem>>, vector<16x32xbf16>
    tpu.vector_store %arg14[%c0_23, %c171], %57 {strides = array<i32>} : memref<32x1190xbf16, #tpu.memory_space<vmem>>, vector<16x32xbf16>,
    %59 = vector.extract_strided_slice %52 {offsets = [0, 96], sizes = [16, 32], strides = [1, 1]} : vector<16x512xbf16> to vector<16x32xbf16>
    %c0_24 = arith.constant 0 : index
    %c239 = arith.constant 239 : index
    %60 = vector.load %arg14[%c0_24, %c239] : memref<32x1190xbf16, #tpu.memory_space<vmem>>, vector<16x32xbf16>
    tpu.vector_store %arg14[%c0_24, %c239], %59 {strides = array<i32>} : memref<32x1190xbf16, #tpu.memory_space<vmem>>, vector<16x32xbf16>,
    %61 = vector.extract_strided_slice %52 {offsets = [0, 128], sizes = [16, 32], strides = [1, 1]} : vector<16x512xbf16> to vector<16x32xbf16>
    %c0_25 = arith.constant 0 : index
    %c307 = arith.constant 307 : index
    %62 = vector.load %arg14[%c0_25, %c307] : memref<32x1190xbf16, #tpu.memory_space<vmem>>, vector<16x32xbf16>
    tpu.vector_store %arg14[%c0_25, %c307], %61 {strides = array<i32>} : memref<32x1190xbf16, #tpu.memory_space<vmem>>, vector<16x32xbf16>,
    %63 = vector.extract_strided_slice %52 {offsets = [0, 160], sizes = [16, 32], strides = [1, 1]} : vector<16x512xbf16> to vector<16x32xbf16>
    %c0_26 = arith.constant 0 : index
    %c375 = arith.constant 375 : index
    %64 = vector.load %arg14[%c0_26, %c375] : memref<32x1190xbf16, #tpu.memory_space<vmem>>, vector<16x32xbf16>
    tpu.vector_store %arg14[%c0_26, %c375], %63 {strides = array<i32>} : memref<32x1190xbf16, #tpu.memory_space<vmem>>, vector<16x32xbf16>,
    %65 = vector.extract_strided_slice %52 {offsets = [0, 192], sizes = [16, 32], strides = [1, 1]} : vector<16x512xbf16> to vector<16x32xbf16>
    %c0_27 = arith.constant 0 : index
    %c443 = arith.constant 443 : index
    %66 = vector.load %arg14[%c0_27, %c443] : memref<32x1190xbf16, #tpu.memory_space<vmem>>, vector<16x32xbf16>
    tpu.vector_store %arg14[%c0_27, %c443], %65 {strides = array<i32>} : memref<32x1190xbf16, #tpu.memory_space<vmem>>, vector<16x32xbf16>,
    %67 = vector.extract_strided_slice %52 {offsets = [0, 224], sizes = [16, 32], strides = [1, 1]} : vector<16x512xbf16> to vector<16x32xbf16>
    %c0_28 = arith.constant 0 : index
    %c511 = arith.constant 511 : index
    %68 = vector.load %arg14[%c0_28, %c511] : memref<32x1190xbf16, #tpu.memory_space<vmem>>, vector<16x32xbf16>
    tpu.vector_store %arg14[%c0_28, %c511], %67 {strides = array<i32>} : memref<32x1190xbf16, #tpu.memory_space<vmem>>, vector<16x32xbf16>,
    %69 = vector.extract_strided_slice %52 {offsets = [0, 256], sizes = [16, 32], strides = [1, 1]} : vector<16x512xbf16> to vector<16x32xbf16>
    %c0_29 = arith.constant 0 : index
    %c579 = arith.constant 579 : index
    %70 = vector.load %arg14[%c0_29, %c579] : memref<32x1190xbf16, #tpu.memory_space<vmem>>, vector<16x32xbf16>
    tpu.vector_store %arg14[%c0_29, %c579], %69 {strides = array<i32>} : memref<32x1190xbf16, #tpu.memory_space<vmem>>, vector<16x32xbf16>,
    %71 = vector.extract_strided_slice %52 {offsets = [0, 288], sizes = [16, 32], strides = [1, 1]} : vector<16x512xbf16> to vector<16x32xbf16>
    %c0_30 = arith.constant 0 : index
    %c647 = arith.constant 647 : index
    %72 = vector.load %arg14[%c0_30, %c647] : memref<32x1190xbf16, #tpu.memory_space<vmem>>, vector<16x32xbf16>
    tpu.vector_store %arg14[%c0_30, %c647], %71 {strides = array<i32>} : memref<32x1190xbf16, #tpu.memory_space<vmem>>, vector<16x32xbf16>,
    %73 = vector.extract_strided_slice %52 {offsets = [0, 320], sizes = [16, 32], strides = [1, 1]} : vector<16x512xbf16> to vector<16x32xbf16>
    %c0_31 = arith.constant 0 : index
    %c715 = arith.constant 715 : index
    %74 = vector.load %arg14[%c0_31, %c715] : memref<32x1190xbf16, #tpu.memory_space<vmem>>, vector<16x32xbf16>
    tpu.vector_store %arg14[%c0_31, %c715], %73 {strides = array<i32>} : memref<32x1190xbf16, #tpu.memory_space<vmem>>, vector<16x32xbf16>,
    %75 = vector.extract_strided_slice %52 {offsets = [0, 352], sizes = [16, 32], strides = [1, 1]} : vector<16x512xbf16> to vector<16x32xbf16>
    %c0_32 = arith.constant 0 : index
    %c783 = arith.constant 783 : index
    %76 = vector.load %arg14[%c0_32, %c783] : memref<32x1190xbf16, #tpu.memory_space<vmem>>, vector<16x32xbf16>
    tpu.vector_store %arg14[%c0_32, %c783], %75 {strides = array<i32>} : memref<32x1190xbf16, #tpu.memory_space<vmem>>, vector<16x32xbf16>,
    %77 = vector.extract_strided_slice %52 {offsets = [0, 384], sizes = [16, 32], strides = [1, 1]} : vector<16x512xbf16> to vector<16x32xbf16>
    %c0_33 = arith.constant 0 : index
    %c851 = arith.constant 851 : index
    %78 = vector.load %arg14[%c0_33, %c851] : memref<32x1190xbf16, #tpu.memory_space<vmem>>, vector<16x32xbf16>
    tpu.vector_store %arg14[%c0_33, %c851], %77 {strides = array<i32>} : memref<32x1190xbf16, #tpu.memory_space<vmem>>, vector<16x32xbf16>,
    %79 = vector.extract_strided_slice %52 {offsets = [0, 416], sizes = [16, 32], strides = [1, 1]} : vector<16x512xbf16> to vector<16x32xbf16>
    %c0_34 = arith.constant 0 : index
    %c919 = arith.constant 919 : index
    %80 = vector.load %arg14[%c0_34, %c919] : memref<32x1190xbf16, #tpu.memory_space<vmem>>, vector<16x32xbf16>
    tpu.vector_store %arg14[%c0_34, %c919], %79 {strides = array<i32>} : memref<32x1190xbf16, #tpu.memory_space<vmem>>, vector<16x32xbf16>,
    %81 = vector.extract_strided_slice %52 {offsets = [0, 448], sizes = [16, 32], strides = [1, 1]} : vector<16x512xbf16> to vector<16x32xbf16>
    %c0_35 = arith.constant 0 : index
    %c987 = arith.constant 987 : index
    %82 = vector.load %arg14[%c0_35, %c987] : memref<32x1190xbf16, #tpu.memory_space<vmem>>, vector<16x32xbf16>
    tpu.vector_store %arg14[%c0_35, %c987], %81 {strides = array<i32>} : memref<32x1190xbf16, #tpu.memory_space<vmem>>, vector<16x32xbf16>,
    %83 = vector.extract_strided_slice %52 {offsets = [0, 480], sizes = [16, 32], strides = [1, 1]} : vector<16x512xbf16> to vector<16x32xbf16>
    %c0_36 = arith.constant 0 : index
    %c1055 = arith.constant 1055 : index
    %84 = vector.load %arg14[%c0_36, %c1055] : memref<32x1190xbf16, #tpu.memory_space<vmem>>, vector<16x32xbf16>
    tpu.vector_store %arg14[%c0_36, %c1055], %83 {strides = array<i32>} : memref<32x1190xbf16, #tpu.memory_space<vmem>>, vector<16x32xbf16>,
    %85 = vector.extract_strided_slice %45 {offsets = [32, 0], sizes = [16, 512], strides = [1, 1]} : vector<64x512xf32> to vector<16x512xf32>
    %86 = vector.extract_strided_slice %45 {offsets = [48, 0], sizes = [16, 512], strides = [1, 1]} : vector<64x512xf32> to vector<16x512xf32>
    %87 = arith.select %41, %85, %86 : vector<16x512xi1>, vector<16x512xf32>
    %88 = vector.broadcast %46 : vector<16x1xf32> to vector<16x512xf32>
    %89 = arith.addf %87, %88 : vector<16x512xf32>
    %90 = arith.truncf %89 : vector<16x512xf32> to vector<16x512xbf16>
    %91 = vector.extract_strided_slice %90 {offsets = [0, 0], sizes = [16, 32], strides = [1, 1]} : vector<16x512xbf16> to vector<16x32xbf16>
    %c0_37 = arith.constant 0 : index
    %c69 = arith.constant 69 : index
    %92 = vector.load %arg14[%c0_37, %c69] : memref<32x1190xbf16, #tpu.memory_space<vmem>>, vector<16x32xbf16>
    tpu.vector_store %arg14[%c0_37, %c69], %91 {strides = array<i32>} : memref<32x1190xbf16, #tpu.memory_space<vmem>>, vector<16x32xbf16>,
    %93 = vector.extract_strided_slice %90 {offsets = [0, 32], sizes = [16, 32], strides = [1, 1]} : vector<16x512xbf16> to vector<16x32xbf16>
    %c0_38 = arith.constant 0 : index
    %c137 = arith.constant 137 : index
    %94 = vector.load %arg14[%c0_38, %c137] : memref<32x1190xbf16, #tpu.memory_space<vmem>>, vector<16x32xbf16>
    tpu.vector_store %arg14[%c0_38, %c137], %93 {strides = array<i32>} : memref<32x1190xbf16, #tpu.memory_space<vmem>>, vector<16x32xbf16>,
    %95 = vector.extract_strided_slice %90 {offsets = [0, 64], sizes = [16, 32], strides = [1, 1]} : vector<16x512xbf16> to vector<16x32xbf16>
    %c0_39 = arith.constant 0 : index
    %c205 = arith.constant 205 : index
    %96 = vector.load %arg14[%c0_39, %c205] : memref<32x1190xbf16, #tpu.memory_space<vmem>>, vector<16x32xbf16>
    tpu.vector_store %arg14[%c0_39, %c205], %95 {strides = array<i32>} : memref<32x1190xbf16, #tpu.memory_space<vmem>>, vector<16x32xbf16>,
    %97 = vector.extract_strided_slice %90 {offsets = [0, 96], sizes = [16, 32], strides = [1, 1]} : vector<16x512xbf16> to vector<16x32xbf16>
    %c0_40 = arith.constant 0 : index
    %c273 = arith.constant 273 : index
    %98 = vector.load %arg14[%c0_40, %c273] : memref<32x1190xbf16, #tpu.memory_space<vmem>>, vector<16x32xbf16>
    tpu.vector_store %arg14[%c0_40, %c273], %97 {strides = array<i32>} : memref<32x1190xbf16, #tpu.memory_space<vmem>>, vector<16x32xbf16>,
    %99 = vector.extract_strided_slice %90 {offsets = [0, 128], sizes = [16, 32], strides = [1, 1]} : vector<16x512xbf16> to vector<16x32xbf16>
    %c0_41 = arith.constant 0 : index
    %c341 = arith.constant 341 : index
    %100 = vector.load %arg14[%c0_41, %c341] : memref<32x1190xbf16, #tpu.memory_space<vmem>>, vector<16x32xbf16>
    tpu.vector_store %arg14[%c0_41, %c341], %99 {strides = array<i32>} : memref<32x1190xbf16, #tpu.memory_space<vmem>>, vector<16x32xbf16>,
    %101 = vector.extract_strided_slice %90 {offsets = [0, 160], sizes = [16, 32], strides = [1, 1]} : vector<16x512xbf16> to vector<16x32xbf16>
    %c0_42 = arith.constant 0 : index
    %c409 = arith.constant 409 : index
    %102 = vector.load %arg14[%c0_42, %c409] : memref<32x1190xbf16, #tpu.memory_space<vmem>>, vector<16x32xbf16>
    tpu.vector_store %arg14[%c0_42, %c409], %101 {strides = array<i32>} : memref<32x1190xbf16, #tpu.memory_space<vmem>>, vector<16x32xbf16>,
    %103 = vector.extract_strided_slice %90 {offsets = [0, 192], sizes = [16, 32], strides = [1, 1]} : vector<16x512xbf16> to vector<16x32xbf16>
    %c0_43 = arith.constant 0 : index
    %c477 = arith.constant 477 : index
    %104 = vector.load %arg14[%c0_43, %c477] : memref<32x1190xbf16, #tpu.memory_space<vmem>>, vector<16x32xbf16>
    tpu.vector_store %arg14[%c0_43, %c477], %103 {strides = array<i32>} : memref<32x1190xbf16, #tpu.memory_space<vmem>>, vector<16x32xbf16>,
    %105 = vector.extract_strided_slice %90 {offsets = [0, 224], sizes = [16, 32], strides = [1, 1]} : vector<16x512xbf16> to vector<16x32xbf16>
    %c0_44 = arith.constant 0 : index
    %c545 = arith.constant 545 : index
    %106 = vector.load %arg14[%c0_44, %c545] : memref<32x1190xbf16, #tpu.memory_space<vmem>>, vector<16x32xbf16>
    tpu.vector_store %arg14[%c0_44, %c545], %105 {strides = array<i32>} : memref<32x1190xbf16, #tpu.memory_space<vmem>>, vector<16x32xbf16>,
    %107 = vector.extract_strided_slice %90 {offsets = [0, 256], sizes = [16, 32], strides = [1, 1]} : vector<16x512xbf16> to vector<16x32xbf16>
    %c0_45 = arith.constant 0 : index
    %c613 = arith.constant 613 : index
    %108 = vector.load %arg14[%c0_45, %c613] : memref<32x1190xbf16, #tpu.memory_space<vmem>>, vector<16x32xbf16>
    tpu.vector_store %arg14[%c0_45, %c613], %107 {strides = array<i32>} : memref<32x1190xbf16, #tpu.memory_space<vmem>>, vector<16x32xbf16>,
    %109 = vector.extract_strided_slice %90 {offsets = [0, 288], sizes = [16, 32], strides = [1, 1]} : vector<16x512xbf16> to vector<16x32xbf16>
    %c0_46 = arith.constant 0 : index
    %c681 = arith.constant 681 : index
    %110 = vector.load %arg14[%c0_46, %c681] : memref<32x1190xbf16, #tpu.memory_space<vmem>>, vector<16x32xbf16>
    tpu.vector_store %arg14[%c0_46, %c681], %109 {strides = array<i32>} : memref<32x1190xbf16, #tpu.memory_space<vmem>>, vector<16x32xbf16>,
    %111 = vector.extract_strided_slice %90 {offsets = [0, 320], sizes = [16, 32], strides = [1, 1]} : vector<16x512xbf16> to vector<16x32xbf16>
    %c0_47 = arith.constant 0 : index
    %c749 = arith.constant 749 : index
    %112 = vector.load %arg14[%c0_47, %c749] : memref<32x1190xbf16, #tpu.memory_space<vmem>>, vector<16x32xbf16>
    tpu.vector_store %arg14[%c0_47, %c749], %111 {strides = array<i32>} : memref<32x1190xbf16, #tpu.memory_space<vmem>>, vector<16x32xbf16>,
    %113 = vector.extract_strided_slice %90 {offsets = [0, 352], sizes = [16, 32], strides = [1, 1]} : vector<16x512xbf16> to vector<16x32xbf16>
    %c0_48 = arith.constant 0 : index
    %c817 = arith.constant 817 : index
    %114 = vector.load %arg14[%c0_48, %c817] : memref<32x1190xbf16, #tpu.memory_space<vmem>>, vector<16x32xbf16>
    tpu.vector_store %arg14[%c0_48, %c817], %113 {strides = array<i32>} : memref<32x1190xbf16, #tpu.memory_space<vmem>>, vector<16x32xbf16>,
    %115 = vector.extract_strided_slice %90 {offsets = [0, 384], sizes = [16, 32], strides = [1, 1]} : vector<16x512xbf16> to vector<16x32xbf16>
    %c0_49 = arith.constant 0 : index
    %c885 = arith.constant 885 : index
    %116 = vector.load %arg14[%c0_49, %c885] : memref<32x1190xbf16, #tpu.memory_space<vmem>>, vector<16x32xbf16>
    tpu.vector_store %arg14[%c0_49, %c885], %115 {strides = array<i32>} : memref<32x1190xbf16, #tpu.memory_space<vmem>>, vector<16x32xbf16>,
    %117 = vector.extract_strided_slice %90 {offsets = [0, 416], sizes = [16, 32], strides = [1, 1]} : vector<16x512xbf16> to vector<16x32xbf16>
    %c0_50 = arith.constant 0 : index
    %c953 = arith.constant 953 : index
    %118 = vector.load %arg14[%c0_50, %c953] : memref<32x1190xbf16, #tpu.memory_space<vmem>>, vector<16x32xbf16>
    tpu.vector_store %arg14[%c0_50, %c953], %117 {strides = array<i32>} : memref<32x1190xbf16, #tpu.memory_space<vmem>>, vector<16x32xbf16>,
    %119 = vector.extract_strided_slice %90 {offsets = [0, 448], sizes = [16, 32], strides = [1, 1]} : vector<16x512xbf16> to vector<16x32xbf16>
    %c0_51 = arith.constant 0 : index
    %c1021 = arith.constant 1021 : index
    %120 = vector.load %arg14[%c0_51, %c1021] : memref<32x1190xbf16, #tpu.memory_space<vmem>>, vector<16x32xbf16>
    tpu.vector_store %arg14[%c0_51, %c1021], %119 {strides = array<i32>} : memref<32x1190xbf16, #tpu.memory_space<vmem>>, vector<16x32xbf16>,
    %121 = vector.extract_strided_slice %90 {offsets = [0, 480], sizes = [16, 32], strides = [1, 1]} : vector<16x512xbf16> to vector<16x32xbf16>
    %c0_52 = arith.constant 0 : index
    %c1089 = arith.constant 1089 : index
    %122 = vector.load %arg14[%c0_52, %c1089] : memref<32x1190xbf16, #tpu.memory_space<vmem>>, vector<16x32xbf16>
    tpu.vector_store %arg14[%c0_52, %c1089], %121 {strides = array<i32>} : memref<32x1190xbf16, #tpu.memory_space<vmem>>, vector<16x32xbf16>,
    %c0_53 = arith.constant 0 : index
    %c0_54 = arith.constant 0 : index
    %123 = vector.load %arg5[%c0_53, %c0_54] : memref<16x72xbf16, #tpu.memory_space<vmem>>, vector<16x72xbf16>
    %c0_55 = arith.constant 0 : index
    %c0_56 = arith.constant 0 : index
    %124 = vector.load %arg6[%c0_55, %c0_56] : memref<16x1xf32, #tpu.memory_space<vmem>>, vector<16x1xf32>
    %c0_57 = arith.constant 0 : index
    %c0_58 = arith.constant 0 : index
    %c0_59 = arith.constant 0 : index
    %125 = vector.load %arg2[%c0_57, %c0_58, %c0_59] : memref<1x8x1190xbf16, #tpu.memory_space<vmem>>, vector<1x8x1088xbf16>
    %126 = vector.shape_cast %125 : vector<1x8x1088xbf16> to vector<8x1088xbf16>
    %c0_60 = arith.constant 0 : index
    %c0_61 = arith.constant 0 : index
    %c1 = arith.constant 1 : index
    %127 = vector.load %arg2[%c0_60, %c0_61, %c1] : memref<1x8x1190xbf16, #tpu.memory_space<vmem>>, vector<1x8x1088xbf16>
    %128 = vector.shape_cast %127 : vector<1x8x1088xbf16> to vector<8x1088xbf16>
    %c0_62 = arith.constant 0 : index
    %c0_63 = arith.constant 0 : index
    %c2 = arith.constant 2 : index
    %129 = vector.load %arg2[%c0_62, %c0_63, %c2] : memref<1x8x1190xbf16, #tpu.memory_space<vmem>>, vector<1x8x1088xbf16>
    %130 = vector.shape_cast %129 : vector<1x8x1088xbf16> to vector<8x1088xbf16>
    %c0_64 = arith.constant 0 : index
    %c0_65 = arith.constant 0 : index
    %c34 = arith.constant 34 : index
    %131 = vector.load %arg2[%c0_64, %c0_65, %c34] : memref<1x8x1190xbf16, #tpu.memory_space<vmem>>, vector<1x8x1088xbf16>
    %132 = vector.shape_cast %131 : vector<1x8x1088xbf16> to vector<8x1088xbf16>
    %c0_66 = arith.constant 0 : index
    %c0_67 = arith.constant 0 : index
    %c35_68 = arith.constant 35 : index
    %133 = vector.load %arg2[%c0_66, %c0_67, %c35_68] : memref<1x8x1190xbf16, #tpu.memory_space<vmem>>, vector<1x8x1088xbf16>
    %134 = vector.shape_cast %133 : vector<1x8x1088xbf16> to vector<8x1088xbf16>
    %c0_69 = arith.constant 0 : index
    %c0_70 = arith.constant 0 : index
    %c36 = arith.constant 36 : index
    %135 = vector.load %arg2[%c0_69, %c0_70, %c36] : memref<1x8x1190xbf16, #tpu.memory_space<vmem>>, vector<1x8x1088xbf16>
    %136 = vector.shape_cast %135 : vector<1x8x1088xbf16> to vector<8x1088xbf16>
    %c0_71 = arith.constant 0 : index
    %c0_72 = arith.constant 0 : index
    %c68 = arith.constant 68 : index
    %137 = vector.load %arg2[%c0_71, %c0_72, %c68] : memref<1x8x1190xbf16, #tpu.memory_space<vmem>>, vector<1x8x1088xbf16>
    %138 = vector.shape_cast %137 : vector<1x8x1088xbf16> to vector<8x1088xbf16>
    %c0_73 = arith.constant 0 : index
    %c0_74 = arith.constant 0 : index
    %c69_75 = arith.constant 69 : index
    %139 = vector.load %arg2[%c0_73, %c0_74, %c69_75] : memref<1x8x1190xbf16, #tpu.memory_space<vmem>>, vector<1x8x1088xbf16>
    %140 = vector.shape_cast %139 : vector<1x8x1088xbf16> to vector<8x1088xbf16>
    %c0_76 = arith.constant 0 : index
    %c0_77 = arith.constant 0 : index
    %c70 = arith.constant 70 : index
    %141 = vector.load %arg2[%c0_76, %c0_77, %c70] : memref<1x8x1190xbf16, #tpu.memory_space<vmem>>, vector<1x8x1088xbf16>
    %142 = vector.shape_cast %141 : vector<1x8x1088xbf16> to vector<8x1088xbf16>
    %143 = tpu.concatenate %126, %128, %130, %132, %134, %136, %138, %140, %142 in 0 : vector<8x1088xbf16>, vector<8x1088xbf16>, vector<8x1088xbf16>, vector<8x1088xbf16>, vector<8x1088xbf16>, vector<8x1088xbf16>, vector<8x1088xbf16>, vector<8x1088xbf16>, vector<8x1088xbf16> -> vector<72x1088xbf16>
    %cst_78 = arith.constant dense<0.000000e+00> : vector<16x1088xf32>
    %144 = tpu.matmul %123, %143, %cst_78 {dimension_numbers = #tpu.dot_dimension_numbers<[1], [0], [0], [1], [0, 0, 1, 1], [], []>} : vector<16x72xbf16>, vector<72x1088xbf16>, vector<16x1088xf32> -> vector<16x1088xf32>
    %145 = vector.broadcast %124 : vector<16x1xf32> to vector<16x1088xf32>
    %146 = arith.addf %144, %145 : vector<16x1088xf32>
    %cst_79 = arith.constant 0.000000e+00 : f32
    %147 = vector.broadcast %cst_79 : f32 to vector<16x1088xf32>
    %148 = arith.select %22, %146, %147 : vector<16x1088xi1>, vector<16x1088xf32>
    %149 = arith.truncf %148 : vector<16x1088xf32> to vector<16x1088xbf16>
    %c16 = arith.constant 16 : index
    %c35_80 = arith.constant 35 : index
    %150 = vector.load %arg14[%c16, %c35_80] : memref<32x1190xbf16, #tpu.memory_space<vmem>>, vector<16x1088xbf16>
    tpu.vector_store %arg14[%c16, %c35_80], %149 {strides = array<i32>} : memref<32x1190xbf16, #tpu.memory_space<vmem>>, vector<16x1088xbf16>,
    %c0_81 = arith.constant 0 : index
    %c0_82 = arith.constant 0 : index
    %151 = vector.load %arg7[%c0_81, %c0_82] : memref<16x288xbf16, #tpu.memory_space<vmem>>, vector<16x288xbf16>
    %c0_83 = arith.constant 0 : index
    %c0_84 = arith.constant 0 : index
    %152 = vector.load %arg8[%c0_83, %c0_84] : memref<16x1xf32, #tpu.memory_space<vmem>>, vector<16x1xf32>
    %c0_85 = arith.constant 0 : index
    %c0_86 = arith.constant 0 : index
    %153 = vector.load %arg14[%c0_85, %c0_86] : memref<32x1190xbf16, #tpu.memory_space<vmem>>, vector<32x1088xbf16>
    %c0_87 = arith.constant 0 : index
    %c1_88 = arith.constant 1 : index
    %154 = vector.load %arg14[%c0_87, %c1_88] : memref<32x1190xbf16, #tpu.memory_space<vmem>>, vector<32x1088xbf16>
    %c0_89 = arith.constant 0 : index
    %c2_90 = arith.constant 2 : index
    %155 = vector.load %arg14[%c0_89, %c2_90] : memref<32x1190xbf16, #tpu.memory_space<vmem>>, vector<32x1088xbf16>
    %c0_91 = arith.constant 0 : index
    %c34_92 = arith.constant 34 : index
    %156 = vector.load %arg14[%c0_91, %c34_92] : memref<32x1190xbf16, #tpu.memory_space<vmem>>, vector<32x1088xbf16>
    %c0_93 = arith.constant 0 : index
    %c35_94 = arith.constant 35 : index
    %157 = vector.load %arg14[%c0_93, %c35_94] : memref<32x1190xbf16, #tpu.memory_space<vmem>>, vector<32x1088xbf16>
    %c0_95 = arith.constant 0 : index
    %c36_96 = arith.constant 36 : index
    %158 = vector.load %arg14[%c0_95, %c36_96] : memref<32x1190xbf16, #tpu.memory_space<vmem>>, vector<32x1088xbf16>
    %c0_97 = arith.constant 0 : index
    %c68_98 = arith.constant 68 : index
    %159 = vector.load %arg14[%c0_97, %c68_98] : memref<32x1190xbf16, #tpu.memory_space<vmem>>, vector<32x1088xbf16>
    %c0_99 = arith.constant 0 : index
    %c69_100 = arith.constant 69 : index
    %160 = vector.load %arg14[%c0_99, %c69_100] : memref<32x1190xbf16, #tpu.memory_space<vmem>>, vector<32x1088xbf16>
    %c0_101 = arith.constant 0 : index
    %c70_102 = arith.constant 70 : index
    %161 = vector.load %arg14[%c0_101, %c70_102] : memref<32x1190xbf16, #tpu.memory_space<vmem>>, vector<32x1088xbf16>
    %162 = tpu.concatenate %153, %154, %155, %156, %157, %158, %159, %160, %161 in 0 : vector<32x1088xbf16>, vector<32x1088xbf16>, vector<32x1088xbf16>, vector<32x1088xbf16>, vector<32x1088xbf16>, vector<32x1088xbf16>, vector<32x1088xbf16>, vector<32x1088xbf16>, vector<32x1088xbf16> -> vector<288x1088xbf16>
    %cst_103 = arith.constant dense<0.000000e+00> : vector<16x1088xf32>
    %163 = tpu.matmul %151, %162, %cst_103 {dimension_numbers = #tpu.dot_dimension_numbers<[1], [0], [0], [1], [0, 0, 1, 1], [], []>} : vector<16x288xbf16>, vector<288x1088xbf16>, vector<16x1088xf32> -> vector<16x1088xf32>
    %164 = vector.broadcast %152 : vector<16x1xf32> to vector<16x1088xf32>
    %165 = arith.addf %163, %164 : vector<16x1088xf32>
    %cst_104 = arith.constant 0.000000e+00 : f32
    %166 = vector.broadcast %cst_104 : f32 to vector<16x1088xf32>
    %167 = arith.maximumf %165, %166 : vector<16x1088xf32>
    %cst_105 = arith.constant 0.000000e+00 : f32
    %168 = vector.broadcast %cst_105 : f32 to vector<16x1088xf32>
    %169 = arith.select %22, %167, %168 : vector<16x1088xi1>, vector<16x1088xf32>
    %170 = arith.truncf %169 : vector<16x1088xf32> to vector<16x1088xbf16>
    %c0_106 = arith.constant 0 : index
    %c35_107 = arith.constant 35 : index
    %171 = vector.load %arg15[%c0_106, %c35_107] : memref<16x1190xbf16, #tpu.memory_space<vmem>>, vector<16x1088xbf16>
    tpu.vector_store %arg15[%c0_106, %c35_107], %170 {strides = array<i32>} : memref<16x1190xbf16, #tpu.memory_space<vmem>>, vector<16x1088xbf16>,
    %c0_108 = arith.constant 0 : index
    %c0_109 = arith.constant 0 : index
    %172 = vector.load %arg9[%c0_108, %c0_109] : memref<16x144xbf16, #tpu.memory_space<vmem>>, vector<16x144xbf16>
    %c0_110 = arith.constant 0 : index
    %c0_111 = arith.constant 0 : index
    %173 = vector.load %arg10[%c0_110, %c0_111] : memref<16x1xf32, #tpu.memory_space<vmem>>, vector<16x1xf32>
    %c0_112 = arith.constant 0 : index
    %c0_113 = arith.constant 0 : index
    %174 = vector.load %arg15[%c0_112, %c0_113] : memref<16x1190xbf16, #tpu.memory_space<vmem>>, vector<16x1088xbf16>
    %c0_114 = arith.constant 0 : index
    %c1_115 = arith.constant 1 : index
    %175 = vector.load %arg15[%c0_114, %c1_115] : memref<16x1190xbf16, #tpu.memory_space<vmem>>, vector<16x1088xbf16>
    %c0_116 = arith.constant 0 : index
    %c2_117 = arith.constant 2 : index
    %176 = vector.load %arg15[%c0_116, %c2_117] : memref<16x1190xbf16, #tpu.memory_space<vmem>>, vector<16x1088xbf16>
    %c0_118 = arith.constant 0 : index
    %c34_119 = arith.constant 34 : index
    %177 = vector.load %arg15[%c0_118, %c34_119] : memref<16x1190xbf16, #tpu.memory_space<vmem>>, vector<16x1088xbf16>
    %c0_120 = arith.constant 0 : index
    %c35_121 = arith.constant 35 : index
    %178 = vector.load %arg15[%c0_120, %c35_121] : memref<16x1190xbf16, #tpu.memory_space<vmem>>, vector<16x1088xbf16>
    %c0_122 = arith.constant 0 : index
    %c36_123 = arith.constant 36 : index
    %179 = vector.load %arg15[%c0_122, %c36_123] : memref<16x1190xbf16, #tpu.memory_space<vmem>>, vector<16x1088xbf16>
    %c0_124 = arith.constant 0 : index
    %c68_125 = arith.constant 68 : index
    %180 = vector.load %arg15[%c0_124, %c68_125] : memref<16x1190xbf16, #tpu.memory_space<vmem>>, vector<16x1088xbf16>
    %c0_126 = arith.constant 0 : index
    %c69_127 = arith.constant 69 : index
    %181 = vector.load %arg15[%c0_126, %c69_127] : memref<16x1190xbf16, #tpu.memory_space<vmem>>, vector<16x1088xbf16>
    %c0_128 = arith.constant 0 : index
    %c70_129 = arith.constant 70 : index
    %182 = vector.load %arg15[%c0_128, %c70_129] : memref<16x1190xbf16, #tpu.memory_space<vmem>>, vector<16x1088xbf16>
    %183 = tpu.concatenate %174, %175, %176, %177, %178, %179, %180, %181, %182 in 0 : vector<16x1088xbf16>, vector<16x1088xbf16>, vector<16x1088xbf16>, vector<16x1088xbf16>, vector<16x1088xbf16>, vector<16x1088xbf16>, vector<16x1088xbf16>, vector<16x1088xbf16>, vector<16x1088xbf16> -> vector<144x1088xbf16>
    %cst_130 = arith.constant dense<0.000000e+00> : vector<16x1088xf32>
    %184 = tpu.matmul %172, %183, %cst_130 {dimension_numbers = #tpu.dot_dimension_numbers<[1], [0], [0], [1], [0, 0, 1, 1], [], []>} : vector<16x144xbf16>, vector<144x1088xbf16>, vector<16x1088xf32> -> vector<16x1088xf32>
    %185 = vector.broadcast %173 : vector<16x1xf32> to vector<16x1088xf32>
    %186 = arith.addf %184, %185 : vector<16x1088xf32>
    %cst_131 = arith.constant 0.000000e+00 : f32
    %187 = vector.broadcast %cst_131 : f32 to vector<16x1088xf32>
    %188 = arith.select %22, %186, %187 : vector<16x1088xi1>, vector<16x1088xf32>
    %cst_132 = arith.constant dense<0.000000e+00> : vector<16xf32>
    %189 = vector.multi_reduction <add>, %188, %cst_132 [1] : vector<16x1088xf32> to vector<16xf32>
    %190 = vector.shape_cast %189 : vector<16xf32> to vector<16x1xf32>
    %cst_133 = arith.constant 1.024000e+03 : f32
    %191 = vector.broadcast %cst_133 : f32 to vector<16x1xf32>
    %192 = arith.divf %190, %191 : vector<16x1xf32>
    %c0_134 = arith.constant 0 : index
    %c0_135 = arith.constant 0 : index
    %193 = vector.load %arg11[%c0_134, %c0_135] : memref<16x1xf32, #tpu.memory_space<vmem>>, vector<16x1xf32>
    %194 = arith.mulf %193, %192 : vector<16x1xf32>
    %cst_136 = arith.constant dense<0.000000e+00> : vector<1xf32>
    %195 = vector.multi_reduction <add>, %194, %cst_136 [0] : vector<16x1xf32> to vector<1xf32>
    %196 = vector.shape_cast %195 : vector<1xf32> to vector<1x1xf32>
    %cst_137 = arith.constant 0.000000e+00 : f32
    %197 = vector.broadcast %cst_137 : f32 to vector<1x1xf32>
    %198 = arith.maximumf %196, %197 : vector<1x1xf32>
    %c0_138 = arith.constant 0 : index
    %c0_139 = arith.constant 0 : index
    %199 = vector.load %arg12[%c0_138, %c0_139] : memref<16x1xf32, #tpu.memory_space<vmem>>, vector<16x1xf32>
    %200 = vector.broadcast %198 : vector<1x1xf32> to vector<16x1xf32>
    %201 = arith.mulf %199, %200 : vector<16x1xf32>
    %cst_140 = arith.constant dense<0.000000e+00> : vector<16xf32>
    %202 = vector.multi_reduction <add>, %201, %cst_140 [1] : vector<16x1xf32> to vector<16xf32>
    %203 = vector.shape_cast %202 : vector<16xf32> to vector<16x1xf32>
    %204 = arith.negf %203 : vector<16x1xf32>
    %205 = math.exp %204 : vector<16x1xf32>
    %cst_141 = arith.constant 1.000000e+00 : f32
    %206 = vector.broadcast %cst_141 : f32 to vector<16x1xf32>
    %207 = arith.addf %206, %205 : vector<16x1xf32>
    %208 = arith.divf %206, %207 : vector<16x1xf32>
    %209 = vector.broadcast %208 : vector<16x1xf32> to vector<16x1088xf32>
    %210 = arith.mulf %186, %209 : vector<16x1088xf32>
    %211 = vector.extract_strided_slice %210 {offsets = [0, 0], sizes = [16, 32], strides = [1, 1]} : vector<16x1088xf32> to vector<16x32xf32>
    %c0_142 = arith.constant 0 : index
    %c0_143 = arith.constant 0 : index
    %c0_144 = arith.constant 0 : index
    %212 = vector.load %arg13[%c0_142, %c0_143, %c0_144] : memref<1x16x1024xf32, #tpu.memory_space<vmem>>, vector<1x16x32xf32>
    %213 = vector.shape_cast %212 : vector<1x16x32xf32> to vector<16x32xf32>
    %214 = vector.shape_cast %211 : vector<16x32xf32> to vector<1x16x32xf32>
    tpu.vector_store %arg13[%c0_142, %c0_143, %c0_144], %214 {strides = array<i32>} : memref<1x16x1024xf32, #tpu.memory_space<vmem>>, vector<1x16x32xf32>,
    %215 = vector.extract_strided_slice %210 {offsets = [0, 34], sizes = [16, 32], strides = [1, 1]} : vector<16x1088xf32> to vector<16x32xf32>
    %c0_145 = arith.constant 0 : index
    %c0_146 = arith.constant 0 : index
    %c32 = arith.constant 32 : index
    %216 = vector.load %arg13[%c0_145, %c0_146, %c32] : memref<1x16x1024xf32, #tpu.memory_space<vmem>>, vector<1x16x32xf32>
    %217 = vector.shape_cast %216 : vector<1x16x32xf32> to vector<16x32xf32>
    %218 = vector.shape_cast %215 : vector<16x32xf32> to vector<1x16x32xf32>
    tpu.vector_store %arg13[%c0_145, %c0_146, %c32], %218 {strides = array<i32>} : memref<1x16x1024xf32, #tpu.memory_space<vmem>>, vector<1x16x32xf32>,
    %219 = vector.extract_strided_slice %210 {offsets = [0, 68], sizes = [16, 32], strides = [1, 1]} : vector<16x1088xf32> to vector<16x32xf32>
    %c0_147 = arith.constant 0 : index
    %c0_148 = arith.constant 0 : index
    %c64 = arith.constant 64 : index
    %220 = vector.load %arg13[%c0_147, %c0_148, %c64] : memref<1x16x1024xf32, #tpu.memory_space<vmem>>, vector<1x16x32xf32>
    %221 = vector.shape_cast %220 : vector<1x16x32xf32> to vector<16x32xf32>
    %222 = vector.shape_cast %219 : vector<16x32xf32> to vector<1x16x32xf32>
    tpu.vector_store %arg13[%c0_147, %c0_148, %c64], %222 {strides = array<i32>} : memref<1x16x1024xf32, #tpu.memory_space<vmem>>, vector<1x16x32xf32>,
    %223 = vector.extract_strided_slice %210 {offsets = [0, 102], sizes = [16, 32], strides = [1, 1]} : vector<16x1088xf32> to vector<16x32xf32>
    %c0_149 = arith.constant 0 : index
    %c0_150 = arith.constant 0 : index
    %c96 = arith.constant 96 : index
    %224 = vector.load %arg13[%c0_149, %c0_150, %c96] : memref<1x16x1024xf32, #tpu.memory_space<vmem>>, vector<1x16x32xf32>
    %225 = vector.shape_cast %224 : vector<1x16x32xf32> to vector<16x32xf32>
    %226 = vector.shape_cast %223 : vector<16x32xf32> to vector<1x16x32xf32>
    tpu.vector_store %arg13[%c0_149, %c0_150, %c96], %226 {strides = array<i32>} : memref<1x16x1024xf32, #tpu.memory_space<vmem>>, vector<1x16x32xf32>,
    %227 = vector.extract_strided_slice %210 {offsets = [0, 136], sizes = [16, 32], strides = [1, 1]} : vector<16x1088xf32> to vector<16x32xf32>
    %c0_151 = arith.constant 0 : index
    %c0_152 = arith.constant 0 : index
    %c128 = arith.constant 128 : index
    %228 = vector.load %arg13[%c0_151, %c0_152, %c128] : memref<1x16x1024xf32, #tpu.memory_space<vmem>>, vector<1x16x32xf32>
    %229 = vector.shape_cast %228 : vector<1x16x32xf32> to vector<16x32xf32>
    %230 = vector.shape_cast %227 : vector<16x32xf32> to vector<1x16x32xf32>
    tpu.vector_store %arg13[%c0_151, %c0_152, %c128], %230 {strides = array<i32>} : memref<1x16x1024xf32, #tpu.memory_space<vmem>>, vector<1x16x32xf32>,
    %231 = vector.extract_strided_slice %210 {offsets = [0, 170], sizes = [16, 32], strides = [1, 1]} : vector<16x1088xf32> to vector<16x32xf32>
    %c0_153 = arith.constant 0 : index
    %c0_154 = arith.constant 0 : index
    %c160 = arith.constant 160 : index
    %232 = vector.load %arg13[%c0_153, %c0_154, %c160] : memref<1x16x1024xf32, #tpu.memory_space<vmem>>, vector<1x16x32xf32>
    %233 = vector.shape_cast %232 : vector<1x16x32xf32> to vector<16x32xf32>
    %234 = vector.shape_cast %231 : vector<16x32xf32> to vector<1x16x32xf32>
    tpu.vector_store %arg13[%c0_153, %c0_154, %c160], %234 {strides = array<i32>} : memref<1x16x1024xf32, #tpu.memory_space<vmem>>, vector<1x16x32xf32>,
    %235 = vector.extract_strided_slice %210 {offsets = [0, 204], sizes = [16, 32], strides = [1, 1]} : vector<16x1088xf32> to vector<16x32xf32>
    %c0_155 = arith.constant 0 : index
    %c0_156 = arith.constant 0 : index
    %c192 = arith.constant 192 : index
    %236 = vector.load %arg13[%c0_155, %c0_156, %c192] : memref<1x16x1024xf32, #tpu.memory_space<vmem>>, vector<1x16x32xf32>
    %237 = vector.shape_cast %236 : vector<1x16x32xf32> to vector<16x32xf32>
    %238 = vector.shape_cast %235 : vector<16x32xf32> to vector<1x16x32xf32>
    tpu.vector_store %arg13[%c0_155, %c0_156, %c192], %238 {strides = array<i32>} : memref<1x16x1024xf32, #tpu.memory_space<vmem>>, vector<1x16x32xf32>,
    %239 = vector.extract_strided_slice %210 {offsets = [0, 238], sizes = [16, 32], strides = [1, 1]} : vector<16x1088xf32> to vector<16x32xf32>
    %c0_157 = arith.constant 0 : index
    %c0_158 = arith.constant 0 : index
    %c224 = arith.constant 224 : index
    %240 = vector.load %arg13[%c0_157, %c0_158, %c224] : memref<1x16x1024xf32, #tpu.memory_space<vmem>>, vector<1x16x32xf32>
    %241 = vector.shape_cast %240 : vector<1x16x32xf32> to vector<16x32xf32>
    %242 = vector.shape_cast %239 : vector<16x32xf32> to vector<1x16x32xf32>
    tpu.vector_store %arg13[%c0_157, %c0_158, %c224], %242 {strides = array<i32>} : memref<1x16x1024xf32, #tpu.memory_space<vmem>>, vector<1x16x32xf32>,
    %243 = vector.extract_strided_slice %210 {offsets = [0, 272], sizes = [16, 32], strides = [1, 1]} : vector<16x1088xf32> to vector<16x32xf32>
    %c0_159 = arith.constant 0 : index
    %c0_160 = arith.constant 0 : index
    %c256 = arith.constant 256 : index
    %244 = vector.load %arg13[%c0_159, %c0_160, %c256] : memref<1x16x1024xf32, #tpu.memory_space<vmem>>, vector<1x16x32xf32>
    %245 = vector.shape_cast %244 : vector<1x16x32xf32> to vector<16x32xf32>
    %246 = vector.shape_cast %243 : vector<16x32xf32> to vector<1x16x32xf32>
    tpu.vector_store %arg13[%c0_159, %c0_160, %c256], %246 {strides = array<i32>} : memref<1x16x1024xf32, #tpu.memory_space<vmem>>, vector<1x16x32xf32>,
    %247 = vector.extract_strided_slice %210 {offsets = [0, 306], sizes = [16, 32], strides = [1, 1]} : vector<16x1088xf32> to vector<16x32xf32>
    %c0_161 = arith.constant 0 : index
    %c0_162 = arith.constant 0 : index
    %c288 = arith.constant 288 : index
    %248 = vector.load %arg13[%c0_161, %c0_162, %c288] : memref<1x16x1024xf32, #tpu.memory_space<vmem>>, vector<1x16x32xf32>
    %249 = vector.shape_cast %248 : vector<1x16x32xf32> to vector<16x32xf32>
    %250 = vector.shape_cast %247 : vector<16x32xf32> to vector<1x16x32xf32>
    tpu.vector_store %arg13[%c0_161, %c0_162, %c288], %250 {strides = array<i32>} : memref<1x16x1024xf32, #tpu.memory_space<vmem>>, vector<1x16x32xf32>,
    %251 = vector.extract_strided_slice %210 {offsets = [0, 340], sizes = [16, 32], strides = [1, 1]} : vector<16x1088xf32> to vector<16x32xf32>
    %c0_163 = arith.constant 0 : index
    %c0_164 = arith.constant 0 : index
    %c320 = arith.constant 320 : index
    %252 = vector.load %arg13[%c0_163, %c0_164, %c320] : memref<1x16x1024xf32, #tpu.memory_space<vmem>>, vector<1x16x32xf32>
    %253 = vector.shape_cast %252 : vector<1x16x32xf32> to vector<16x32xf32>
    %254 = vector.shape_cast %251 : vector<16x32xf32> to vector<1x16x32xf32>
    tpu.vector_store %arg13[%c0_163, %c0_164, %c320], %254 {strides = array<i32>} : memref<1x16x1024xf32, #tpu.memory_space<vmem>>, vector<1x16x32xf32>,
    %255 = vector.extract_strided_slice %210 {offsets = [0, 374], sizes = [16, 32], strides = [1, 1]} : vector<16x1088xf32> to vector<16x32xf32>
    %c0_165 = arith.constant 0 : index
    %c0_166 = arith.constant 0 : index
    %c352 = arith.constant 352 : index
    %256 = vector.load %arg13[%c0_165, %c0_166, %c352] : memref<1x16x1024xf32, #tpu.memory_space<vmem>>, vector<1x16x32xf32>
    %257 = vector.shape_cast %256 : vector<1x16x32xf32> to vector<16x32xf32>
    %258 = vector.shape_cast %255 : vector<16x32xf32> to vector<1x16x32xf32>
    tpu.vector_store %arg13[%c0_165, %c0_166, %c352], %258 {strides = array<i32>} : memref<1x16x1024xf32, #tpu.memory_space<vmem>>, vector<1x16x32xf32>,
    %259 = vector.extract_strided_slice %210 {offsets = [0, 408], sizes = [16, 32], strides = [1, 1]} : vector<16x1088xf32> to vector<16x32xf32>
    %c0_167 = arith.constant 0 : index
    %c0_168 = arith.constant 0 : index
    %c384 = arith.constant 384 : index
    %260 = vector.load %arg13[%c0_167, %c0_168, %c384] : memref<1x16x1024xf32, #tpu.memory_space<vmem>>, vector<1x16x32xf32>
    %261 = vector.shape_cast %260 : vector<1x16x32xf32> to vector<16x32xf32>
    %262 = vector.shape_cast %259 : vector<16x32xf32> to vector<1x16x32xf32>
    tpu.vector_store %arg13[%c0_167, %c0_168, %c384], %262 {strides = array<i32>} : memref<1x16x1024xf32, #tpu.memory_space<vmem>>, vector<1x16x32xf32>,
    %263 = vector.extract_strided_slice %210 {offsets = [0, 442], sizes = [16, 32], strides = [1, 1]} : vector<16x1088xf32> to vector<16x32xf32>
    %c0_169 = arith.constant 0 : index
    %c0_170 = arith.constant 0 : index
    %c416 = arith.constant 416 : index
    %264 = vector.load %arg13[%c0_169, %c0_170, %c416] : memref<1x16x1024xf32, #tpu.memory_space<vmem>>, vector<1x16x32xf32>
    %265 = vector.shape_cast %264 : vector<1x16x32xf32> to vector<16x32xf32>
    %266 = vector.shape_cast %263 : vector<16x32xf32> to vector<1x16x32xf32>
    tpu.vector_store %arg13[%c0_169, %c0_170, %c416], %266 {strides = array<i32>} : memref<1x16x1024xf32, #tpu.memory_space<vmem>>, vector<1x16x32xf32>,
    %267 = vector.extract_strided_slice %210 {offsets = [0, 476], sizes = [16, 32], strides = [1, 1]} : vector<16x1088xf32> to vector<16x32xf32>
    %c0_171 = arith.constant 0 : index
    %c0_172 = arith.constant 0 : index
    %c448 = arith.constant 448 : index
    %268 = vector.load %arg13[%c0_171, %c0_172, %c448] : memref<1x16x1024xf32, #tpu.memory_space<vmem>>, vector<1x16x32xf32>
    %269 = vector.shape_cast %268 : vector<1x16x32xf32> to vector<16x32xf32>
    %270 = vector.shape_cast %267 : vector<16x32xf32> to vector<1x16x32xf32>
    tpu.vector_store %arg13[%c0_171, %c0_172, %c448], %270 {strides = array<i32>} : memref<1x16x1024xf32, #tpu.memory_space<vmem>>, vector<1x16x32xf32>,
    %271 = vector.extract_strided_slice %210 {offsets = [0, 510], sizes = [16, 32], strides = [1, 1]} : vector<16x1088xf32> to vector<16x32xf32>
    %c0_173 = arith.constant 0 : index
    %c0_174 = arith.constant 0 : index
    %c480 = arith.constant 480 : index
    %272 = vector.load %arg13[%c0_173, %c0_174, %c480] : memref<1x16x1024xf32, #tpu.memory_space<vmem>>, vector<1x16x32xf32>
    %273 = vector.shape_cast %272 : vector<1x16x32xf32> to vector<16x32xf32>
    %274 = vector.shape_cast %271 : vector<16x32xf32> to vector<1x16x32xf32>
    tpu.vector_store %arg13[%c0_173, %c0_174, %c480], %274 {strides = array<i32>} : memref<1x16x1024xf32, #tpu.memory_space<vmem>>, vector<1x16x32xf32>,
    %275 = vector.extract_strided_slice %210 {offsets = [0, 544], sizes = [16, 32], strides = [1, 1]} : vector<16x1088xf32> to vector<16x32xf32>
    %c0_175 = arith.constant 0 : index
    %c0_176 = arith.constant 0 : index
    %c512 = arith.constant 512 : index
    %276 = vector.load %arg13[%c0_175, %c0_176, %c512] : memref<1x16x1024xf32, #tpu.memory_space<vmem>>, vector<1x16x32xf32>
    %277 = vector.shape_cast %276 : vector<1x16x32xf32> to vector<16x32xf32>
    %278 = vector.shape_cast %275 : vector<16x32xf32> to vector<1x16x32xf32>
    tpu.vector_store %arg13[%c0_175, %c0_176, %c512], %278 {strides = array<i32>} : memref<1x16x1024xf32, #tpu.memory_space<vmem>>, vector<1x16x32xf32>,
    %279 = vector.extract_strided_slice %210 {offsets = [0, 578], sizes = [16, 32], strides = [1, 1]} : vector<16x1088xf32> to vector<16x32xf32>
    %c0_177 = arith.constant 0 : index
    %c0_178 = arith.constant 0 : index
    %c544 = arith.constant 544 : index
    %280 = vector.load %arg13[%c0_177, %c0_178, %c544] : memref<1x16x1024xf32, #tpu.memory_space<vmem>>, vector<1x16x32xf32>
    %281 = vector.shape_cast %280 : vector<1x16x32xf32> to vector<16x32xf32>
    %282 = vector.shape_cast %279 : vector<16x32xf32> to vector<1x16x32xf32>
    tpu.vector_store %arg13[%c0_177, %c0_178, %c544], %282 {strides = array<i32>} : memref<1x16x1024xf32, #tpu.memory_space<vmem>>, vector<1x16x32xf32>,
    %283 = vector.extract_strided_slice %210 {offsets = [0, 612], sizes = [16, 32], strides = [1, 1]} : vector<16x1088xf32> to vector<16x32xf32>
    %c0_179 = arith.constant 0 : index
    %c0_180 = arith.constant 0 : index
    %c576 = arith.constant 576 : index
    %284 = vector.load %arg13[%c0_179, %c0_180, %c576] : memref<1x16x1024xf32, #tpu.memory_space<vmem>>, vector<1x16x32xf32>
    %285 = vector.shape_cast %284 : vector<1x16x32xf32> to vector<16x32xf32>
    %286 = vector.shape_cast %283 : vector<16x32xf32> to vector<1x16x32xf32>
    tpu.vector_store %arg13[%c0_179, %c0_180, %c576], %286 {strides = array<i32>} : memref<1x16x1024xf32, #tpu.memory_space<vmem>>, vector<1x16x32xf32>,
    %287 = vector.extract_strided_slice %210 {offsets = [0, 646], sizes = [16, 32], strides = [1, 1]} : vector<16x1088xf32> to vector<16x32xf32>
    %c0_181 = arith.constant 0 : index
    %c0_182 = arith.constant 0 : index
    %c608 = arith.constant 608 : index
    %288 = vector.load %arg13[%c0_181, %c0_182, %c608] : memref<1x16x1024xf32, #tpu.memory_space<vmem>>, vector<1x16x32xf32>
    %289 = vector.shape_cast %288 : vector<1x16x32xf32> to vector<16x32xf32>
    %290 = vector.shape_cast %287 : vector<16x32xf32> to vector<1x16x32xf32>
    tpu.vector_store %arg13[%c0_181, %c0_182, %c608], %290 {strides = array<i32>} : memref<1x16x1024xf32, #tpu.memory_space<vmem>>, vector<1x16x32xf32>,
    %291 = vector.extract_strided_slice %210 {offsets = [0, 680], sizes = [16, 32], strides = [1, 1]} : vector<16x1088xf32> to vector<16x32xf32>
    %c0_183 = arith.constant 0 : index
    %c0_184 = arith.constant 0 : index
    %c640 = arith.constant 640 : index
    %292 = vector.load %arg13[%c0_183, %c0_184, %c640] : memref<1x16x1024xf32, #tpu.memory_space<vmem>>, vector<1x16x32xf32>
    %293 = vector.shape_cast %292 : vector<1x16x32xf32> to vector<16x32xf32>
    %294 = vector.shape_cast %291 : vector<16x32xf32> to vector<1x16x32xf32>
    tpu.vector_store %arg13[%c0_183, %c0_184, %c640], %294 {strides = array<i32>} : memref<1x16x1024xf32, #tpu.memory_space<vmem>>, vector<1x16x32xf32>,
    %295 = vector.extract_strided_slice %210 {offsets = [0, 714], sizes = [16, 32], strides = [1, 1]} : vector<16x1088xf32> to vector<16x32xf32>
    %c0_185 = arith.constant 0 : index
    %c0_186 = arith.constant 0 : index
    %c672 = arith.constant 672 : index
    %296 = vector.load %arg13[%c0_185, %c0_186, %c672] : memref<1x16x1024xf32, #tpu.memory_space<vmem>>, vector<1x16x32xf32>
    %297 = vector.shape_cast %296 : vector<1x16x32xf32> to vector<16x32xf32>
    %298 = vector.shape_cast %295 : vector<16x32xf32> to vector<1x16x32xf32>
    tpu.vector_store %arg13[%c0_185, %c0_186, %c672], %298 {strides = array<i32>} : memref<1x16x1024xf32, #tpu.memory_space<vmem>>, vector<1x16x32xf32>,
    %299 = vector.extract_strided_slice %210 {offsets = [0, 748], sizes = [16, 32], strides = [1, 1]} : vector<16x1088xf32> to vector<16x32xf32>
    %c0_187 = arith.constant 0 : index
    %c0_188 = arith.constant 0 : index
    %c704 = arith.constant 704 : index
    %300 = vector.load %arg13[%c0_187, %c0_188, %c704] : memref<1x16x1024xf32, #tpu.memory_space<vmem>>, vector<1x16x32xf32>
    %301 = vector.shape_cast %300 : vector<1x16x32xf32> to vector<16x32xf32>
    %302 = vector.shape_cast %299 : vector<16x32xf32> to vector<1x16x32xf32>
    tpu.vector_store %arg13[%c0_187, %c0_188, %c704], %302 {strides = array<i32>} : memref<1x16x1024xf32, #tpu.memory_space<vmem>>, vector<1x16x32xf32>,
    %303 = vector.extract_strided_slice %210 {offsets = [0, 782], sizes = [16, 32], strides = [1, 1]} : vector<16x1088xf32> to vector<16x32xf32>
    %c0_189 = arith.constant 0 : index
    %c0_190 = arith.constant 0 : index
    %c736 = arith.constant 736 : index
    %304 = vector.load %arg13[%c0_189, %c0_190, %c736] : memref<1x16x1024xf32, #tpu.memory_space<vmem>>, vector<1x16x32xf32>
    %305 = vector.shape_cast %304 : vector<1x16x32xf32> to vector<16x32xf32>
    %306 = vector.shape_cast %303 : vector<16x32xf32> to vector<1x16x32xf32>
    tpu.vector_store %arg13[%c0_189, %c0_190, %c736], %306 {strides = array<i32>} : memref<1x16x1024xf32, #tpu.memory_space<vmem>>, vector<1x16x32xf32>,
    %307 = vector.extract_strided_slice %210 {offsets = [0, 816], sizes = [16, 32], strides = [1, 1]} : vector<16x1088xf32> to vector<16x32xf32>
    %c0_191 = arith.constant 0 : index
    %c0_192 = arith.constant 0 : index
    %c768 = arith.constant 768 : index
    %308 = vector.load %arg13[%c0_191, %c0_192, %c768] : memref<1x16x1024xf32, #tpu.memory_space<vmem>>, vector<1x16x32xf32>
    %309 = vector.shape_cast %308 : vector<1x16x32xf32> to vector<16x32xf32>
    %310 = vector.shape_cast %307 : vector<16x32xf32> to vector<1x16x32xf32>
    tpu.vector_store %arg13[%c0_191, %c0_192, %c768], %310 {strides = array<i32>} : memref<1x16x1024xf32, #tpu.memory_space<vmem>>, vector<1x16x32xf32>,
    %311 = vector.extract_strided_slice %210 {offsets = [0, 850], sizes = [16, 32], strides = [1, 1]} : vector<16x1088xf32> to vector<16x32xf32>
    %c0_193 = arith.constant 0 : index
    %c0_194 = arith.constant 0 : index
    %c800 = arith.constant 800 : index
    %312 = vector.load %arg13[%c0_193, %c0_194, %c800] : memref<1x16x1024xf32, #tpu.memory_space<vmem>>, vector<1x16x32xf32>
    %313 = vector.shape_cast %312 : vector<1x16x32xf32> to vector<16x32xf32>
    %314 = vector.shape_cast %311 : vector<16x32xf32> to vector<1x16x32xf32>
    tpu.vector_store %arg13[%c0_193, %c0_194, %c800], %314 {strides = array<i32>} : memref<1x16x1024xf32, #tpu.memory_space<vmem>>, vector<1x16x32xf32>,
    %315 = vector.extract_strided_slice %210 {offsets = [0, 884], sizes = [16, 32], strides = [1, 1]} : vector<16x1088xf32> to vector<16x32xf32>
    %c0_195 = arith.constant 0 : index
    %c0_196 = arith.constant 0 : index
    %c832 = arith.constant 832 : index
    %316 = vector.load %arg13[%c0_195, %c0_196, %c832] : memref<1x16x1024xf32, #tpu.memory_space<vmem>>, vector<1x16x32xf32>
    %317 = vector.shape_cast %316 : vector<1x16x32xf32> to vector<16x32xf32>
    %318 = vector.shape_cast %315 : vector<16x32xf32> to vector<1x16x32xf32>
    tpu.vector_store %arg13[%c0_195, %c0_196, %c832], %318 {strides = array<i32>} : memref<1x16x1024xf32, #tpu.memory_space<vmem>>, vector<1x16x32xf32>,
    %319 = vector.extract_strided_slice %210 {offsets = [0, 918], sizes = [16, 32], strides = [1, 1]} : vector<16x1088xf32> to vector<16x32xf32>
    %c0_197 = arith.constant 0 : index
    %c0_198 = arith.constant 0 : index
    %c864 = arith.constant 864 : index
    %320 = vector.load %arg13[%c0_197, %c0_198, %c864] : memref<1x16x1024xf32, #tpu.memory_space<vmem>>, vector<1x16x32xf32>
    %321 = vector.shape_cast %320 : vector<1x16x32xf32> to vector<16x32xf32>
    %322 = vector.shape_cast %319 : vector<16x32xf32> to vector<1x16x32xf32>
    tpu.vector_store %arg13[%c0_197, %c0_198, %c864], %322 {strides = array<i32>} : memref<1x16x1024xf32, #tpu.memory_space<vmem>>, vector<1x16x32xf32>,
    %323 = vector.extract_strided_slice %210 {offsets = [0, 952], sizes = [16, 32], strides = [1, 1]} : vector<16x1088xf32> to vector<16x32xf32>
    %c0_199 = arith.constant 0 : index
    %c0_200 = arith.constant 0 : index
    %c896 = arith.constant 896 : index
    %324 = vector.load %arg13[%c0_199, %c0_200, %c896] : memref<1x16x1024xf32, #tpu.memory_space<vmem>>, vector<1x16x32xf32>
    %325 = vector.shape_cast %324 : vector<1x16x32xf32> to vector<16x32xf32>
    %326 = vector.shape_cast %323 : vector<16x32xf32> to vector<1x16x32xf32>
    tpu.vector_store %arg13[%c0_199, %c0_200, %c896], %326 {strides = array<i32>} : memref<1x16x1024xf32, #tpu.memory_space<vmem>>, vector<1x16x32xf32>,
    %327 = vector.extract_strided_slice %210 {offsets = [0, 986], sizes = [16, 32], strides = [1, 1]} : vector<16x1088xf32> to vector<16x32xf32>
    %c0_201 = arith.constant 0 : index
    %c0_202 = arith.constant 0 : index
    %c928 = arith.constant 928 : index
    %328 = vector.load %arg13[%c0_201, %c0_202, %c928] : memref<1x16x1024xf32, #tpu.memory_space<vmem>>, vector<1x16x32xf32>
    %329 = vector.shape_cast %328 : vector<1x16x32xf32> to vector<16x32xf32>
    %330 = vector.shape_cast %327 : vector<16x32xf32> to vector<1x16x32xf32>
    tpu.vector_store %arg13[%c0_201, %c0_202, %c928], %330 {strides = array<i32>} : memref<1x16x1024xf32, #tpu.memory_space<vmem>>, vector<1x16x32xf32>,
    %331 = vector.extract_strided_slice %210 {offsets = [0, 1020], sizes = [16, 32], strides = [1, 1]} : vector<16x1088xf32> to vector<16x32xf32>
    %c0_203 = arith.constant 0 : index
    %c0_204 = arith.constant 0 : index
    %c960 = arith.constant 960 : index
    %332 = vector.load %arg13[%c0_203, %c0_204, %c960] : memref<1x16x1024xf32, #tpu.memory_space<vmem>>, vector<1x16x32xf32>
    %333 = vector.shape_cast %332 : vector<1x16x32xf32> to vector<16x32xf32>
    %334 = vector.shape_cast %331 : vector<16x32xf32> to vector<1x16x32xf32>
    tpu.vector_store %arg13[%c0_203, %c0_204, %c960], %334 {strides = array<i32>} : memref<1x16x1024xf32, #tpu.memory_space<vmem>>, vector<1x16x32xf32>,
    %335 = vector.extract_strided_slice %210 {offsets = [0, 1054], sizes = [16, 32], strides = [1, 1]} : vector<16x1088xf32> to vector<16x32xf32>
    %c0_205 = arith.constant 0 : index
    %c0_206 = arith.constant 0 : index
    %c992 = arith.constant 992 : index
    %336 = vector.load %arg13[%c0_205, %c0_206, %c992] : memref<1x16x1024xf32, #tpu.memory_space<vmem>>, vector<1x16x32xf32>
    %337 = vector.shape_cast %336 : vector<1x16x32xf32> to vector<16x32xf32>
    %338 = vector.shape_cast %335 : vector<16x32xf32> to vector<1x16x32xf32>
    tpu.vector_store %arg13[%c0_205, %c0_206, %c992], %338 {strides = array<i32>} : memref<1x16x1024xf32, #tpu.memory_space<vmem>>, vector<1x16x32xf32>,
    return
  }
  func.func @transform_0(%arg0: i32) -> (i32, i32, i32) {
    %c0_i32 = arith.constant 0 : i32
    %c0_i32_0 = arith.constant 0 : i32
    %c0_i32_1 = arith.constant 0 : i32
    return %arg0, %c0_i32, %c0_i32_0 : i32, i32, i32
  }
  func.func @transform_1(%arg0: i32) -> (i32, i32, i32) {
    %c0_i32 = arith.constant 0 : i32
    %c0_i32_0 = arith.constant 0 : i32
    %c0_i32_1 = arith.constant 0 : i32
    return %arg0, %c0_i32, %c0_i32_0 : i32, i32, i32
  }
  func.func @transform_2(%arg0: i32) -> (i32, i32) {
    %c0_i32 = arith.constant 0 : i32
    %c0_i32_0 = arith.constant 0 : i32
    %c0_i32_1 = arith.constant 0 : i32
    return %c0_i32, %c0_i32_0 : i32, i32
  }
  func.func @transform_3(%arg0: i32) -> (i32, i32) {
    %c0_i32 = arith.constant 0 : i32
    %c0_i32_0 = arith.constant 0 : i32
    %c0_i32_1 = arith.constant 0 : i32
    return %c0_i32, %c0_i32_0 : i32, i32
  }
  func.func @transform_4(%arg0: i32) -> (i32, i32) {
    %c0_i32 = arith.constant 0 : i32
    %c0_i32_0 = arith.constant 0 : i32
    %c0_i32_1 = arith.constant 0 : i32
    return %c0_i32, %c0_i32_0 : i32, i32
  }
  func.func @transform_5(%arg0: i32) -> (i32, i32) {
    %c0_i32 = arith.constant 0 : i32
    %c0_i32_0 = arith.constant 0 : i32
    %c0_i32_1 = arith.constant 0 : i32
    return %c0_i32, %c0_i32_0 : i32, i32
  }
  func.func @transform_6(%arg0: i32) -> (i32, i32) {
    %c0_i32 = arith.constant 0 : i32
    %c0_i32_0 = arith.constant 0 : i32
    %c0_i32_1 = arith.constant 0 : i32
    return %c0_i32, %c0_i32_0 : i32, i32
  }
  func.func @transform_7(%arg0: i32) -> (i32, i32) {
    %c0_i32 = arith.constant 0 : i32
    %c0_i32_0 = arith.constant 0 : i32
    %c0_i32_1 = arith.constant 0 : i32
    return %c0_i32, %c0_i32_0 : i32, i32
  }
  func.func @transform_8(%arg0: i32) -> (i32, i32) {
    %c0_i32 = arith.constant 0 : i32
    %c0_i32_0 = arith.constant 0 : i32
    %c0_i32_1 = arith.constant 0 : i32
    return %c0_i32, %c0_i32_0 : i32, i32
  }
  func.func @transform_9(%arg0: i32) -> (i32, i32) {
    %c0_i32 = arith.constant 0 : i32
    %c0_i32_0 = arith.constant 0 : i32
    %c0_i32_1 = arith.constant 0 : i32
    return %c0_i32, %c0_i32_0 : i32, i32
  }
  func.func @transform_10(%arg0: i32) -> (i32, i32) {
    %c0_i32 = arith.constant 0 : i32
    %c0_i32_0 = arith.constant 0 : i32
    %c0_i32_1 = arith.constant 0 : i32
    return %c0_i32, %c0_i32_0 : i32, i32
  }
  func.func @transform_11(%arg0: i32) -> (i32, i32) {
    %c0_i32 = arith.constant 0 : i32
    %c0_i32_0 = arith.constant 0 : i32
    %c0_i32_1 = arith.constant 0 : i32
    return %c0_i32, %c0_i32_0 : i32, i32
  }
  func.func @transform_12(%arg0: i32) -> (i32, i32, i32) {
    %c0_i32 = arith.constant 0 : i32
    %c0_i32_0 = arith.constant 0 : i32
    %c0_i32_1 = arith.constant 0 : i32
    return %arg0, %c0_i32, %c0_i32_0 : i32, i32, i32
  }
}

</mosaic_0001>

<bundles_post_ra>
// kernel: decoder_forward.1
= control target key start
LH: loop header
LB: loop body
LE: loop exit
PB: predicated region body
PF: predicated region fallthrough
CT: control target
= control target key end

     0   :  { %s5066_s21 = smov 0   ;;  %s7811_s0 = inlined_call_operand.vmem [shape: bf16[2,4,512], index: 0, kind: input, shape index: {}]   ;;  %s7812_s1 = inlined_call_operand.vmem [shape: bf16[2,8,1190], index: 1, kind: input, shape index: {}]   ;;  %s7813_s2 = inlined_call_operand.vmem [shape: bf16[64,4], index: 2, kind: input, shape index: {}]   ;;  %s7814_s3 = inlined_call_operand.vmem [shape: f32[16,1], index: 3, kind: input, shape index: {}]   ;;  %s7815_s4 = inlined_call_operand.vmem [shape: bf16[16,72], index: 4, kind: input, shape index: {}]   ;;  %s7816_s5 = inlined_call_operand.vmem [shape: f32[16,1], index: 5, kind: input, shape index: {}]   ;;  %s7817_s6 = inlined_call_operand.vmem [shape: bf16[16,288], index: 6, kind: input, shape index: {}]   ;;  %s7818_s7 = inlined_call_operand.vmem [shape: f32[16,1], index: 7, kind: input, shape index: {}]   ;;  %s7819_s8 = inlined_call_operand.vmem [shape: bf16[16,144], index: 8, kind: input, shape index: {}]   ;;  %s7820_s9 = inlined_call_operand.vmem [shape: f32[16,1], index: 9, kind: input, shape index: {}]   ;;  %s7821_s10 = inlined_call_operand.vmem [shape: f32[16,1], index: 10, kind: input, shape index: {}]   ;;  %s7822_s11 = inlined_call_operand.vmem [shape: f32[16,1], index: 11, kind: input, shape index: {}]   ;;  %s7823_s12 = inlined_call_operand.vmem [shape: f32[2,16,1024], index: 12, kind: output, shape index: {}]  }
   0x1 LB: > { %s4549_s22 = sadd.s32 4294967295, %s4927_s21   ;;  %p4553_p0 = scmp.ge.s32.totalorder %s4927_s21, 1  ;;  %s4927_s21 = sphi %s5066_s21, %s22_s21  }
   0x2   : > { %p372_p1 = scmp.lt.s32.totalorder %s4927_s21, 3 }
   0x4   : > { %p373_p2 = pnand %p4553_p0, %p372_p1 }
   0x6   : > { %376 = sbr.rel (%p373_p2) target bundleno = 2286 (0x8ee), region = 68 }
   0xb   : > { %p5074_p3 = scmp.lt.s32.totalorder %s4549_s22, 1  ;;  %v468_v0 = vlaneseq  ;;  %v4929_v1 = vmov 1983009808   ;;  %v4930_v3 = vmov 0   ;;  %s4931_s14 = smov 58   ;;  %vm743_vm0 = vcmask 1041408  }
   0xc   : > { %v715_v2 = vunpack.c.l.s4 %v4929_v1  ;;  %788 = vmatprep.mubr.bf16.mxu0 %v4930_v3  ;;  %435 = vst [vmem:[#allocation2] sm:$0xff] %v4930_v3  ;;  %436 = vst [vmem:[#allocation2 + $0x8] sm:$0xff] %v4930_v3  ;;  %861 = vmatprep.mubr.bf16.mxu1 %v4930_v3  ;;  %s4932_s15 = smov 60   ;;  %v4880_v20 = vld [vmem:[%s7813_s2] sm:$0xff]   ;;  %vm730_vm1 = vcmask 31744   ;;  %s4933_s18 = smov 59  }
   0xd   : > { %437 = vst [vmem:[#allocation2 + $0x10] sm:$0xff] %v4930_v3  ;;  %438 = vst [vmem:[#allocation2 + $0x18] sm:$0xff] %v4930_v3  ;;  %s8226_s22 = smov (!%p5074_p3, %s4549_s22), 1  ;;  %v718_v4 = vshrl.u32 %v468_v0, 7  ;;  %4872 = vset.pattern.permute.xlu1 %v4930_v3  ;;  %4873 = vset.pattern.permute.xlu0 %v4930_v3  ;;  %v4881_v21 = vld [vmem:[%s7813_s2 + $0x8] sm:$0xff]   ;;  %s4934_s23 = smov 93  }
   0xe   : > { %443 = vst [vmem:[#allocation2 + $0x28] sm:$0xff] %v4930_v3  ;;  %444 = vst [vmem:[#allocation2 + $0x30] sm:$0xff] %v4930_v3  ;;  %v716_v5 = vunpack.c.0.s8 %v715_v2  ;;  %s4773_s24 = smul.u32 40, %s8226_s22  ;;  %s4682_s28 = sshll.u32 %s8226_s22, 3  ;;  %v4884_v22 = vld [vmem:[%s7813_s2 + $0x10] sm:$0xff]   ;;  %v4885_v23 = vld [vmem:[%s7813_s2 + $0x18] sm:$0xff]  }
   0xf   : > { %445 = vst [vmem:[#allocation2 + $0x38] sm:$0xff] %v4930_v3  ;;  %446 = vst [vmem:[#allocation2 + $0x40] sm:$0xff] %v4930_v3  ;;  %s423_s13 = scalar_lea.vmem %s7811_s0, %s4682_s28  ;;  %s4936_s28 = smov 126   ;;  %vm7831_vm2 = vcmask 474112   ;;  %vm7833_vm3 = vcmask 1043456   ;;  %vm7827_vm4 = vcmask 490496  }
  0x10   : > { %448 = vst [vmem:[#allocation2 + $0x50] sm:$0xff] %v4930_v3  ;;  %453 = vst [vmem:[#allocation2 + $0x78] sm:$0xff] %v4930_v3  ;;  %s5103_s27 = scalar_lea.vmem %s7812_s1, %s4773_s24  ;;  %v719_v6 = vsub.s32 %v716_v5, %v718_v4  ;;  %v691_v11 = vld [vmem:[%s423_s13] sm:$0xff]  ;;  %s4935_s24 = smov 92   ;;  %vm7828_vm5 = vcmask 482304   ;;  %vm7825_vm6 = vcmask 760832  }
  0x11   : > { %458 = vst [vmem:[#allocation3] sm:$0xff] %v4930_v3  ;;  %463 = vst [vmem:[#allocation3 + $0x28] sm:$0xff] %v4930_v3  ;;  %v5106_v7 = vld [vmem:[%s5103_s27 + $0x8] sm:$0xff]  ;;  %v1342_v8 = vld [vmem:[%s5103_s27] sm:$0xff]  ;;  %v713_v14 = vcombine.high %v691_v11, %v691_v11  ;;  %s4937_s13 = smov 94   ;;  %s4938_s16 = smov 127  }
  0x12   : > { %v5112_v9 = vcombine.low %v5106_v7, %v5106_v7  ;;  %v5114_v10 = vcombine.low %v1342_v8, %v1342_v8  ;;  %v5123_v12 = vcombine.high %v1342_v8, %v1342_v8  ;;  %v720_v13 = vrot.slane %v691_v11, %v719_v6  ;;  %v1344_v24 = vld [vmem:[%s5103_s27 + $0x10] sm:$0xff]  ;;  %v1345_v27 = vld [vmem:[%s5103_s27 + $0x18] sm:$0xff]  ;;  %v1347_v30 = vld [vmem:[%s5103_s27 + $0x20] sm:$0xff]  ;;  %s4941_s19 = smov 71   ;;  %s4942_s20 = smov 35  }
  0x13   : > { %v727_v16 = vrot.slane %v713_v14, %v719_v6  ;;  %v5198_v25 = vcombine.low %v1344_v24, %v1344_v24  ;;  %v5202_v26 = vcombine.high %v5106_v7, %v5106_v7  ;;  %v5225_v28 = vcombine.low %v1345_v27, %v1345_v27  ;;  %v5292_v40 = vld [vmem:[%s5103_s27 + $0x20] ss:$0 sps:$4 sm:$0xff]   ;;  %v903_v8 = vld [vmem:[%s7814_s3 + $0x8] sm:$0xff]  ;;  %s4943_s25 = smov 15   ;;  %s4944_s26 = smov 107  }
  0x14   : > { %1575 = vrot.lane.b32.xlu1 %v5112_v9, %s4931_s14  ;;  %1571 = vrot.lane.b32.xlu0 %v5114_v10, %s4931_s14  ;;  %v728_v15 = vcombine.high %v720_v13, %v720_v13  ;;  %v745_v17 = vsel %vm743_vm0, %v720_v13, 0  ;;  %v5227_v29 = vcombine.high %v1344_v24, %v1344_v24  ;;  %v4598_v31 = vcombine.low %v1347_v30, %v1347_v30  ;;  %v902_v4 = vld [vmem:[%s7814_s3] sm:$0xff]  ;;  %s4945_s29 = smov 87   ;;  %s4946_s30 = smov 51  }
  0x15   : > { %v729_v18 = vcombine.high %v727_v16, %v727_v16  ;;  %v751_v19 = vsel %vm743_vm0, %v727_v16, 0  ;;  %v5274_v32 = vcombine.high %v1345_v27, %v1345_v27  ;;  %vm7826_vm7 = vcmask 752640   ;;  %v1340_v7 = vld [vmem:[%s7816_s5] sm:$0xff]  ;;  %s4947_s27 = smov 31   ;;  %s4948_s17 = smov 123  }
  0x16   : > { %4563 = vmatprep.subr.msk.bf16.mxu0 %vm743_vm0, %v728_v15  ;;  %v4599_v55 = vcombine.high %v1347_v30, %v1347_v30  ;;  %vm7830_vm8 = vcmask 1031168   ;;  %vm7832_vm9 = vcmask 769024   ;;  %vm7829_vm10 = vcmask 1039360  }
  0x17   : > { %4568 = vmatprep.subr.msk.bf16.mxu1 %vm743_vm0, %v729_v18  ;;  %771 = vmatpush1.bf16.msra.mxu0 %v745_v17  ;;  %v1341_v17 = vld [vmem:[%s7816_s5 + $0x8] sm:$0xff]  ;;  %vm1760_vm11 = vcmask 588800   ;;  %vm7824_vm12 = vmmov 0  }
  0x18   : > { %1513 = vrot.lane.b32.xlu1 %v5123_v12, %s4932_s15  ;;  %1573 = vrot.lane.b32.xlu0 %v5123_v12, %s4931_s14 }
  0x19   : > { %844 = vmatpush1.bf16.msra.mxu1 %v751_v19 }
  0x1a   : > { %4564 = vmatmul.mubr.msk.bf16.vlgmr.msra.gmra.mxu0 %vm730_vm1, %v4880_v20 }
  0x1b   : > { %798 = vmatprep.mubr.bf16.mxu0 %v4930_v3 }
  0x1c   : > { %1543 = vrot.lane.b32.xlu1 %v5123_v12, %s4933_s18  ;;  %1515 = vrot.lane.b32.xlu0 %v5112_v9, %s4932_s15 }
  0x1d   : > { %4569 = vmatmul.mubr.msk.bf16.vlgmr.msra.gmra.mxu1 %vm730_vm1, %v4880_v20 }
  0x1e   : > { %871 = vmatprep.mubr.bf16.mxu1 %v4930_v3 }
  0x20   : > { %1511 = vrot.lane.b32.xlu1 %v5114_v10, %s4932_s15  ;;  %1545 = vrot.lane.b32.xlu0 %v5112_v9, %s4933_s18 }
  0x22   : > { %4565 = vmatmul.mubr.msk.bf16.gmra.mxu0 %vm730_vm1, %v4881_v21 }
  0x23   : > { %808 = vmatprep.mubr.bf16.mxu0 %v4930_v3 }
  0x24   : > { %1454 = vrot.lane.b32.xlu1 %v5123_v12, %s4934_s23  ;;  %1541 = vrot.lane.b32.xlu0 %v5114_v10, %s4933_s18 }
  0x25   : > { %4570 = vmatmul.mubr.msk.bf16.gmra.mxu1 %vm730_vm1, %v4881_v21 }
  0x26   : > { %881 = vmatprep.mubr.bf16.mxu1 %v4930_v3 }
  0x28   : > { %1481 = vrot.lane.b32.xlu1 %v5123_v12, %s4935_s24  ;;  %1456 = vrot.lane.b32.xlu0 %v5112_v9, %s4934_s23 }
  0x2a   : > { %4566 = vmatmul.mubr.msk.bf16.gmra.mxu0 %vm730_vm1, %v4884_v22 }
  0x2b   : > { %818 = vmatprep.mubr.bf16.mxu0 %v4930_v3 }
  0x2c   : > { %1452 = vrot.lane.b32.xlu1 %v5114_v10, %s4934_s23  ;;  %1483 = vrot.lane.b32.xlu0 %v5112_v9, %s4935_s24 }
  0x2d   : > { %4571 = vmatmul.mubr.msk.bf16.gmra.mxu1 %vm730_vm1, %v4884_v22 }
  0x2e   : > { %891 = vmatprep.mubr.bf16.mxu1 %v4930_v3 }
  0x30   : > { %1400 = vrot.lane.b32.xlu1 %v5123_v12, %s4936_s28  ;;  %1479 = vrot.lane.b32.xlu0 %v5114_v10, %s4935_s24 }
  0x32   : > { %4567 = vmatmul.mubr.msk.bf16.gmra.mxu0 %vm730_vm1, %v4885_v23 }
  0x33   : > { %1909 = vmatprep.mubr.bf16.mxu0 %v4930_v3 }
  0x34   : > { %1427 = vrot.lane.b32.xlu1 %v5123_v12, %s4937_s13  ;;  %1402 = vrot.lane.b32.xlu0 %v5112_v9, %s4936_s28 }
  0x35   : > { %4572 = vmatmul.mubr.msk.bf16.gmra.mxu1 %vm730_vm1, %v4885_v23  ;;  %vm440_vm1 = vcmask 310276  }
  0x36   : > { %1823 = vmatprep.mubr.bf16.mxu1 %v4930_v3 }
  0x38   : > { %1398 = vrot.lane.b32.xlu1 %v5114_v10, %s4936_s28  ;;  %1429 = vrot.lane.b32.xlu0 %v5112_v9, %s4937_s13 }
  0x3c   : > { %1373 = vrot.lane.b32.xlu1 %v5123_v12, %s4938_s16  ;;  %1425 = vrot.lane.b32.xlu0 %v5114_v10, %s4937_s13 }
  0x40   : > { %1371 = vrot.lane.b32.xlu1 %v5114_v10, %s4938_s16  ;;  %1375 = vrot.lane.b32.xlu0 %v5112_v9, %s4938_s16 }
  0x44   : > { %1579 = vrot.lane.b32.xlu1 %v5198_v25, %s4931_s14  ;;  %1577 = vrot.lane.b32.xlu0 %v5202_v26, %s4931_s14 }
  0x48   : > { %1519 = vrot.lane.b32.xlu1 %v5198_v25, %s4932_s15  ;;  %1517 = vrot.lane.b32.xlu0 %v5202_v26, %s4932_s15 }
  0x4c   : > { %1549 = vrot.lane.b32.xlu1 %v5198_v25, %s4933_s18  ;;  %1547 = vrot.lane.b32.xlu0 %v5202_v26, %s4933_s18 }
  0x50   : > { %1460 = vrot.lane.b32.xlu1 %v5198_v25, %s4934_s23  ;;  %1458 = vrot.lane.b32.xlu0 %v5202_v26, %s4934_s23 }
  0x54   : > { %1487 = vrot.lane.b32.xlu1 %v5198_v25, %s4935_s24  ;;  %1485 = vrot.lane.b32.xlu0 %v5202_v26, %s4935_s24 }
  0x58   : > { %1583 = vrot.lane.b32.xlu1 %v5225_v28, %s4931_s14  ;;  %1581 = vrot.lane.b32.xlu0 %v5227_v29, %s4931_s14 }
  0x5c   : > { %1406 = vrot.lane.b32.xlu1 %v5198_v25, %s4936_s28  ;;  %1404 = vrot.lane.b32.xlu0 %v5202_v26, %s4936_s28 }
  0x60   : > { %1433 = vrot.lane.b32.xlu1 %v5198_v25, %s4937_s13  ;;  %1431 = vrot.lane.b32.xlu0 %v5202_v26, %s4937_s13 }
  0x64   : > { %1523 = vrot.lane.b32.xlu1 %v5225_v28, %s4932_s15  ;;  %1521 = vrot.lane.b32.xlu0 %v5227_v29, %s4932_s15 }
  0x68   : > { %1553 = vrot.lane.b32.xlu1 %v5225_v28, %s4933_s18  ;;  %1551 = vrot.lane.b32.xlu0 %v5227_v29, %s4933_s18 }
  0x6c   : > { %1379 = vrot.lane.b32.xlu1 %v5198_v25, %s4938_s16  ;;  %1377 = vrot.lane.b32.xlu0 %v5202_v26, %s4938_s16 }
  0x70   : > { %1464 = vrot.lane.b32.xlu1 %v5225_v28, %s4934_s23  ;;  %1462 = vrot.lane.b32.xlu0 %v5227_v29, %s4934_s23 }
  0x74   : > { %1491 = vrot.lane.b32.xlu1 %v5225_v28, %s4935_s24  ;;  %1489 = vrot.lane.b32.xlu0 %v5227_v29, %s4935_s24 }
  0x78   : > { %1410 = vrot.lane.b32.xlu1 %v5225_v28, %s4936_s28  ;;  %1408 = vrot.lane.b32.xlu0 %v5227_v29, %s4936_s28 }
  0x7c   : > { %1437 = vrot.lane.b32.xlu1 %v5225_v28, %s4937_s13  ;;  %1435 = vrot.lane.b32.xlu0 %v5227_v29, %s4937_s13 }
  0x80   : > { %1383 = vrot.lane.b32.xlu1 %v5225_v28, %s4938_s16  ;;  %1381 = vrot.lane.b32.xlu0 %v5227_v29, %s4938_s16 }
  0x84   : > { %1587 = vrot.lane.b32.xlu1 %v4598_v31, %s4931_s14  ;;  %1585 = vrot.lane.b32.xlu0 %v5274_v32, %s4931_s14 }
  0x86   : > { %v5279_v33 = vpop.permute.xlu1 %1575  ;;  %v1572_v34 = vpop.permute.xlu0 %1571 }
  0x88   : > { %1527 = vrot.lane.b32.xlu1 %v4598_v31, %s4932_s15  ;;  %1525 = vrot.lane.b32.xlu0 %v5274_v32, %s4932_s15 }
  0x8a   : > { %v1514_v35 = vpop.permute.xlu1 %1513  ;;  %v1574_v36 = vpop.permute.xlu0 %1573 }
  0x8b   : > { %v1592_v37 = vsel %vm7831_vm2, %v1572_v34, %v1574_v36  ;;  %v1593_v38 = vsel %vm7831_vm2, %v1574_v36, %v5279_v33 }
  0x8c   : > { %1557 = vrot.lane.b32.xlu1 %v4598_v31, %s4933_s18  ;;  %1555 = vrot.lane.b32.xlu0 %v5274_v32, %s4933_s18  ;;  %v1765_v39 = vsel %vm7833_vm3, %v1592_v37, 0 }
  0x8d   : > { %4601 = vmatprep.subr.msk.bf16.mxu1 %vm7833_vm3, %v1593_v38 }
  0x8e   : > { %1798 = vmatpush1.bf16.msra.mxu1 %v1765_v39  ;;  %v1544_v41 = vpop.permute.xlu1 %1543  ;;  %v5295_v42 = vpop.permute.xlu0 %1515 }
  0x8f   : > { %v1533_v45 = vsel %vm7827_vm4, %v1514_v35, %v5295_v42 }
  0x90   : > { %1468 = vrot.lane.b32.xlu1 %v5292_v40, %s4934_s23  ;;  %1466 = vrot.lane.b32.xlu0 %v5274_v32, %s4934_s23 }
  0x92   : > { %v1512_v43 = vpop.permute.xlu1 %1511  ;;  %v5301_v44 = vpop.permute.xlu0 %1545 }
  0x93   : > { %v1563_v46 = vsel %vm7828_vm5, %v1544_v41, %v5301_v44  ;;  %v1532_v50 = vsel %vm7827_vm4, %v1512_v43, %v1514_v35  ;;  %v5378_v35 = vld [vmem:[%s7815_s4] sm:$0xff]  }
  0x94   : > { %1495 = vrot.lane.b32.xlu1 %v5292_v40, %s4935_s24  ;;  %1493 = vrot.lane.b32.xlu0 %v5274_v32, %s4935_s24  ;;  %v1715_v47 = vsel %vm7833_vm3, %v1533_v45, %v1563_v46 }
  0x95   : > { %1799 = vmatprep.subr.bf16.mxu1 %v1715_v47 }
  0x96   : > { %v1455_v48 = vpop.permute.xlu1 %1454  ;;  %v1542_v49 = vpop.permute.xlu0 %1541 }
  0x97   : > { %v1562_v51 = vsel %vm7828_vm5, %v1542_v49, %v1544_v41 }
  0x98   : > { %1414 = vrot.lane.b32.xlu1 %v5292_v40, %s4936_s28  ;;  %1412 = vrot.lane.b32.xlu0 %v5274_v32, %s4936_s28  ;;  %v1711_v52 = vsel %vm7833_vm3, %v1532_v50, %v1562_v51 }
  0x99   : > { %1800 = vmatpush1.bf16.msra.mxu1 %v1711_v52 }
  0x9a   : > { %v1482_v53 = vpop.permute.xlu1 %1481  ;;  %v5319_v54 = vpop.permute.xlu0 %1456 }
  0x9b   : > { %v1472_v58 = vsel %vm7825_vm6, %v1455_v48, %v5319_v54 }
  0x9c   : > { %1441 = vrot.lane.b32.xlu1 %v5292_v40, %s4937_s13  ;;  %1439 = vrot.lane.b32.xlu0 %v5274_v32, %s4937_s13 }
  0x9e   : > { %v1453_v56 = vpop.permute.xlu1 %1452  ;;  %v5325_v57 = vpop.permute.xlu0 %1483 }
  0x9f   : > { %v1499_v59 = vsel %vm7826_vm7, %v1482_v53, %v5325_v57  ;;  %v1471_v63 = vsel %vm7825_vm6, %v1453_v56, %v1455_v48 }
  0xa0   : > { %1385 = vrot.lane.b32.xlu1 %v5274_v32, %s4938_s16  ;;  %1589 = vrot.lane.b32.xlu0 %v4599_v55, %s4931_s14  ;;  %v1679_v60 = vsel %vm7833_vm3, %v1472_v58, %v1499_v59 }
  0xa1   : > { %1801 = vmatprep.subr.bf16.mxu1 %v1679_v60 }
  0xa2   : > { %v1401_v61 = vpop.permute.xlu1 %1400  ;;  %v1480_v62 = vpop.permute.xlu0 %1479 }
  0xa3   : > { %v1498_v1 = vsel %vm7826_vm7, %v1480_v62, %v1482_v53 }
  0xa4   : > { %1529 = vrot.lane.b32.xlu1 %v4599_v55, %s4932_s15  ;;  %1387 = vrot.lane.b32.xlu0 %v5292_v40, %s4938_s16  ;;  %v1675_v2 = vsel %vm7833_vm3, %v1471_v63, %v1498_v1 }
  0xa5   : > { %1802 = vmatpush1.bf16.msra.mxu1 %v1675_v2 }
  0xa6   : > { %v1428_v5 = vpop.permute.xlu1 %1427  ;;  %v5344_v6 = vpop.permute.xlu0 %1402 }
  0xa7   : > { %v1418_v14 = vsel %vm7830_vm8, %v1401_v61, %v5344_v6 }
  0xa8   : > { %914 = vperm.xlu1 %4872, %v902_v4   ;;  %1559 = vrot.lane.b32.xlu0 %v4599_v55, %s4933_s18 }
  0xaa   : > { %v1399_v11 = vpop.permute.xlu1 %1398  ;;  %v5353_v13 = vpop.permute.xlu0 %1429 }
  0xab   : > { %v1445_v15 = vsel %vm7832_vm9, %v1428_v5, %v5353_v13  ;;  %v1417_v20 = vsel %vm7830_vm8, %v1399_v11, %v1401_v61 }
  0xac   : > { %1747 = vperm.xlu1 %4872, %v1340_v7   ;;  %919 = vperm.xlu0 %4873, %v903_v8   ;;  %v1643_v16 = vsel %vm7833_vm3, %v1418_v14, %v1445_v15 }
  0xad   : > { %1803 = vmatprep.subr.bf16.mxu1 %v1643_v16 }
  0xae   : > { %v1374_v18 = vpop.permute.xlu1 %1373  ;;  %v1426_v19 = vpop.permute.xlu0 %1425 }
  0xaf   : > { %v1444_v21 = vsel %vm7832_vm9, %v1426_v19, %v1428_v5 }
  0xb0   : > { %1752 = vperm.xlu1 %4872, %v1341_v17   ;;  %v1639_v22 = vsel %vm7833_vm3, %v1417_v20, %v1444_v21 }
  0xb1   : > { %1804 = vmatpush1.bf16.msra.mxu1 %v1639_v22 }
  0xb2   : > { %v1372_v23 = vpop.permute.xlu1 %1371  ;;  %v5366_v24 = vpop.permute.xlu0 %1375 }
  0xb3   : > { %v1390_v27 = vsel %vm7829_vm10, %v1372_v23, %v1374_v18  ;;  %v1391_v30 = vsel %vm7829_vm10, %v1374_v18, %v5366_v24 }
  0xb4   : > { %v1607_v31 = vsel %vm7833_vm3, %v5123_v12, %v1391_v30  ;;  %v1603_v34 = vsel %vm7833_vm3, %v5114_v10, %v1390_v27 }
  0xb5   : > { %1805 = vmatprep.subr.bf16.mxu1 %v1607_v31 }
  0xb6   : > { %v1580_v36 = vpop.permute.xlu1 %1579  ;;  %v1578_v37 = vpop.permute.xlu0 %1577  ;;  %1806 = vmatpush1.bf16.msra.mxu1 %v1603_v34 }
  0xb7   : > { %v1594_v38 = vsel %vm7831_vm2, %v5279_v33, %v1578_v37  ;;  %v1595_v39 = vsel %vm7831_vm2, %v1578_v37, %v1580_v36 }
  0xb8   : > { %4603 = vmatprep.subr.msk.bf16.mxu1 %vm7833_vm3, %v1595_v39  ;;  %v1771_v12 = vsel %vm7833_vm3, %v1594_v38, 0 }
  0xb9   : > { %4602 = vmatmul.mubr.msk.bf16.vlgmr.msra.gmra.mxu1 %vm1760_vm11, %v5378_v35 }
  0xba   : > { %v1520_v10 = vpop.permute.xlu1 %1519  ;;  %v1518_v41 = vpop.permute.xlu0 %1517  ;;  %1841 = vmatpush1.bf16.msra.mxu1 %v1771_v12  ;;  %1866 = vmatprep.mubr.bf16.mxu1 %v4930_v3 }
  0xbb   : > { %v1534_v46 = vsel %vm7827_vm4, %v5295_v42, %v1518_v41  ;;  %v1535_v33 = vsel %vm7827_vm4, %v1518_v41, %v1520_v10 }
  0xbe   : > { %v1550_v43 = vpop.permute.xlu1 %1549  ;;  %v1548_v45 = vpop.permute.xlu0 %1547 }
  0xbf   : > { %v1564_v47 = vsel %vm7828_vm5, %v5301_v44, %v1548_v45  ;;  %v1565_v48 = vsel %vm7828_vm5, %v1548_v45, %v1550_v43 }
  0xc0   : > { %v1723_v49 = vsel %vm7833_vm3, %v1535_v33, %v1565_v48  ;;  %v1719_v50 = vsel %vm7833_vm3, %v1534_v46, %v1564_v47 }
  0xc1   : > { %1842 = vmatprep.subr.bf16.mxu1 %v1723_v49 }
  0xc2   : > { %v1461_v51 = vpop.permute.xlu1 %1460  ;;  %v1459_v52 = vpop.permute.xlu0 %1458  ;;  %1843 = vmatpush1.bf16.msra.mxu1 %v1719_v50 }
  0xc3   : > { %v1473_v42 = vsel %vm7825_vm6, %v5319_v54, %v1459_v52  ;;  %v1474_v56 = vsel %vm7825_vm6, %v1459_v52, %v1461_v51 }
  0xc6   : > { %v1488_v53 = vpop.permute.xlu1 %1487  ;;  %v1486_v55 = vpop.permute.xlu0 %1485 }
  0xc7   : > { %v1500_v44 = vsel %vm7826_vm7, %v5325_v57, %v1486_v55  ;;  %v1501_v58 = vsel %vm7826_vm7, %v1486_v55, %v1488_v53 }
  0xc8   : > { %v1687_v59 = vsel %vm7833_vm3, %v1474_v56, %v1501_v58  ;;  %v1683_v60 = vsel %vm7833_vm3, %v1473_v42, %v1500_v44 }
  0xc9   : > { %1844 = vmatprep.subr.bf16.mxu1 %v1687_v59 }
  0xca   : > { %v5404_v61 = vpop.permute.xlu1 %1583  ;;  %v1582_v62 = vpop.permute.xlu0 %1581  ;;  %1845 = vmatpush1.bf16.msra.mxu1 %v1683_v60 }
  0xcb   : > { %v1596_v63 = vsel %vm7831_vm2, %v1580_v36, %v1582_v62  ;;  %v1597_v54 = vsel %vm7831_vm2, %v1582_v62, %v5404_v61 }
  0xcc   : > { %4605 = vmatprep.subr.msk.bf16.mxu0 %vm7833_vm3, %v1597_v54  ;;  %v1777_v57 = vsel %vm7833_vm3, %v1596_v63, 0 }
  0xcd   : > { %1884 = vmatpush1.bf16.msra.mxu0 %v1777_v57 }
  0xce   : > { %v1407_v1 = vpop.permute.xlu1 %1406  ;;  %v1405_v2 = vpop.permute.xlu0 %1404 }
  0xcf   : > { %v1419_v7 = vsel %vm7830_vm8, %v5344_v6, %v1405_v2  ;;  %v1420_v8 = vsel %vm7830_vm8, %v1405_v2, %v1407_v1  ;;  %v7834_v2 = vmov 0.0  }
  0xd2   : > { %v1434_v4 = vpop.permute.xlu1 %1433  ;;  %v1432_v5 = vpop.permute.xlu0 %1431 }
  0xd3   : > { %v1446_v11 = vsel %vm7832_vm9, %v5353_v13, %v1432_v5  ;;  %v1447_v14 = vsel %vm7832_vm9, %v1432_v5, %v1434_v4 }
  0xd4   : > { %v1651_v15 = vsel %vm7833_vm3, %v1420_v8, %v1447_v14  ;;  %v1647_v16 = vsel %vm7833_vm3, %v1419_v7, %v1446_v11 }
  0xd5   : > { %1846 = vmatprep.subr.bf16.mxu1 %v1651_v15 }
  0xd6   : > { %v5419_v17 = vpop.permute.xlu1 %1523  ;;  %v1522_v18 = vpop.permute.xlu0 %1521  ;;  %1847 = vmatpush1.bf16.msra.mxu1 %v1647_v16 }
  0xd7   : > { %v1536_v6 = vsel %vm7827_vm4, %v1520_v10, %v1522_v18  ;;  %v1537_v21 = vsel %vm7827_vm4, %v1522_v18, %v5419_v17 }
  0xda   : > { %v5421_v19 = vpop.permute.xlu1 %1553  ;;  %v1552_v20 = vpop.permute.xlu0 %1551 }
  0xdb   : > { %v1566_v13 = vsel %vm7828_vm5, %v1550_v43, %v1552_v20  ;;  %v1567_v22 = vsel %vm7828_vm5, %v1552_v20, %v5421_v19 }
  0xdc   : > { %v1731_v23 = vsel %vm7833_vm3, %v1537_v21, %v1567_v22  ;;  %v1727_v27 = vsel %vm7833_vm3, %v1536_v6, %v1566_v13 }
  0xdd   : > { %1885 = vmatprep.subr.bf16.mxu0 %v1731_v23 }
  0xde   : > { %v1380_v30 = vpop.permute.xlu1 %1379  ;;  %v1378_v31 = vpop.permute.xlu0 %1377  ;;  %1886 = vmatpush1.bf16.msra.mxu0 %v1727_v27 }
  0xdf   : > { %v1392_v34 = vsel %vm7829_vm10, %v5366_v24, %v1378_v31  ;;  %v1393_v36 = vsel %vm7829_vm10, %v1378_v31, %v1380_v30 }
  0xe0   : > { %v1615_v37 = vsel %vm7833_vm3, %v5202_v26, %v1393_v36  ;;  %v1611_v38 = vsel %vm7833_vm3, %v5112_v9, %v1392_v34  ;;  %v790_v34 = vpop.f32.mrf.mxu0 }
  0xe1   : > { %1848 = vmatprep.subr.bf16.mxu1 %v1615_v37 }
  0xe2   : > { %v5438_v39 = vpop.permute.xlu1 %1464  ;;  %v1463_v12 = vpop.permute.xlu0 %1462  ;;  %1849 = vmatpush1.bf16.msra.mxu1 %v1611_v38 }
  0xe3   : > { %v1475_v24 = vsel %vm7825_vm6, %v1461_v51, %v1463_v12  ;;  %v1476_v26 = vsel %vm7825_vm6, %v1463_v12, %v5438_v39 }
  0xe5   : > { %4604 = vmatmul.mubr.msk.bf16.vlgmr.msra.gmra.mxu1 %vm1760_vm11, %v5378_v35 }
  0xe6   : > { %v1492_v10 = vpop.permute.xlu1 %1491  ;;  %v1490_v41 = vpop.permute.xlu0 %1489  ;;  %1952 = vmatprep.mubr.bf16.mxu1 %v4930_v3 }
  0xe7   : > { %v1502_v43 = vsel %vm7826_vm7, %v1488_v53, %v1490_v41  ;;  %v1503_v9 = vsel %vm7826_vm7, %v1490_v41, %v1492_v10 }
  0xe8   : > { %v1695_v45 = vsel %vm7833_vm3, %v1476_v26, %v1503_v9  ;;  %v1691_v46 = vsel %vm7833_vm3, %v1475_v24, %v1502_v43  ;;  %v5500_v26 = vpop.f32.mrf.mxu0 }
  0xe9   : > { %1887 = vmatprep.subr.bf16.mxu0 %v1695_v45 }
  0xea   : > { %v5450_v33 = vpop.permute.xlu1 %1410  ;;  %v1409_v47 = vpop.permute.xlu0 %1408  ;;  %1888 = vmatpush1.bf16.msra.mxu0 %v1691_v46 }
  0xeb   : > { %v1421_v50 = vsel %vm7830_vm8, %v1407_v1, %v1409_v47  ;;  %v1422_v51 = vsel %vm7830_vm8, %v1409_v47, %v5450_v33 }
  0xee   : > { %v1438_v48 = vpop.permute.xlu1 %1437  ;;  %v1436_v49 = vpop.permute.xlu0 %1435 }
  0xef   : > { %v1448_v52 = vsel %vm7832_vm9, %v1434_v4, %v1436_v49  ;;  %v1449_v53 = vsel %vm7832_vm9, %v1436_v49, %v1438_v48 }
  0xf0   : > { %v1659_v55 = vsel %vm7833_vm3, %v1422_v51, %v1449_v53  ;;  %v1655_v42 = vsel %vm7833_vm3, %v1421_v50, %v1448_v52  ;;  %v5513_v53 = vand.u32 127, %v468_v0 }
  0xf1   : > { %1889 = vmatprep.subr.bf16.mxu0 %v1659_v55 }
  0xf2   : > { %v5459_v56 = vpop.permute.xlu1 %1383  ;;  %v1382_v44 = vpop.permute.xlu0 %1381  ;;  %1890 = vmatpush1.bf16.msra.mxu0 %v1655_v42 }
  0xf3   : > { %v1394_v58 = vsel %vm7829_vm10, %v1380_v30, %v1382_v44  ;;  %v1395_v59 = vsel %vm7829_vm10, %v1382_v44, %v5459_v56 }
  0xf4   : > { %v1623_v60 = vsel %vm7833_vm3, %v5227_v29, %v1395_v59  ;;  %v1619_v62 = vsel %vm7833_vm3, %v5198_v25, %v1394_v58  ;;  %v635_v58 = vand.u32 1, %v5513_v53 }
  0xf5   : > { %1891 = vmatprep.subr.bf16.mxu0 %v1623_v60 }
  0xf6   : > { %v1588_v63 = vpop.permute.xlu1 %1587  ;;  %v1586_v54 = vpop.permute.xlu0 %1585  ;;  %1892 = vmatpush1.bf16.msra.mxu0 %v1619_v62  ;;  %vm5522_vm13 = vcmp.eq.s32.totalorder %v635_v58, 0 }
  0xf7   : > { %v1598_v57 = vsel %vm7831_vm2, %v5404_v61, %v1586_v54  ;;  %v1599_v1 = vsel %vm7831_vm2, %v1586_v54, %v1588_v63  ;;  %4751 = vmatprep.subr.bf16.mxu0 %v7834_v2 }
  0xf8   : > { %4607 = vmatprep.subr.msk.bf16.mxu1 %vm7833_vm3, %v1599_v1  ;;  %v1783_v4 = vsel %vm7833_vm3, %v1598_v57, 0  ;;  %v5535_v1 = vadd.s32 128, %v5513_v53 }
  0xf9   : > { %4606 = vmatmul.mubr.msk.bf16.vlgmr.msra.gmra.mxu0 %vm1760_vm11, %v5378_v35  ;;  %1927 = vmatpush1.bf16.msra.mxu1 %v1783_v4 }
  0xfa   : > { %v1528_v25 = vpop.permute.xlu1 %1527  ;;  %v1526_v29 = vpop.permute.xlu0 %1525  ;;  %4761 = vmatprep.mubr.msk.bf16.mxu0 %vm7824_vm12, %v7834_v2  ;;  %vm960_vm12 = vcmask 56324  }
  0xfb   : > { %v1538_v7 = vsel %vm7827_vm4, %v5419_v17, %v1526_v29  ;;  %v1539_v8 = vsel %vm7827_vm4, %v1526_v29, %v1528_v25 }
  0xfe   : > { %v1558_v61 = vpop.permute.xlu1 %1557  ;;  %v1556_v5 = vpop.permute.xlu0 %1555 }
  0xff   : > { %v1568_v11 = vsel %vm7828_vm5, %v5421_v19, %v1556_v5  ;;  %v1569_v14 = vsel %vm7828_vm5, %v1556_v5, %v1558_v61 }
 0x100   : > { %v1739_v15 = vsel %vm7833_vm3, %v1539_v8, %v1569_v14  ;;  %v1735_v16 = vsel %vm7833_vm3, %v1538_v7, %v1568_v11  ;;  %v642_v8 = vand.u32 1, %v5535_v1  ;;  %v863_v14 = vpop.f32.mrf.mxu1 }
 0x101   : > { %1928 = vmatprep.subr.bf16.mxu1 %v1739_v15 }
 0x102   : > { %v1469_v18 = vpop.permute.xlu1 %1468  ;;  %v1467_v20 = vpop.permute.xlu0 %1466  ;;  %1929 = vmatpush1.bf16.msra.mxu1 %v1735_v16  ;;  %vm5550_vm14 = vcmp.eq.s32.totalorder %v642_v8, 0 }
 0x103   : > { %v1477_v17 = vsel %vm7825_vm6, %v5438_v39, %v1467_v20  ;;  %v1478_v13 = vsel %vm7825_vm6, %v1467_v20, %v1469_v18 }
 0x106   : > { %v1496_v6 = vpop.permute.xlu1 %1495  ;;  %v1494_v21 = vpop.permute.xlu0 %1493 }
 0x107   : > { %v1504_v22 = vsel %vm7826_vm7, %v1492_v10, %v1494_v21  ;;  %v1505_v19 = vsel %vm7826_vm7, %v1494_v21, %v1496_v6  ;;  %vm954_vm7 = vcmask 580608  }
 0x108   : > { %v1703_v23 = vsel %vm7833_vm3, %v1478_v13, %v1505_v19  ;;  %v1699_v27 = vsel %vm7833_vm3, %v1477_v17, %v1504_v22 }
 0x109   : > { %1930 = vmatprep.subr.bf16.mxu1 %v1703_v23 }
 0x10a   : > { %v1415_v30 = vpop.permute.xlu1 %1414  ;;  %v1413_v31 = vpop.permute.xlu0 %1412  ;;  %1931 = vmatpush1.bf16.msra.mxu1 %v1699_v27 }
 0x10b   : > { %v1423_v38 = vsel %vm7830_vm8, %v5450_v33, %v1413_v31  ;;  %v1424_v39 = vsel %vm7830_vm8, %v1413_v31, %v1415_v30  ;;  %v794_v33 = vpop.f32.mrf.mxu0 }
 0x10d   : > { %v796_v55 = vpop.f32.mrf.mxu0 }
 0x10e   : > { %v1442_v36 = vpop.permute.xlu1 %1441  ;;  %v1440_v37 = vpop.permute.xlu0 %1439 }
 0x10f   : > { %v1450_v12 = vsel %vm7832_vm9, %v1438_v48, %v1440_v37  ;;  %v1451_v10 = vsel %vm7832_vm9, %v1440_v37, %v1442_v36  ;;  %v1671_v54 = vsel %vm7833_vm3, %v1415_v30, %v1442_v36 }
 0x110   : > { %v1667_v41 = vsel %vm7833_vm3, %v1424_v39, %v1451_v10  ;;  %v1663_v24 = vsel %vm7833_vm3, %v1423_v38, %v1450_v12 }
 0x111   : > { %1932 = vmatprep.subr.bf16.mxu1 %v1667_v41 }
 0x112   : > { %v1386_v43 = vpop.permute.xlu1 %1385  ;;  %v1590_v9 = vpop.permute.xlu0 %1589  ;;  %1933 = vmatpush1.bf16.msra.mxu1 %v1663_v24 }
 0x113   : > { %v1600_v45 = vsel %vm7831_vm2, %v1588_v63, %v1590_v9  ;;  %v1396_v47 = vsel %vm7829_vm10, %v5459_v56, %v1386_v43  ;;  %vm1025_vm2 = vcmask 740824  }
 0x114   : > { %v1789_v46 = vsel %vm7833_vm3, %v1600_v45, 0  ;;  %v1627_v52 = vsel %vm7833_vm3, %v5225_v28, %v1396_v47  ;;  %v1707_v28 = vsel %vm7833_vm3, %v1469_v18, %v1496_v6 }
 0x115   : > { %4752 = vmatpush3.bf16.msra.mxu0 %v1789_v46 }
 0x116   : > { %v1388_v48 = vpop.permute.xlu0 %1387  ;;  %4753 = vmatprep.subr.bf16.mxu0 %v7834_v2  ;;  %v1530_v50 = vpop.permute.xlu1 %1529 }
 0x117   : > { %v1397_v49 = vsel %vm7829_vm10, %v1386_v43, %v1388_v48  ;;  %v1540_v56 = vsel %vm7827_vm4, %v1528_v25, %v1530_v50  ;;  %v1635_v5 = vsel %vm7833_vm3, %v5292_v40, %v1388_v48  ;;  %v5554_v40 = vpop.f32.mrf.mxu1  ;;  %vm1034_vm10 = vcmask 252928  }
 0x118   : > { %v1631_v51 = vsel %vm7833_vm3, %v5274_v32, %v1397_v49  ;;  %v800_v32 = vpop.f32.mrf.mxu0 }
 0x119   : > { %1934 = vmatprep.subr.bf16.mxu1 %v1631_v51  ;;  %v904_v62 = vsel %vm5522_vm13, %v790_v34, %v800_v32  ;;  %v867_v18 = vpop.f32.mrf.mxu1 }
 0x11a   : > { %v1560_v42 = vpop.permute.xlu0 %1559  ;;  %1935 = vmatpush1.bf16.msra.mxu1 %v1627_v52  ;;  %v802_v60 = vpop.f32.mrf.mxu0 }
 0x11b   : > { %v1570_v44 = vsel %vm7828_vm5, %v1558_v61, %v1560_v42  ;;  %v905_v16 = vsel %vm5550_vm14, %v5500_v26, %v802_v60  ;;  %v5566_v17 = vpop.f32.mrf.mxu1 }
 0x11c   : > { %v1743_v59 = vsel %vm7833_vm3, %v1540_v56, %v1570_v44  ;;  %v804_v4 = vpop.f32.mrf.mxu0 }
 0x11d   : > { %4608 = vmatmul.mubr.msk.bf16.vlgmr.msra.gmra.mxu1 %vm1760_vm11, %v5378_v35  ;;  %4754 = vmatpush3.bf16.msra.mxu0 %v1743_v59  ;;  %v908_v29 = vsel %vm5522_vm13, %v794_v33, %v804_v4  ;;  %v873_v23 = vpop.f32.mrf.mxu1 }
 0x11e   : > { %4755 = vmatprep.subr.bf16.mxu0 %v7834_v2  ;;  %v806_v20 = vpop.f32.mrf.mxu0 }
 0x11f   : > { %v909_v6 = vsel %vm5550_vm14, %v796_v55, %v806_v20  ;;  %v5576_v36 = vpop.f32.mrf.mxu1 }
 0x120   : > { %v810_v13 = vpop.f32.mrf.mxu0 }
 0x121   : > { %4756 = vmatpush3.bf16.msra.mxu0 %v1707_v28  ;;  %v877_v39 = vpop.f32.mrf.mxu1 }
 0x122   : > { %4757 = vmatprep.subr.bf16.mxu0 %v7834_v2  ;;  %v812_v27 = vpop.f32.mrf.mxu0 }
 0x123   : > { %v5530_v63 = vpop.permute.xlu1 %914  ;;  %v5592_v33 = vpop.f32.mrf.mxu1 }
 0x124   : > { %v922_v57 = vadd.f32 %v5530_v63, %v904_v62  ;;  %v814_v37 = vpop.f32.mrf.mxu0 }
 0x125   : > { %4758 = vmatpush3.bf16.msra.mxu0 %v1671_v54  ;;  %v883_v50 = vpop.f32.mrf.mxu1 }
 0x126   : > { %4759 = vmatprep.subr.bf16.mxu0 %v7834_v2  ;;  %v4684_v25 = vpack.c.bf16 %v922_v57, %v922_v57  ;;  %v816_v12 = vpop.f32.mrf.mxu0 }
 0x127   : > { %v5540_v61 = vpop.permute.xlu0 %919  ;;  %v5600_v52 = vpop.f32.mrf.mxu1 }
 0x128   : > { %948 = vrot.lane.b32.xlu0 %v4684_v25, %s4941_s19  ;;  %v926_v7 = vadd.f32 %v5540_v61, %v908_v29  ;;  %v927_v22 = vadd.f32 %v5540_v61, %v909_v6  ;;  %v820_v24 = vpop.f32.mrf.mxu0  ;;  %v5612_v29 = vadd.s32 384, %v5513_v53 }
 0x129   : > { %4760 = vmatpush3.bf16.msra.mxu0 %v1635_v5  ;;  %v1126_v43 = vsel %vm5522_vm13, %v810_v13, %v820_v24  ;;  %v887_v42 = vpop.f32.mrf.mxu1 }
 0x12a   : > { %v4685_v11 = vpack.c.bf16 %v926_v7, %v926_v7  ;;  %v4687_v30 = vpack.c.bf16 %v927_v22, %v927_v22  ;;  %v822_v9 = vpop.f32.mrf.mxu0  ;;  %v1134_v46 = vadd.f32 %v1126_v43, %v5530_v63 }
 0x12b   : > { %v1127_v56 = vsel %vm5550_vm14, %v812_v27, %v822_v9  ;;  %v889_v59 = vpop.f32.mrf.mxu1  ;;  %v5649_v13 = vmul.u32.u64.low 4042322161, %v5535_v1  ;;  %v5650_v22 = vmul.u32.u64.high 4042322161, %v5535_v1, %v5649_v13 }
 0x12c   : > { %4762 = vmatmul.mubr.msk.bf16.vlgmr.msra.gmra.mxu0 %vm1760_vm11, %v5378_v35  ;;  %939 = vrot.lane.b32.xlu0 %v4684_v25, %s4942_s20  ;;  %v923_v35 = vadd.f32 %v5530_v63, %v905_v16  ;;  %v824_v47 = vpop.f32.mrf.mxu0  ;;  %v4692_v49 = vpack.c.bf16 %v1134_v46, %v1134_v46  ;;  %v1135_v58 = vadd.f32 %v1127_v56, %v5530_v63  ;;  %vm441_vm11 = vmor %vm440_vm1, %vm7833_vm3 }
 0x12d   : > { %950 = vrot.lane.b32.xlu1 %v4685_v11, %s4941_s19  ;;  %2958 = vmatprep.mubr.bf16.mxu0 %v4930_v3  ;;  %v5562_v3 = vadd.s32 256, %v5513_v53  ;;  %s4949_s19 = smov 67   ;;  %v1130_v48 = vsel %vm5522_vm13, %v814_v37, %v824_v47  ;;  %v893_v28 = vpop.f32.mrf.mxu1 }
 0x12e   : > { %v4686_v21 = vpack.c.bf16 %v923_v35, %v923_v35  ;;  %v1138_v51 = vadd.f32 %v1130_v48, %v5540_v61  ;;  %v826_v44 = vpop.f32.mrf.mxu0  ;;  %v4694_v0 = vpack.c.bf16 %v1135_v58, %v1135_v58 }
 0x12f   : > { %v649_v19 = vand.u32 1, %v5562_v3  ;;  %v1131_v32 = vsel %vm5550_vm14, %v816_v12, %v826_v44  ;;  %v895_v54 = vpop.f32.mrf.mxu1 }
 0x130   : > { %973 = vrot.lane.b32.xlu0 %v4684_v25, %s4943_s25  ;;  %v4693_v55 = vpack.c.bf16 %v1138_v51, %v1138_v51  ;;  %v1139_v60 = vadd.f32 %v1131_v32, %v5540_v61 }
 0x131   : > { %941 = vrot.lane.b32.xlu1 %v4685_v11, %s4942_s20  ;;  %vm5570_vm15 = vcmp.eq.s32.totalorder %v649_v19, 0 }
 0x132   : > { %v906_v34 = vsel %vm5570_vm15, %v863_v14, %v873_v23  ;;  %v910_v10 = vsel %vm5570_vm15, %v867_v18, %v877_v39  ;;  %v1128_v62 = vsel %vm5570_vm15, %v883_v50, %v893_v28  ;;  %v4695_v57 = vpack.c.bf16 %v1139_v60, %v1139_v60 }
 0x133   : > { %v924_v38 = vadd.f32 %v5530_v63, %v906_v34  ;;  %v928_v26 = vadd.f32 %v5540_v61, %v910_v10  ;;  %v1136_v4 = vadd.f32 %v1128_v62, %v5530_v63  ;;  %v495_v34 = vshrl.u32 %v5650_v22, 5  ;;  %v5675_v10 = vpop.permute.xlu1 %1747 }
 0x134   : > { %964 = vrot.lane.b32.xlu0 %v4684_v25, %s4944_s26  ;;  %v897_v25 = vpop.f32.mrf.mxu1  ;;  %v7900_v28 = vmov 0 }
 0x135   : > { %975 = vrot.lane.b32.xlu1 %v4685_v11, %s4943_s25  ;;  %v5581_v41 = vpack.c.bf16 %v924_v38, %v924_v38  ;;  %v5587_v45 = vpack.c.bf16 %v928_v26, %v928_v26  ;;  %s4950_s25 = smov 103   ;;  %v1132_v5 = vsel %vm5570_vm15, %v887_v42, %v897_v25  ;;  %v5616_v7 = vpack.c.bf16 %v1136_v4, %v1136_v4  ;;  %v4918_v38 = vld [vmem:[#allocation2] sm:$0xff] }
 0x136   : > { %v1140_v8 = vadd.f32 %v1132_v5, %v5540_v61  ;;  %v899_v20 = vpop.f32.mrf.mxu1  ;;  %447 = vst.msk [vmem:[#allocation2 + $0x48] sm:$0xff] %vm441_vm11, %v4918_v38  ;;  %442 = vst.msk [vmem:[#allocation2 + $0x20] sm:$0xff] %vm441_vm11, %v4918_v38  ;;  %v5730_v4 = vmul.u32.u64.low 4042322161, %v5612_v29  ;;  %v5731_v25 = vmul.u32.u64.high 4042322161, %v5612_v29, %v5730_v4 }
 0x137   : > { %452 = vst.msk [vmem:[#allocation2 + $0x70] sm:$0xff] %vm441_vm11, %v4918_v38  ;;  %457 = vst.msk [vmem:[#allocation2 + $0x98] sm:$0xff] %vm441_vm11, %v4918_v38  ;;  %v5690_v46 = vpop.permute.xlu1 %1752 }
 0x138   : > { %1003 = vrot.lane.b32.xlu0 %v4686_v21, %s4945_s29  ;;  %v5621_v14 = vpack.c.bf16 %v1140_v8, %v1140_v8  ;;  %462 = vst.msk [vmem:[#allocation3 + $0x20] sm:$0xff] %vm441_vm11, %v4918_v38  ;;  %467 = vst.msk [vmem:[#allocation3 + $0x48] sm:$0xff] %vm441_vm11, %v4918_v38  ;;  %vm959_vm11 = vcmask 1044280  }
 0x139   : > { %966 = vrot.lane.b32.xlu1 %v4685_v11, %s4944_s26  ;;  %s4951_s26 = smov 11   ;;  %v656_v11 = vand.u32 1, %v5612_v29 }
 0x13b   : > { %vm5623_vm0 = vcmp.eq.s32.totalorder %v656_v11, 0 }
 0x13c   : > { %994 = vrot.lane.b32.xlu0 %v4686_v21, %s4946_s30  ;;  %v907_v16 = vsel %vm5623_vm0, %v5554_v40, %v5576_v36  ;;  %v911_v18 = vsel %vm5623_vm0, %v5566_v17, %v5592_v33  ;;  %v1133_v40 = vsel %vm5623_vm0, %v889_v59, %v899_v20  ;;  %v1129_v23 = vsel %vm5623_vm0, %v5600_v52, %v895_v54 }
 0x13d   : > { %1005 = vrot.lane.b32.xlu1 %v4687_v30, %s4945_s29  ;;  %s4952_s29 = smov 105   ;;  %v925_v35 = vadd.f32 %v5530_v63, %v907_v16  ;;  %v1141_v17 = vadd.f32 %v1133_v40, %v5540_v61  ;;  %v7903_v54 = vmov 0 }
 0x13f   : > { %v5640_v6 = vpack.c.bf16 %v925_v35, %v925_v35  ;;  %v5660_v31 = vpack.c.bf16 %v1141_v17, %v1141_v17 }
 0x140   : > { %1028 = vrot.lane.b32.xlu0 %v4686_v21, %s4947_s27 }
 0x141   : > { %996 = vrot.lane.b32.xlu1 %v4687_v30, %s4946_s30  ;;  %s4953_s30 = smov 49  }
 0x144   : > { %1019 = vrot.lane.b32.xlu0 %v4686_v21, %s4948_s17  ;;  %v929_v21 = vadd.f32 %v5540_v61, %v911_v18  ;;  %v1137_v61 = vadd.f32 %v1129_v23, %v5530_v63  ;;  %v496_v63 = vmul.u32 34, %v495_v34 }
 0x145   : > { %1030 = vrot.lane.b32.xlu1 %v4687_v30, %s4947_s27  ;;  %s4954_s27 = smov 69  }
 0x146   : > { %v4691_v19 = vpack.c.bf16 %v929_v21, %v929_v21  ;;  %v5666_v36 = vpack.c.bf16 %v1137_v61, %v1137_v61  ;;  %v497_v12 = vsub.s32 %v5535_v1, %v496_v63  ;;  %v5681_v1 = vadd.s32 512, %v5513_v53 }
 0x148   : > { %1049 = vrot.lane.b32.xlu0 %v5581_v41, %s4949_s19  ;;  %vm578_vm13 = vcmp.ne.s32.totalorder %v497_v12, 0  ;;  %vm587_vm14 = vcmp.lt.s32.totalorder %v497_v12, 0  ;;  %v605_v26 = vadd.s32 34, %v497_v12 }
 0x149   : > { %1021 = vrot.lane.b32.xlu1 %v4687_v30, %s4948_s17  ;;  %s4955_s17 = smov 13   ;;  %v5657_v27 = vmul.u32.u64.low 4042322161, %v5513_v53  ;;  %v5658_v30 = vmul.u32.u64.high 4042322161, %v5513_v53, %v5657_v27  ;;  %vm5683_vm1 = vmand %vm587_vm14, %vm578_vm13  ;;  %vm945_vm13 = vcmask 544024  }
 0x14a   : > { %v614_v50 = vsel %vm5683_vm1, %v605_v26, %v497_v12  ;;  %vm5699_vm14 = vmor %vm960_vm12, %vm959_vm11  ;;  %vm979_vm1 = vcmask 121856   ;;  %vm970_vm11 = vcmask 609624   ;;  %v517_v27 = vshrl.u32 %v5731_v25, 5 }
 0x14b   : > { %v484_v37 = vshrl.u32 %v5658_v30, 5  ;;  %vm5716_vm12 = vcmp.lt.s32.totalorder %v614_v50, 32 }
 0x14c   : > { %1058 = vrot.lane.b32.xlu0 %v5581_v41, %s4950_s25  ;;  %v7901_v28 = vsel %vm5716_vm12, 4294967295, %v7900_v28 }
 0x14d   : > { %1051 = vrot.lane.b32.xlu1 %v5587_v45, %s4949_s19  ;;  %s4956_s19 = smov 121   ;;  %v485_v39 = vmul.u32 34, %v484_v37  ;;  %7902 = vst [vmem:[#allocation4_spill] sm:$0xff] %v7901_v28 }
 0x150   : > { %1067 = vrot.lane.b32.xlu0 %v5581_v41, %s4951_s26 }
 0x151   : > { %1060 = vrot.lane.b32.xlu1 %v5587_v45, %s4950_s25  ;;  %s4957_s25 = smov 85  }
 0x154   : > { %1160 = vrot.lane.b32.xlu0 %v4692_v49, %s4952_s29 }
 0x155   : > { %1069 = vrot.lane.b32.xlu1 %v5587_v45, %s4951_s26  ;;  %s4958_s26 = smov 29  }
 0x158   : > { %1178 = vrot.lane.b32.xlu0 %v4692_v49, %s4953_s30 }
 0x159   : > { %1162 = vrot.lane.b32.xlu1 %v4693_v55, %s4952_s29  ;;  %s4959_s29 = smov 101  }
 0x15c   : > { %1151 = vrot.lane.b32.xlu0 %v4692_v49, %s4954_s27 }
 0x15d   : > { %1180 = vrot.lane.b32.xlu1 %v4693_v55, %s4953_s30  ;;  %s4960_s30 = smov 65  }
 0x160   : > { %1169 = vrot.lane.b32.xlu0 %v4692_v49, %s4955_s17 }
 0x161   : > { %1153 = vrot.lane.b32.xlu1 %v4693_v55, %s4954_s27  ;;  %s4961_s27 = smov 45  }
 0x164   : > { %1201 = vrot.lane.b32.xlu0 %v4694_v0, %s4956_s19 }
 0x165   : > { %1171 = vrot.lane.b32.xlu1 %v4693_v55, %s4955_s17  ;;  %s4962_s17 = smov 47   ;;  %v5704_v52 = vmul.u32.u64.low 4042322161, %v5681_v1  ;;  %v5705_v55 = vmul.u32.u64.high 4042322161, %v5681_v1, %v5704_v52 }
 0x167   : > { %v528_v18 = vshrl.u32 %v5705_v55, 5 }
 0x168   : > { %1192 = vrot.lane.b32.xlu0 %v4694_v0, %s4957_s25 }
 0x169   : > { %1203 = vrot.lane.b32.xlu1 %v4695_v57, %s4956_s19  ;;  %s4963_s19 = smov 83   ;;  %v529_v22 = vmul.u32 34, %v528_v18 }
 0x16b   : > { %v530_v37 = vsub.s32 %v5681_v1, %v529_v22 }
 0x16c   : > { %1210 = vrot.lane.b32.xlu0 %v4694_v0, %s4958_s26 }
 0x16d   : > { %1194 = vrot.lane.b32.xlu1 %v4695_v57, %s4957_s25  ;;  %s4964_s25 = smov 9   ;;  %v608_v50 = vadd.s32 34, %v530_v37 }
 0x170   : > { %1233 = vrot.lane.b32.xlu0 %v5616_v7, %s4959_s29 }
 0x171   : > { %1212 = vrot.lane.b32.xlu1 %v4695_v57, %s4958_s26  ;;  %s4965_s26 = smov 117  }
 0x174   : > { %1219 = vrot.lane.b32.xlu0 %v4694_v0, %s4960_s30 }
 0x175   : > { %1235 = vrot.lane.b32.xlu1 %v5621_v14, %s4959_s29  ;;  %s4966_s29 = smov 119  }
 0x178   : > { %1258 = vrot.lane.b32.xlu0 %v5616_v7, %s4961_s27 }
 0x179   : > { %1221 = vrot.lane.b32.xlu1 %v4695_v57, %s4960_s30  ;;  %s4967_s30 = smov 27   ;;  %v1825_v24 = vpop.f32.mrf.mxu1 }
 0x17a   : > { %v1826_v62 = vadd.f32 %v1825_v24, %v5675_v10 }
 0x17b   : > { %v1827_v49 = vpop.f32.mrf.mxu1 }
 0x17c   : > { %1076 = vrot.lane.b32.xlu0 %v5581_v41, %s4962_s17  ;;  %v486_v41 = vsub.s32 %v5513_v53, %v485_v39  ;;  %v1828_v59 = vadd.f32 %v1827_v49, %v5675_v10  ;;  %v518_v39 = vmul.u32 34, %v517_v27 }
 0x17d   : > { %1260 = vrot.lane.b32.xlu1 %v5621_v14, %s4961_s27  ;;  %s4968_s27 = smov 81   ;;  %v1829_v1 = vpop.f32.mrf.mxu1 }
 0x17e   : > { %vm577_vm15 = vcmp.ne.s32.totalorder %v486_v41, 0  ;;  %vm586_vm0 = vcmp.lt.s32.totalorder %v486_v41, 0  ;;  %v604_v33 = vadd.s32 34, %v486_v41  ;;  %v2005_v5 = vsel %vm5716_vm12, %v1828_v59, 0.0 }
 0x17f   : > { %vm5692_vm6 = vmand %vm586_vm0, %vm577_vm15  ;;  %vm984_vm15 = vcmask 1044344   ;;  %vm985_vm0 = vcmask 121860  }
 0x180   : > { %1090 = vrot.lane.b32.xlu0 %v5640_v6, %s4963_s19  ;;  %v613_v58 = vsel %vm5692_vm6, %v604_v33, %v486_v41 }
 0x181   : > { %1078 = vrot.lane.b32.xlu1 %v5587_v45, %s4962_s17  ;;  %s4969_s17 = smov 61   ;;  %v5688_v45 = vadd.s32 640, %v5513_v53  ;;  %vm5725_vm6 = vcmp.lt.s32.totalorder %v613_v58, 32 }
 0x182   : > { %v7904_v54 = vsel %vm5725_vm6, 4294967295, %v7903_v54  ;;  %v2004_v16 = vsel %vm5725_vm6, %v1826_v62, 0.0 }
 0x183   : > { %v5708_v56 = vmul.u32.u64.low 4042322161, %v5688_v45  ;;  %v5709_v44 = vmul.u32.u64.high 4042322161, %v5688_v45, %v5708_v56  ;;  %7905 = vst [vmem:[#allocation5_spill] sm:$0xff] %v7904_v54  ;;  %v4700_v20 = vpack.c.bf16 %v2005_v5, %v2004_v16  ;;  %v7918_v5 = vmov 0 }
 0x184   : > { %1249 = vrot.lane.b32.xlu0 %v5616_v7, %s4964_s25 }
 0x185   : > { %1092 = vrot.lane.b32.xlu1 %v4691_v19, %s4963_s19  ;;  %s4970_s19 = smov 63   ;;  %v539_v40 = vshrl.u32 %v5709_v44, 5 }
 0x187   : > { %v540_v23 = vmul.u32 34, %v539_v40  ;;  %v1830_v40 = vadd.f32 %v1829_v1, %v5690_v46 }
 0x188   : > { %1290 = vrot.lane.b32.xlu0 %v5660_v31, %s4965_s26 }
 0x189   : > { %1251 = vrot.lane.b32.xlu1 %v5621_v14, %s4964_s25  ;;  %s4971_s25 = smov 25   ;;  %v541_v38 = vsub.s32 %v5688_v45, %v540_v23 }
 0x18b   : > { %vm591_vm5 = vcmp.lt.s32.totalorder %v541_v38, 0  ;;  %v609_v51 = vadd.s32 34, %v541_v38 }
 0x18c   : > { %1099 = vrot.lane.b32.xlu0 %v5640_v6, %s4966_s29 }
 0x18d   : > { %1288 = vrot.lane.b32.xlu1 %v5666_v36, %s4965_s26  ;;  %s4972_s26 = smov 97  }
 0x190   : > { %1108 = vrot.lane.b32.xlu0 %v5640_v6, %s4967_s30 }
 0x191   : > { %1101 = vrot.lane.b32.xlu1 %v4691_v19, %s4966_s29  ;;  %s4978_s29 = smov 114  }
 0x194   : > { %1274 = vrot.lane.b32.xlu0 %v5616_v7, %s4968_s27 }
 0x195   : > { %1110 = vrot.lane.b32.xlu1 %v4691_v19, %s4967_s30  ;;  %s4979_s30 = smov 112  }
 0x198   : > { %1313 = vrot.lane.b32.xlu0 %v5666_v36, %s4969_s17 }
 0x199   : > { %1276 = vrot.lane.b32.xlu1 %v5621_v14, %s4968_s27  ;;  %v5739_v14 = vmul.u32.u64.low 4042322161, %v5562_v3  ;;  %v5740_v15 = vmul.u32.u64.high 4042322161, %v5562_v3, %v5739_v14  ;;  %s4980_s27 = smov 110  }
 0x19a   : > { %v949_v9 = vpop.permute.xlu0 %948 }
 0x19b   : > { %v952_v47 = vrot.slane %v949_v9, 4 }
 0x19c   : > { %1119 = vrot.lane.b32.xlu0 %v4691_v19, %s4970_s19 }
 0x19d   : > { %1315 = vrot.lane.b32.xlu1 %v5660_v31, %s4969_s17  ;;  %v955_v32 = vsel %vm954_vm7, %v952_v47, %v949_v9  ;;  %v5778_v9 = vsub.s32 %v5612_v29, %v518_v39  ;;  %s4982_s17 = smov 106  }
 0x19e   : > { %v940_v42 = vpop.permute.xlu0 %939 }
 0x19f   : > { %946 = vst.msk [vmem:[#allocation2] sm:$0xf] %vm945_vm13, %v940_v42  ;;  %v951_v0 = vpop.permute.xlu1 %950  ;;  %v1831_v42 = vpop.f32.mrf.mxu1 }
 0x1a0   : > { %v953_v60 = vrot.slane %v951_v0, 4  ;;  %1306 = vrot.lane.b32.xlu0 %v5660_v31, %s4971_s25  ;;  %962 = vst.msk [vmem:[#allocation2] sm:$0xff] %vm5699_vm14, %v955_v32  ;;  %v1832_v14 = vadd.f32 %v1831_v42, %v5690_v46 }
 0x1a1   : > { %1117 = vrot.lane.b32.xlu1 %v5640_v6, %s4970_s19  ;;  %s4986_s19 = smov 98  }
 0x1a2   : > { %v974_v57 = vpop.permute.xlu0 %973  ;;  %v956_v11 = vsel %vm954_vm7, %v953_v60, %v951_v0  ;;  %vm5749_vm7 = vmor %vm985_vm0, %vm984_vm15  ;;  %vm1009_vm15 = vcmask 711680   ;;  %vm1000_vm0 = vcmask 675224   ;;  %v607_v0 = vadd.s32 34, %v5778_v9 }
 0x1a3   : > { %v977_v7 = vrot.slane %v974_v57, 4  ;;  %v942_v8 = vpop.permute.xlu1 %941 }
 0x1a4   : > { %947 = vst.msk [vmem:[#allocation2 + $0x28] sm:$0xf] %vm945_vm13, %v942_v8  ;;  %1329 = vrot.lane.b32.xlu0 %v5666_v36, %s4972_s26  ;;  %vm1014_vm13 = vcmask 1044408   ;;  %v7921_v8 = vmov 0 }
 0x1a5   : > { %1304 = vrot.lane.b32.xlu1 %v5666_v36, %s4971_s25  ;;  %963 = vst.msk [vmem:[#allocation2 + $0x28] sm:$0xff] %vm5699_vm14, %v956_v11  ;;  %v980_v21 = vsel %vm979_vm1, %v977_v7, %v974_v57  ;;  %vm1015_vm14 = vcmask 187396   ;;  %v506_v36 = vshrl.u32 %v5740_v15, 5  ;;  %v1868_v32 = vpop.f32.mrf.mxu1  ;;  %s4975_s25 = smov 120  }
 0x1a6   : > { %v965_v6 = vpop.permute.xlu0 %964  ;;  %vm5767_vm4 = vmor %vm1015_vm14, %vm1014_vm13  ;;  %vm590_vm13 = vcmp.lt.s32.totalorder %v530_v37, 0  ;;  %vm582_vm14 = vcmp.ne.s32.totalorder %v541_v38, 0 }
 0x1a7   : > { %971 = vst.msk [vmem:[#allocation2 + $0x4] sm:$0xf] %vm970_vm11, %v965_v6  ;;  %v976_v17 = vpop.permute.xlu1 %975  ;;  %v507_v26 = vmul.u32 34, %v506_v36 }
 0x1a8   : > { %v978_v13 = vrot.slane %v976_v17, 4  ;;  %2068 = vrot.lane.b32.xlu0 %v4700_v20, %s4942_s20  ;;  %987 = vst.msk [vmem:[#allocation2 + $0x4] sm:$0xff] %vm5749_vm7, %v980_v21  ;;  %v1870_v20 = vpop.f32.mrf.mxu1 }
 0x1a9   : > { %1331 = vrot.lane.b32.xlu1 %v5660_v31, %s4972_s26  ;;  %v508_v29 = vsub.s32 %v5562_v3, %v507_v26  ;;  %v7926_v31 = vmov 0  ;;  %s4977_s26 = smov 116  }
 0x1aa   : > { %v1004_v19 = vpop.permute.xlu0 %1003  ;;  %v981_v34 = vsel %vm979_vm1, %v978_v13, %v976_v17  ;;  %vm1039_vm1 = vcmask 1044472  }
 0x1ab   : > { %v1007_v30 = vrot.slane %v1004_v19, 4  ;;  %v967_v61 = vpop.permute.xlu1 %966  ;;  %v606_v25 = vadd.s32 34, %v508_v29 }
 0x1ac   : > { %972 = vst.msk [vmem:[#allocation2 + $0x2c] sm:$0xf] %vm970_vm11, %v967_v61  ;;  %vm1040_vm11 = vcmask 252932   ;;  %v2014_v61 = vsel %vm5716_vm12, %v1832_v14, 0.0 }
 0x1ad   : > { %988 = vst.msk [vmem:[#allocation2 + $0x2c] sm:$0xff] %vm5749_vm7, %v981_v34  ;;  %v1010_v12 = vsel %vm1009_vm15, %v1007_v30, %v1004_v19  ;;  %vm581_vm7 = vcmp.ne.s32.totalorder %v530_v37, 0  ;;  %vm5780_vm8 = vmor %vm1040_vm11, %vm1039_vm1  ;;  %vm588_vm11 = vcmp.lt.s32.totalorder %v508_v29, 0  ;;  %v1871_v34 = vadd.f32 %v1870_v20, %v5675_v10 }
 0x1ae   : > { %v995_v63 = vpop.permute.xlu0 %994  ;;  %vm5786_vm9 = vmand %vm590_vm13, %vm581_vm7 }
 0x1af   : > { %1001 = vst.msk [vmem:[#allocation2 + $0x8] sm:$0xf] %vm1000_vm0, %v995_v63  ;;  %v1006_v41 = vpop.permute.xlu1 %1005  ;;  %vm5795_vm1 = vmand %vm591_vm5, %vm582_vm14  ;;  %v617_v58 = vsel %vm5786_vm9, %v608_v50, %v530_v37  ;;  %vm579_vm5 = vcmp.ne.s32.totalorder %v508_v29, 0  ;;  %v2013_v37 = vsel %vm5725_vm6, %v1830_v40, 0.0  ;;  %v1869_v63 = vadd.f32 %v1868_v32, %v5675_v10 }
 0x1b0   : > { %v1008_v24 = vrot.slane %v1006_v41, 4  ;;  %1017 = vst.msk [vmem:[#allocation2 + $0x8] sm:$0xff] %vm5767_vm4, %v1010_v12  ;;  %v618_v59 = vsel %vm5795_vm1, %v609_v51, %v541_v38  ;;  %vm5817_vm9 = vcmp.lt.s32.totalorder %v617_v58, 32  ;;  %vm5828_vm14 = vmand %vm588_vm11, %vm579_vm5  ;;  %vm1064_vm1 = vcmask 314424  }
 0x1b1   : > { %v7919_v5 = vsel %vm5817_vm9, 4294967295, %v7918_v5  ;;  %vm5822_vm13 = vcmp.lt.s32.totalorder %v618_v59, 32  ;;  %v615_v19 = vsel %vm5828_vm14, %v606_v25, %v508_v29  ;;  %v477_v50 = vadd.s32 1024, %v5513_v53 }
 0x1b2   : > { %v1029_v43 = vpop.permute.xlu0 %1028  ;;  %v1011_v48 = vsel %vm1009_vm15, %v1008_v24, %v1006_v41  ;;  %vm580_vm15 = vcmp.ne.s32.totalorder %v5778_v9, 0  ;;  %7920 = vst [vmem:[#allocation6_spill] sm:$0xff] %v7919_v5  ;;  %v7922_v8 = vsel %vm5822_vm13, 4294967295, %v7921_v8  ;;  %v4705_v41 = vpack.c.bf16 %v2014_v61, %v2013_v37 }
 0x1b3   : > { %v1032_v45 = vrot.slane %v1029_v43, 4  ;;  %v997_v33 = vpop.permute.xlu1 %996  ;;  %7923 = vst [vmem:[#allocation7_spill] sm:$0xff] %v7922_v8  ;;  %v7929_v24 = vmov 0  ;;  %vm1175_vm5 = vcmask 888424   ;;  %vm1207_vm11 = vcmask 462024  }
 0x1b4   : > { %1002 = vst.msk [vmem:[#allocation2 + $0x30] sm:$0xf] %vm1000_vm0, %v997_v33  ;;  %vm589_vm0 = vcmp.lt.s32.totalorder %v5778_v9, 0  ;;  %vm1216_vm14 = vcmask 1019624  }
 0x1b5   : > { %1018 = vst.msk [vmem:[#allocation2 + $0x30] sm:$0xff] %vm5767_vm4, %v1011_v48  ;;  %v1035_v56 = vsel %vm1034_vm10, %v1032_v45, %v1029_v43  ;;  %vm1055_vm4 = vcmask 806424   ;;  %vm5812_vm7 = vmand %vm589_vm0, %vm580_vm15  ;;  %vm1166_vm15 = vcmask 330824   ;;  %vm1184_vm0 = vcmask 396424  }
 0x1b6   : > { %v1020_v55 = vpop.permute.xlu0 %1019  ;;  %v616_v18 = vsel %vm5812_vm7, %v607_v0, %v5778_v9  ;;  %vm1198_vm7 = vcmask 954024  }
 0x1b7   : > { %1026 = vst.msk [vmem:[#allocation2 + $0xc] sm:$0xf] %vm1025_vm2, %v1020_v55  ;;  %v1031_v3 = vpop.permute.xlu1 %1030  ;;  %v5881_v52 = vmul.u32.u64.low 4042322161, %v477_v50  ;;  %v5882_v55 = vmul.u32.u64.high 4042322161, %v477_v50, %v5881_v52 }
 0x1b8   : > { %v1033_v44 = vrot.slane %v1031_v3, 4  ;;  %1042 = vst.msk [vmem:[#allocation2 + $0xc] sm:$0xff] %vm5780_vm8, %v1035_v56 }
 0x1b9   : > { %v1911_v60 = vpop.f32.mrf.mxu0  ;;  %v572_v58 = vshrl.u32 %v5882_v55, 5 }
 0x1ba   : > { %v1912_v57 = vadd.f32 %v1911_v60, %v5675_v10  ;;  %v1050_v4 = vpop.permute.xlu0 %1049  ;;  %v1036_v16 = vsel %vm1034_vm10, %v1033_v44, %v1031_v3  ;;  %vm5866_vm10 = vcmp.lt.s32.totalorder %v615_v19, 32 }
 0x1bb   : > { %v1022_v7 = vpop.permute.xlu1 %1021  ;;  %1056 = vst.msk [vmem:[#allocation2 + $0x10] sm:$0xf] %vm1055_vm4, %v1050_v4  ;;  %v1913_v11 = vpop.f32.mrf.mxu0  ;;  %v7930_v24 = vsel %vm5866_vm10, 4294967295, %v7929_v24  ;;  %v2006_v9 = vsel %vm5866_vm10, %v1869_v63, 0.0  ;;  %v573_v0 = vmul.u32 34, %v572_v58 }
 0x1bc   : > { %1027 = vst.msk [vmem:[#allocation2 + $0x34] sm:$0xf] %vm1025_vm2, %v1022_v7  ;;  %v1914_v35 = vadd.f32 %v1913_v11, %v5675_v10  ;;  %v2008_v21 = vsel %vm5817_vm9, %v1912_v57, 0.0  ;;  %vm1073_vm2 = vcmask 872024   ;;  %7931 = vst [vmem:[#allocation9_spill] sm:$0xff] %v7930_v24 }
 0x1bd   : > { %1043 = vst.msk [vmem:[#allocation2 + $0x34] sm:$0xff] %vm5780_vm8, %v1036_v16  ;;  %v1915_v6 = vpop.f32.mrf.mxu0  ;;  %vm5854_vm8 = vcmp.lt.s32.totalorder %v616_v18, 32  ;;  %v574_v25 = vsub.s32 %v477_v50, %v573_v0 }
 0x1be   : > { %v2009_v17 = vsel %vm5822_vm13, %v1914_v35, 0.0  ;;  %v1916_v13 = vadd.f32 %v1915_v6, %v5690_v46  ;;  %v1059_v22 = vpop.permute.xlu0 %1058  ;;  %v7927_v31 = vsel %vm5854_vm8, 4294967295, %v7926_v31  ;;  %v2007_v1 = vsel %vm5854_vm8, %v1871_v34, 0.0 }
 0x1bf   : > { %v4702_v23 = vpack.c.bf16 %v2009_v17, %v2008_v21  ;;  %1065 = vst.msk [vmem:[#allocation2 + $0x14] sm:$0xf] %vm1064_vm1, %v1059_v22  ;;  %v1052_v27 = vpop.permute.xlu1 %1051  ;;  %v1917_v30 = vpop.f32.mrf.mxu0  ;;  %7928 = vst [vmem:[#allocation8_spill] sm:$0xff] %v7927_v31  ;;  %v4701_v33 = vpack.c.bf16 %v2007_v1, %v2006_v9  ;;  %v612_v35 = vadd.s32 34, %v574_v25 }
 0x1c0   : > { %1057 = vst.msk [vmem:[#allocation2 + $0x38] sm:$0xf] %vm1055_vm4, %v1052_v27  ;;  %v1918_v36 = vadd.f32 %v1917_v30, %v5690_v46  ;;  %v2017_v38 = vsel %vm5817_vm9, %v1916_v13, 0.0  ;;  %vm1157_vm4 = vcmask 822824  }
 0x1c1   : > { %2072 = vrot.lane.b32.xlu0 %v4702_v23, %s4942_s20  ;;  %v7934_v23 = vmov 0 }
 0x1c2   : > { %v2018_v39 = vsel %vm5822_vm13, %v1918_v36, 0.0  ;;  %v1068_v12 = vpop.permute.xlu0 %1067 }
 0x1c3   : > { %v4707_v26 = vpack.c.bf16 %v2018_v39, %v2017_v38  ;;  %1074 = vst.msk [vmem:[#allocation2 + $0x14] sm:$0xf] %vm1073_vm2, %v1068_v12  ;;  %v1061_v43 = vpop.permute.xlu1 %1060 }
 0x1c4   : > { %1066 = vst.msk [vmem:[#allocation2 + $0x3c] sm:$0xf] %vm1064_vm1, %v1061_v43  ;;  %vm1244_vm1 = vcmask 1044264  }
 0x1c5   : > { %2082 = vrot.lane.b32.xlu1 %v4707_v26, %s4942_s20  ;;  %2078 = vrot.lane.b32.xlu0 %v4705_v41, %s4942_s20 }
 0x1c6   : > { %v1161_v45 = vpop.permute.xlu0 %1160 }
 0x1c7   : > { %1167 = vst.msk [vmem:[#allocation2 + $0x4] sm:$0xf] %vm1166_vm15, %v1161_v45  ;;  %v1070_v47 = vpop.permute.xlu1 %1069 }
 0x1c8   : > { %1075 = vst.msk [vmem:[#allocation2 + $0x3c] sm:$0xf] %vm1073_vm2, %v1070_v47  ;;  %vm1245_vm2 = vcmask 39940  }
 0x1c9   : > { %2070 = vrot.lane.b32.xlu1 %v4701_v33, %s4942_s20 }
 0x1ca   : > { %v1179_v48 = vpop.permute.xlu0 %1178 }
 0x1cb   : > { %1185 = vst.msk [vmem:[#allocation2 + $0x8] sm:$0xf] %vm1184_vm0, %v1179_v48  ;;  %v1163_v49 = vpop.permute.xlu1 %1162 }
 0x1cc   : > { %1168 = vst.msk [vmem:[#allocation2 + $0x2c] sm:$0xf] %vm1166_vm15, %v1163_v49  ;;  %vm585_vm15 = vcmp.ne.s32.totalorder %v574_v25, 0 }
 0x1ce   : > { %v1152_v51 = vpop.permute.xlu0 %1151 }
 0x1cf   : > { %1158 = vst.msk [vmem:[#allocation2] sm:$0xf] %vm1157_vm4, %v1152_v51  ;;  %v1181_v29 = vpop.permute.xlu1 %1180 }
 0x1d0   : > { %1186 = vst.msk [vmem:[#allocation2 + $0x30] sm:$0xf] %vm1184_vm0, %v1181_v29  ;;  %vm594_vm0 = vcmp.lt.s32.totalorder %v574_v25, 0 }
 0x1d2   : > { %v1170_v42 = vpop.permute.xlu0 %1169 }
 0x1d3   : > { %1176 = vst.msk [vmem:[#allocation2 + $0x4] sm:$0xf] %vm1175_vm5, %v1170_v42  ;;  %v1154_v56 = vpop.permute.xlu1 %1153 }
 0x1d4   : > { %1159 = vst.msk [vmem:[#allocation2 + $0x28] sm:$0xf] %vm1157_vm4, %v1154_v56  ;;  %vm1239_vm4 = vcmask 826368  }
 0x1d6   : > { %v1202_v3 = vpop.permute.xlu0 %1201 }
 0x1d7   : > { %1208 = vst.msk [vmem:[#allocation2 + $0xc] sm:$0xf] %vm1207_vm11, %v1202_v3  ;;  %v1172_v44 = vpop.permute.xlu1 %1171 }
 0x1d8   : > { %1177 = vst.msk [vmem:[#allocation2 + $0x2c] sm:$0xf] %vm1175_vm5, %v1172_v44  ;;  %vm1225_vm5 = vcmask 527624  }
 0x1da   : > { %v1193_v59 = vpop.permute.xlu0 %1192  ;;  %v2144_v62 = vld [vmem:[#allocation2] sm:$0xff] }
 0x1db   : > { %1199 = vst.msk [vmem:[#allocation2 + $0x8] sm:$0xf] %vm1198_vm7, %v1193_v59  ;;  %v1204_v32 = vpop.permute.xlu1 %1203 }
 0x1dc   : > { %1209 = vst.msk [vmem:[#allocation2 + $0x34] sm:$0xf] %vm1207_vm11, %v1204_v32  ;;  %vm5893_vm11 = vmor %vm1245_vm2, %vm1244_vm1  ;;  %vm1082_vm1 = vcmask 380024   ;;  %vm1096_vm2 = vcmask 937624  }
 0x1de   : > { %v1211_v60 = vpop.permute.xlu0 %1210 }
 0x1df   : > { %v2149_v57 = vld [vmem:[#allocation2 + $0x28] sm:$0xff]  ;;  %1217 = vst.msk [vmem:[#allocation2 + $0xc] sm:$0xf] %vm1216_vm14, %v1211_v60  ;;  %v1195_v4 = vpop.permute.xlu1 %1194 }
 0x1e0   : > { %v5886_v7 = vcombine.high %v2144_v62, %v2149_v57  ;;  %1200 = vst.msk [vmem:[#allocation2 + $0x30] sm:$0xf] %vm1198_vm7, %v1195_v4  ;;  %v5890_v16 = vcombine.low %v2144_v62, %v2149_v57  ;;  %vm603_vm7 = vmand %vm594_vm0, %vm585_vm15  ;;  %vm1269_vm15 = vcmask 1044328   ;;  %vm1270_vm0 = vcmask 105476  }
 0x1e1   : > { %v621_v17 = vsel %vm603_vm7, %v612_v35, %v574_v25  ;;  %vm1105_vm7 = vcmask 445624   ;;  %v475_v35 = vadd.s32 768, %v5513_v53 }
 0x1e2   : > { %2402 = vrot.lane.b32.xlu1 %v5886_v7, %s4937_s13  ;;  %v1234_v11 = vpop.permute.xlu0 %1233 }
 0x1e3   : > { %v1213_v14 = vpop.permute.xlu1 %1212  ;;  %v1237_v15 = vrot.slane %v1234_v11, 4 }
 0x1e4   : > { %1218 = vst.msk [vmem:[#allocation2 + $0x34] sm:$0xf] %vm1216_vm14, %v1213_v14  ;;  %vm5907_vm14 = vcmp.lt.s32.totalorder %v621_v17, 32 }
 0x1e5   : > { %v1240_v6 = vsel %vm1239_vm4, %v1237_v15, %v1234_v11  ;;  %v7935_v23 = vsel %vm5907_vm14, 4294967295, %v7934_v23  ;;  %v476_v11 = vadd.s32 896, %v5513_v53 }
 0x1e6   : > { %2400 = vrot.lane.b32.xlu1 %v5890_v16, %s4937_s13  ;;  %v1220_v20 = vpop.permute.xlu0 %1219  ;;  %7936 = vst [vmem:[#allocation10_spill] sm:$0xff] %v7935_v23  ;;  %v2145_v49 = vld [vmem:[#allocation2 + $0x8] sm:$0xff] }
 0x1e7   : > { %1226 = vst.msk [vmem:[#allocation2 + $0x10] sm:$0xf] %vm1225_vm5, %v1220_v20  ;;  %v1236_v40 = vpop.permute.xlu1 %1235 }
 0x1e8   : > { %v1238_v21 = vrot.slane %v1236_v40, 4  ;;  %1247 = vst.msk [vmem:[#allocation2 + $0x10] sm:$0xff] %vm5893_vm11, %v1240_v6 }
 0x1ea   : > { %2332 = vrot.lane.b32.xlu1 %v5886_v7, %s4936_s28  ;;  %v1259_v13 = vpop.permute.xlu0 %1258  ;;  %v1241_v19 = vsel %vm1239_vm4, %v1238_v21, %v1236_v40  ;;  %vm1264_vm4 = vcmask 367616   ;;  %v5994_v40 = vmul.u32.u64.low 4042322161, %v476_v11  ;;  %v5995_v21 = vmul.u32.u64.high 4042322161, %v476_v11, %v5994_v40 }
 0x1eb   : > { %v1222_v22 = vpop.permute.xlu1 %1221  ;;  %v1262_v41 = vrot.slane %v1259_v13, 4  ;;  %v2150_v47 = vld [vmem:[#allocation2 + $0x30] sm:$0xff] }
 0x1ec   : > { %1227 = vst.msk [vmem:[#allocation2 + $0x38] sm:$0xf] %vm1225_vm5, %v1222_v22  ;;  %v1997_v27 = vpop.f32.mrf.mxu0  ;;  %vm1255_vm5 = vcmask 593224   ;;  %v5943_v51 = vcombine.low %v2145_v49, %v2150_v47  ;;  %v5970_v0 = vcombine.high %v2145_v49, %v2150_v47 }
 0x1ed   : > { %v1998_v30 = vadd.f32 %v1997_v27, %v5675_v10  ;;  %1248 = vst.msk [vmem:[#allocation2 + $0x38] sm:$0xff] %vm5893_vm11, %v1241_v19  ;;  %vm5926_vm11 = vmor %vm1270_vm0, %vm1269_vm15  ;;  %v1265_v9 = vsel %vm1264_vm4, %v1262_v41, %v1259_v13  ;;  %vm1300_vm15 = vcmask 171012   ;;  %vm1280_vm0 = vcmask 658824  }
 0x1ee   : > { %2330 = vrot.lane.b32.xlu1 %v5890_v16, %s4936_s28  ;;  %v4763_v61 = vpop.f32.mrf.mxu0  ;;  %v1077_v34 = vpop.permute.xlu0 %1076  ;;  %v6004_v13 = vmul.u32.u64.low 4042322161, %v475_v35  ;;  %v6005_v22 = vmul.u32.u64.high 4042322161, %v475_v35, %v6004_v13 }
 0x1ef   : > { %v2012_v36 = vsel %vm5907_vm14, %v1998_v30, 0.0  ;;  %1083 = vst.msk [vmem:[#allocation2 + $0x18] sm:$0xf] %vm1082_vm1, %v1077_v34  ;;  %v1261_v37 = vpop.permute.xlu1 %1260 }
 0x1f0   : > { %v4704_v63 = vpack.c.bf16 %v2012_v36, %v2012_v36  ;;  %v5919_v38 = vpop.f32.mrf.mxu0  ;;  %v1263_v33 = vrot.slane %v1261_v37, 4 }
 0x1f1   : > { %v2001_v62 = vadd.f32 %v5919_v38, %v5690_v46 }
 0x1f2   : > { %2262 = vrot.lane.b32.xlu1 %v5886_v7, %s4938_s16  ;;  %v1091_v39 = vpop.permute.xlu0 %1090  ;;  %2076 = vrot.lane.b32.xlu0 %v4704_v63, %s4942_s20  ;;  %v4764_v12 = vpop.f32.mrf.mxu0  ;;  %v1266_v29 = vsel %vm1264_vm4, %v1263_v33, %v1261_v37 }
 0x1f3   : > { %1097 = vst.msk [vmem:[#allocation2 + $0x18] sm:$0xf] %vm1096_vm2, %v1091_v39  ;;  %v1079_v26 = vpop.permute.xlu1 %1078  ;;  %v2021_v14 = vsel %vm5907_vm14, %v2001_v62, 0.0  ;;  %v561_v39 = vshrl.u32 %v5995_v21, 5  ;;  %v1872_v12 = vpop.f32.mrf.mxu1 }
 0x1f4   : > { %1084 = vst.msk [vmem:[#allocation2 + $0x40] sm:$0xf] %vm1082_vm1, %v1079_v26  ;;  %vm1114_vm1 = vcmask 1003224   ;;  %v4709_v20 = vpack.c.bf16 %v2021_v14, %v2021_v14  ;;  %v550_v26 = vshrl.u32 %v6005_v22, 5 }
 0x1f5   : > { %v1874_v47 = vpop.f32.mrf.mxu1 }
 0x1f6   : > { %2260 = vrot.lane.b32.xlu1 %v5890_v16, %s4938_s16  ;;  %v1250_v1 = vpop.permute.xlu0 %1249  ;;  %2780 = vrot.lane.b32.xlu0 %v5886_v7, %s4931_s14  ;;  %v1875_v49 = vadd.f32 %v1874_v47, %v5690_v46 }
 0x1f7   : > { %1256 = vst.msk [vmem:[#allocation2 + $0x14] sm:$0xf] %vm1255_vm5, %v1250_v1  ;;  %v1093_v45 = vpop.permute.xlu1 %1092  ;;  %v7944_v1 = vmov 0 }
 0x1f8   : > { %1098 = vst.msk [vmem:[#allocation2 + $0x40] sm:$0xf] %vm1096_vm2, %v1093_v45  ;;  %vm1299_vm2 = vcmask 1044392   ;;  %v562_v45 = vmul.u32 34, %v561_v39 }
 0x1f9   : > { %1272 = vst.msk [vmem:[#allocation2 + $0x14] sm:$0xff] %vm5926_vm11, %v1265_v9  ;;  %vm5960_vm4 = vmor %vm1300_vm15, %vm1299_vm2  ;;  %vm1310_vm2 = vcmask 724424  }
 0x1fa   : > { %2704 = vrot.lane.b32.xlu1 %v5886_v7, %s4933_s18  ;;  %2778 = vrot.lane.b32.xlu0 %v5890_v16, %s4931_s14  ;;  %v1291_v48 = vpop.permute.xlu0 %1290 }
 0x1fb   : > { %v1252_v50 = vpop.permute.xlu1 %1251  ;;  %v1293_v60 = vrot.slane %v1291_v48, 4 }
 0x1fc   : > { %1257 = vst.msk [vmem:[#allocation2 + $0x3c] sm:$0xf] %vm1255_vm5, %v1252_v50  ;;  %vm1294_vm5 = vcmask 957440   ;;  %v563_v50 = vsub.s32 %v476_v11, %v562_v45  ;;  %v7950_v11 = vmov 0 }
 0x1fd   : > { %1273 = vst.msk [vmem:[#allocation2 + $0x3c] sm:$0xff] %vm5926_vm11, %v1266_v29  ;;  %v1296_v25 = vsel %vm1294_vm5, %v1293_v60, %v1291_v48  ;;  %vm1123_vm11 = vcmask 511224   ;;  %v551_v48 = vmul.u32 34, %v550_v26  ;;  %v1873_v29 = vadd.f32 %v1872_v12, %v5690_v46 }
 0x1fe   : > { %2702 = vrot.lane.b32.xlu1 %v5890_v16, %s4933_s18  ;;  %2404 = vrot.lane.b32.xlu0 %v5943_v51, %s4937_s13  ;;  %v1100_v52 = vpop.permute.xlu0 %1099 }
 0x1ff   : > { %v1289_v55 = vpop.permute.xlu1 %1288  ;;  %1106 = vst.msk [vmem:[#allocation2 + $0x1c] sm:$0xf] %vm1105_vm7, %v1100_v52  ;;  %v552_v52 = vsub.s32 %v475_v35, %v551_v48 }
 0x200   : > { %v1292_v56 = vrot.slane %v1289_v55, 4  ;;  %v6018_v36 = vld [vmem:[#allocation2 + $0x10] sm:$0xff] }
 0x202   : > { %2628 = vrot.lane.b32.xlu1 %v5886_v7, %s4932_s15  ;;  %2334 = vrot.lane.b32.xlu0 %v5943_v51, %s4936_s28  ;;  %v1109_v42 = vpop.permute.xlu0 %1108  ;;  %v1295_v59 = vsel %vm1294_vm5, %v1292_v56, %v1289_v55  ;;  %vm2124_vm5 = vcmask 1043736   ;;  %v2016_v55 = vsel %vm5854_vm8, %v1875_v49, 0.0  ;;  %v2015_v56 = vsel %vm5866_vm10, %v1873_v29, 0.0 }
 0x203   : > { %v1102_v3 = vpop.permute.xlu1 %1101  ;;  %1115 = vst.msk [vmem:[#allocation2 + $0x1c] sm:$0xf] %vm1114_vm1, %v1109_v42  ;;  %v1954_v42 = vpop.f32.mrf.mxu1  ;;  %v4706_v44 = vpack.c.bf16 %v2016_v55, %v2015_v56 }
 0x204   : > { %1107 = vst.msk [vmem:[#allocation2 + $0x44] sm:$0xf] %vm1105_vm7, %v1102_v3  ;;  %vm1324_vm7 = vcmask 1044456   ;;  %v6012_v61 = vld [vmem:[#allocation2 + $0x38] sm:$0xff]  ;;  %v611_v3 = vadd.s32 34, %v563_v50 }
 0x205   : > { %v6022_v63 = vcombine.low %v6018_v36, %v6012_v61 }
 0x206   : > { %2626 = vrot.lane.b32.xlu1 %v5890_v16, %s4932_s15  ;;  %2264 = vrot.lane.b32.xlu0 %v5943_v51, %s4938_s16  ;;  %v1275_v58 = vpop.permute.xlu0 %1274 }
 0x207   : > { %v1111_v32 = vpop.permute.xlu1 %1110  ;;  %1281 = vst.msk [vmem:[#allocation2 + $0x18] sm:$0xf] %vm1280_vm0, %v1275_v58  ;;  %7943 = vst [vmem:[#allocation11_spill] sm:$0xff] %v6022_v63  ;;  %v610_v58 = vadd.s32 34, %v552_v52 }
 0x208   : > { %1116 = vst.msk [vmem:[#allocation2 + $0x44] sm:$0xf] %vm1114_vm1, %v1111_v32  ;;  %vm1325_vm1 = vcmask 236548  }
 0x209   : > { %1302 = vst.msk [vmem:[#allocation2 + $0x18] sm:$0xff] %vm5960_vm4, %v1295_v59  ;;  %vm5997_vm15 = vmor %vm1325_vm1, %vm1324_vm7  ;;  %vm7884_vm7 = vcmask 285696   ;;  %v1956_v59 = vpop.f32.mrf.mxu1 }
 0x20a   : > { %2542 = vrot.lane.b32.xlu1 %v5886_v7, %s4935_s24  ;;  %2266 = vrot.lane.b32.xlu0 %v5970_v0, %s4938_s16  ;;  %v1314_v57 = vpop.permute.xlu0 %1313  ;;  %v1957_v62 = vadd.f32 %v1956_v59, %v5675_v10 }
 0x20b   : > { %v1277_v4 = vpop.permute.xlu1 %1276  ;;  %v1317_v30 = vrot.slane %v1314_v57, 4 }
 0x20c   : > { %1282 = vst.msk [vmem:[#allocation2 + $0x40] sm:$0xf] %vm1280_vm0, %v1277_v4  ;;  %vm1319_vm0 = vcmask 498688   ;;  %v1958_v4 = vpop.f32.mrf.mxu1 }
 0x20d   : > { %1303 = vst.msk [vmem:[#allocation2 + $0x40] sm:$0xff] %vm5960_vm4, %v1296_v25  ;;  %vm1335_vm4 = vcmask 790024   ;;  %v1320_v38 = vsel %vm1319_vm0, %v1317_v30, %v1314_v57  ;;  %v7947_v57 = vmov 0  ;;  %v1955_v25 = vadd.f32 %v1954_v42, %v5675_v10 }
 0x20e   : > { %2540 = vrot.lane.b32.xlu1 %v5890_v16, %s4935_s24  ;;  %2706 = vrot.lane.b32.xlu0 %v5943_v51, %s4933_s18  ;;  %v1120_v15 = vpop.permute.xlu0 %1119 }
 0x20f   : > { %v1316_v18 = vpop.permute.xlu1 %1315  ;;  %1125 = vst.msk [vmem:[#allocation2 + $0x48] sm:$0xf] %vm1123_vm11, %v1120_v15  ;;  %v1960_v15 = vpop.f32.mrf.mxu1 }
 0x210   : > { %v1318_v6 = vrot.slane %v1316_v18, 4 }
 0x212   : > { %2086 = vrot.lane.b32.xlu1 %v4709_v20, %s4942_s20  ;;  %2630 = vrot.lane.b32.xlu0 %v5943_v51, %s4932_s15  ;;  %v1307_v53 = vpop.permute.xlu0 %1306  ;;  %v1321_v19 = vsel %vm1319_vm0, %v1318_v6, %v1316_v18  ;;  %vm583_vm0 = vcmp.ne.s32.totalorder %v552_v52, 0  ;;  %v1961_v20 = vadd.f32 %v1960_v15, %v5690_v46  ;;  %v1959_v6 = vadd.f32 %v1958_v4, %v5690_v46 }
 0x213   : > { %v1118_v27 = vpop.permute.xlu1 %1117  ;;  %1312 = vst.msk [vmem:[#allocation2 + $0x44] sm:$0xf] %vm1310_vm2, %v1307_v53 }
 0x214   : > { %1124 = vst.msk [vmem:[#allocation2 + $0x20] sm:$0xf] %vm1123_vm11, %v1118_v27  ;;  %vm2125_vm11 = vcmask 1047556   ;;  %v6120_v27 = vcombine.high %v6018_v36, %v6012_v61 }
 0x215   : > { %1328 = vst.msk [vmem:[#allocation2 + $0x44] sm:$0xff] %vm5997_vm15, %v1321_v19  ;;  %vm6037_vm1 = vmor %vm2125_vm11, %vm2124_vm5 }
 0x216   : > { %2782 = vrot.lane.b32.xlu1 %v5943_v51, %s4931_s14  ;;  %2544 = vrot.lane.b32.xlu0 %v5943_v51, %s4935_s24  ;;  %v1330_v34 = vpop.permute.xlu0 %1329  ;;  %v7945_v1 = vsel %vm6037_vm1, 4294967295, %v7944_v1 }
 0x217   : > { %v1305_v37 = vpop.permute.xlu1 %1304  ;;  %7946 = vst [vmem:[#allocation12_spill] sm:$0xff] %v7945_v1 }
 0x218   : > { %1311 = vst.msk [vmem:[#allocation2 + $0x1c] sm:$0xf] %vm1310_vm2, %v1305_v37  ;;  %vm584_vm2 = vcmp.ne.s32.totalorder %v563_v50, 0 }
 0x219   : > { %1327 = vst.msk [vmem:[#allocation2 + $0x1c] sm:$0xff] %vm5997_vm15, %v1320_v38  ;;  %vm593_vm15 = vcmp.lt.s32.totalorder %v563_v50, 0 }
 0x21a   : > { %1336 = vst.msk [vmem:[#allocation2 + $0x20] sm:$0xf] %vm1335_vm4, %v1330_v34  ;;  %2406 = vrot.lane.b32.xlu1 %v5970_v0, %s4937_s13  ;;  %2408 = vrot.lane.b32.xlu0 %v6022_v63, %s4937_s13  ;;  %v6034_v41 = vpop.permute.xlu0 %2068  ;;  %vm602_vm5 = vmand %vm593_vm15, %vm584_vm2  ;;  %vm7953_vm15 = vcmask 1043456  }
 0x21b   : > { %v1332_v43 = vpop.permute.xlu1 %1331  ;;  %v2088_v9 = vrot.slane %v6034_v41, 4  ;;  %v620_v32 = vsel %vm602_vm5, %v611_v3, %v563_v50 }
 0x21c   : > { %1337 = vst.msk [vmem:[#allocation2 + $0x48] sm:$0xf] %vm1335_vm4, %v1332_v43  ;;  %vm592_vm4 = vcmp.lt.s32.totalorder %v552_v52, 0  ;;  %vm6071_vm3 = vcmp.lt.s32.totalorder %v620_v32, 32  ;;  %v2152_v12 = vld [vmem:[#allocation2 + $0x40] sm:$0xff] }
 0x21d   : > { %v2097_v33 = vsel %vm7884_vm7, %v2088_v9, %v6034_v41  ;;  %vm601_vm11 = vmand %vm592_vm4, %vm583_vm0  ;;  %v7948_v57 = vsel %vm6071_vm3, 4294967295, %v7947_v57  ;;  %v2011_v14 = vsel %vm6071_vm3, %v1957_v62, 0.0  ;;  %v2020_v53 = vsel %vm6071_vm3, %v1961_v20, 0.0 }
 0x21e   : > { %2127 = vst.msk [vmem:[#allocation2 + $0x50] sm:$0xff] %vm6037_vm1, %v2097_v33  ;;  %2336 = vrot.lane.b32.xlu1 %v5970_v0, %s4936_s28  ;;  %2338 = vrot.lane.b32.xlu0 %v6022_v63, %s4936_s28  ;;  %v619_v60 = vsel %vm601_vm11, %v610_v58, %v552_v52  ;;  %7949 = vst [vmem:[#allocation13_spill] sm:$0xff] %v7948_v57  ;;  %vm7883_vm11 = vcmask 805888  }
 0x21f   : > { %vm6080_vm2 = vcmp.lt.s32.totalorder %v619_v60, 32  ;;  %vm7954_vm0 = vmmov %vm7953_vm15 }
 0x220   : > { %v7951_v11 = vsel %vm6080_vm2, 4294967295, %v7950_v11  ;;  %v2010_v35 = vsel %vm6080_vm2, %v1955_v25, 0.0  ;;  %v2019_v46 = vsel %vm6080_vm2, %v1959_v6, 0.0  ;;  %v2147_v36 = vld [vmem:[#allocation2 + $0x18] sm:$0xff]  ;;  %vm7963_vm4 = vmmov %vm7954_vm0 }
 0x221   : > { %7952 = vst [vmem:[#allocation14_spill] sm:$0xff] %v7951_v11  ;;  %v4703_v10 = vpack.c.bf16 %v2011_v14, %v2010_v35  ;;  %v4708_v19 = vpack.c.bf16 %v2020_v53, %v2019_v46  ;;  %v6143_v41 = vcombine.high %v2147_v36, %v2152_v12  ;;  %v6149_v26 = vcombine.low %v2147_v36, %v2152_v12  ;;  %vm7964_vm5 = vmmov %vm7954_vm0 }
 0x222   : > { %2708 = vrot.lane.b32.xlu1 %v5970_v0, %s4933_s18  ;;  %2474 = vrot.lane.b32.xlu0 %v5943_v51, %s4934_s23 }
 0x223   : > { %v6163_v47 = vld [vmem:[#allocation2 + $0x20] ss:$40 sps:$4 sm:$0xff]  }
 0x226   : > { %2632 = vrot.lane.b32.xlu1 %v5970_v0, %s4932_s15  ;;  %2476 = vrot.lane.b32.xlu0 %v5970_v0, %s4934_s23 }
 0x22a   : > { %2080 = vrot.lane.b32.xlu1 %v4706_v44, %s4942_s20  ;;  %2710 = vrot.lane.b32.xlu0 %v6022_v63, %s4933_s18 }
 0x22e   : > { %2268 = vrot.lane.b32.xlu1 %v6022_v63, %s4938_s16  ;;  %2634 = vrot.lane.b32.xlu0 %v6022_v63, %s4932_s15 }
 0x232   : > { %2546 = vrot.lane.b32.xlu1 %v5970_v0, %s4935_s24  ;;  %2548 = vrot.lane.b32.xlu0 %v6022_v63, %s4935_s24 }
 0x233   : > { %v6092_v18 = vpop.permute.xlu0 %2072 }
 0x234   : > { %v7836_v30 = vrot.slane %v6092_v18, 4  ;;  %v7970_v31 = vrot.slane %v6092_v18, 4 }
 0x236   : > { %2472 = vrot.lane.b32.xlu1 %v5886_v7, %s4934_s23  ;;  %2074 = vrot.lane.b32.xlu0 %v4703_v10, %s4942_s20 }
 0x237   : > { %v6099_v40 = vpop.permute.xlu1 %2082  ;;  %v6101_v21 = vpop.permute.xlu0 %2078 }
 0x238   : > { %v2092_v17 = vrot.slane %v6101_v21, 4 }
 0x23a   : > { %v2106_v13 = vsel %vm7884_vm7, %v2092_v17, %v6101_v21  ;;  %2470 = vrot.lane.b32.xlu1 %v5890_v16, %s4934_s23  ;;  %2784 = vrot.lane.b32.xlu0 %v5970_v0, %s4931_s14 }
 0x23b   : > { %2133 = vst.msk [vmem:[#allocation2 + $0x78] sm:$0xff] %vm6037_vm1, %v2106_v13  ;;  %v2071_v22 = vpop.permute.xlu1 %2070 }
 0x23c   : > { %v2089_v34 = vrot.slane %v2071_v22, 4 }
 0x23e   : > { %v2099_v37 = vsel %vm7953_vm15, %v2088_v9, %v2089_v34  ;;  %v2101_v38 = vsel %vm7954_vm0, %v2089_v34, %v7836_v30  ;;  %2084 = vrot.lane.b32.xlu1 %v4708_v19, %s4942_s20  ;;  %2788 = vrot.lane.b32.xlu0 %v6120_v27, %s4931_s14  ;;  %v2154_v9 = vld [vmem:[#allocation2 + $0x50] sm:$0xff]  ;;  %vm7971_vm15 = vmmov %vm7954_vm0 }
 0x23f   : > { %v6133_v39 = vsel %vm7884_vm7, %v2099_v37, %v2071_v22  ;;  %v6137_v61 = vsel %vm7884_vm7, %v2101_v38, %v6092_v18 }
 0x242   : > { %2478 = vrot.lane.b32.xlu1 %v6022_v63, %s4934_s23  ;;  %2410 = vrot.lane.b32.xlu0 %v6120_v27, %s4937_s13  ;;  %v2159_v43 = vld [vmem:[#allocation2 + $0x78] sm:$0xff] }
 0x243   : > { %v6155_v45 = vcombine.high %v2154_v9, %v2159_v43  ;;  %v6161_v33 = vcombine.low %v2154_v9, %v2159_v43  ;;  %v2094_v9 = vrot.slane %v6099_v40, 4 }
 0x246   : > { %2786 = vrot.lane.b32.xlu1 %v6022_v63, %s4931_s14  ;;  %2414 = vrot.lane.b32.xlu0 %v6143_v41, %s4937_s13 }
 0x24a   : > { %2790 = vrot.lane.b32.xlu1 %v6149_v26, %s4931_s14  ;;  %2340 = vrot.lane.b32.xlu0 %v6120_v27, %s4936_s28 }
 0x24e   : > { %2412 = vrot.lane.b32.xlu1 %v6149_v26, %s4937_s13  ;;  %2800 = vrot.lane.b32.xlu0 %v6155_v45, %s4931_s14 }
 0x252   : > { %2416 = vrot.lane.b32.xlu1 %v6163_v47, %s4937_s13  ;;  %2798 = vrot.lane.b32.xlu0 %v6161_v33, %s4931_s14 }
 0x254   : > { %v6169_v48 = vpop.permute.xlu1 %2402 }
 0x256   : > { %2342 = vrot.lane.b32.xlu1 %v6149_v26, %s4936_s28  ;;  %2350 = vrot.lane.b32.xlu0 %v6155_v45, %s4936_s28 }
 0x258   : > { %v6175_v49 = vpop.permute.xlu1 %2400 }
 0x25a   : > { %2420 = vrot.lane.b32.xlu1 %v6155_v45, %s4937_s13  ;;  %2348 = vrot.lane.b32.xlu0 %v6161_v33, %s4936_s28 }
 0x25c   : > { %v6181_v50 = vpop.permute.xlu1 %2332 }
 0x25e   : > { %2418 = vrot.lane.b32.xlu1 %v6161_v33, %s4937_s13  ;;  %2280 = vrot.lane.b32.xlu0 %v6155_v45, %s4938_s16 }
 0x260   : > { %v6187_v29 = vpop.permute.xlu1 %2330 }
 0x262   : > { %2278 = vrot.lane.b32.xlu0 %v6161_v33, %s4938_s16 }
 0x264   : > { %v6191_v52 = vpop.permute.xlu1 %2262  ;;  %v2077_v55 = vpop.permute.xlu0 %2076 }
 0x266   : > { %2724 = vrot.lane.b32.xlu0 %v6155_v45, %s4933_s18 }
 0x268   : > { %v6195_v42 = vpop.permute.xlu1 %2260  ;;  %v6197_v56 = vpop.permute.xlu0 %2780 }
 0x26a   : > { %2722 = vrot.lane.b32.xlu0 %v6161_v33, %s4933_s18 }
 0x26c   : > { %v6201_v3 = vpop.permute.xlu1 %2704  ;;  %v6203_v44 = vpop.permute.xlu0 %2778 }
 0x26e   : > { %2648 = vrot.lane.b32.xlu0 %v6155_v45, %s4932_s15 }
 0x270   : > { %v6207_v58 = vpop.permute.xlu1 %2702  ;;  %v6209_v59 = vpop.permute.xlu0 %2404 }
 0x272   : > { %2646 = vrot.lane.b32.xlu0 %v6161_v33, %s4932_s15 }
 0x274   : > { %v6213_v32 = vpop.permute.xlu1 %2628  ;;  %v6215_v60 = vpop.permute.xlu0 %2334 }
 0x276   : > { %2560 = vrot.lane.b32.xlu0 %v6155_v45, %s4935_s24 }
 0x278   : > { %v6219_v62 = vpop.permute.xlu1 %2626  ;;  %v6221_v4 = vpop.permute.xlu0 %2264 }
 0x279   : > { %7955 = vst [vmem:[#allocation15_spill] sm:$0xff] %v6219_v62 }
 0x27a   : > { %2558 = vrot.lane.b32.xlu0 %v6161_v33, %s4935_s24 }
 0x27c   : > { %v6225_v25 = vpop.permute.xlu1 %2542  ;;  %v6227_v14 = vpop.permute.xlu0 %2266 }
 0x27d   : > { %7956 = vst [vmem:[#allocation16_spill] sm:$0xff] %v6225_v25 }
 0x27e   : > { %2490 = vrot.lane.b32.xlu0 %v6155_v45, %s4934_s23 }
 0x280   : > { %v6231_v15 = vpop.permute.xlu1 %2540  ;;  %v6233_v35 = vpop.permute.xlu0 %2706 }
 0x281   : > { %7957 = vst [vmem:[#allocation17_spill] sm:$0xff] %v6231_v15 }
 0x282   : > { %2488 = vrot.lane.b32.xlu0 %v6161_v33, %s4934_s23 }
 0x284   : > { %v2087_v10 = vpop.permute.xlu1 %2086  ;;  %v6237_v20 = vpop.permute.xlu0 %2630 }
 0x288   : > { %v6239_v6 = vpop.permute.xlu1 %2782  ;;  %v6241_v53 = vpop.permute.xlu0 %2544 }
 0x289   : > { %7958 = vst [vmem:[#allocation18_spill] sm:$0xff] %v6241_v53 }
 0x28c   : > { %v6243_v13 = vpop.permute.xlu1 %2406  ;;  %v6245_v46 = vpop.permute.xlu0 %2408 }
 0x290   : > { %v6247_v22 = vpop.permute.xlu1 %2336  ;;  %v6249_v19 = vpop.permute.xlu0 %2338 }
 0x294   : > { %v6251_v34 = vpop.permute.xlu1 %2708  ;;  %v6253_v37 = vpop.permute.xlu0 %2474 }
 0x295   : > { %7959 = vst [vmem:[#allocation19_spill] sm:$0xff] %v6251_v34  ;;  %7960 = vst [vmem:[#allocation20_spill] sm:$0xff] %v6253_v37 }
 0x298   : > { %v6255_v38 = vpop.permute.xlu1 %2632  ;;  %v6257_v36 = vpop.permute.xlu0 %2476 }
 0x299   : > { %7961 = vst [vmem:[#allocation21_spill] sm:$0xff] %v6255_v38  ;;  %7962 = vst [vmem:[#allocation22_spill] sm:$0xff] %v6257_v36 }
 0x29c   : > { %v2081_v12 = vpop.permute.xlu1 %2080  ;;  %v6259_v43 = vpop.permute.xlu0 %2710 }
 0x29d   : > { %v2093_v2 = vrot.slane %v2081_v12, 4 }
 0x29f   : > { %v2107_v30 = vsel %vm7963_vm4, %v2092_v17, %v2093_v2  ;;  %v2109_v23 = vsel %vm7964_vm5, %v2093_v2, %v2094_v9  ;;  %vm7989_vm4 = vcmask 769024   ;;  %vm7990_vm5 = vcmask 474112  }
 0x2a0   : > { %v2108_v1 = vsel %vm7884_vm7, %v2107_v30, %v2081_v12  ;;  %v2110_v57 = vsel %vm7884_vm7, %v2109_v23, %v6099_v40  ;;  %v6269_v11 = vpop.permute.xlu1 %2268  ;;  %v6271_v8 = vpop.permute.xlu0 %2634  ;;  %v2819_v62 = vsel %vm7990_vm5, %v6197_v56, %v6239_v6 }
 0x2a1   : > { %7965 = vst [vmem:[#allocation23_spill] sm:$0xff] %v6271_v8  ;;  %v6274_v5 = vcombine.low %v6133_v39, %v2108_v1  ;;  %v6285_v17 = vcombine.high %v6133_v39, %v2108_v1  ;;  %v6288_v23 = vcombine.low %v6137_v61, %v2110_v57  ;;  %v6489_v8 = vld [vmem:[#allocation2 + $0x20] ss:$40 sps:$4 sm:$0xff]  }
 0x2a3   : > { %2802 = vrot.lane.b32.xlu1 %v6274_v5, %s4931_s14  ;;  %2422 = vrot.lane.b32.xlu0 %v6274_v5, %s4937_s13  ;;  %7968 = vst [vmem:[#allocation26_spill] sm:$0xff] %v6288_v23 }
 0x2a4   : > { %v6280_v21 = vpop.permute.xlu1 %2546  ;;  %v6282_v2 = vpop.permute.xlu0 %2548 }
 0x2a5   : > { %7966 = vst [vmem:[#allocation24_spill] sm:$0xff] %v6280_v21  ;;  %7967 = vst [vmem:[#allocation25_spill] sm:$0xff] %v6282_v2 }
 0x2a7   : > { %2426 = vrot.lane.b32.xlu1 %v6288_v23, %s4937_s13  ;;  %2424 = vrot.lane.b32.xlu0 %v6285_v17, %s4937_s13 }
 0x2a8   : > { %v6294_v40 = vpop.permute.xlu1 %2472  ;;  %v2075_v30 = vpop.permute.xlu0 %2074 }
 0x2a9   : > { %7969 = vst [vmem:[#allocation27_spill] sm:$0xff] %v6294_v40  ;;  %v2091_v12 = vrot.slane %v2075_v30, 4 }
 0x2ab   : > { %v2103_v24 = vsel %vm7971_vm15, %v7970_v31, %v2091_v12  ;;  %v2105_v1 = vsel %vm7884_vm7, %v2091_v12, %v2077_v55  ;;  %2352 = vrot.lane.b32.xlu1 %v6274_v5, %s4936_s28  ;;  %2354 = vrot.lane.b32.xlu0 %v6285_v17, %s4936_s28  ;;  %vm7991_vm15 = vmmov %vm7990_vm5 }
 0x2ac   : > { %v6305_v39 = vsel %vm7884_vm7, %v2103_v24, %v2075_v30  ;;  %2132 = vst.msk [vmem:[#allocation2 + $0x70] sm:$0xf] %vm7883_vm11, %v2105_v1  ;;  %v6308_v28 = vpop.permute.xlu1 %2470  ;;  %v6310_v54 = vpop.permute.xlu0 %2784 }
 0x2ad   : > { %7972 = vst [vmem:[#allocation28_spill] sm:$0xff] %v6308_v28  ;;  %7973 = vst [vmem:[#allocation29_spill] sm:$0xff] %v6310_v54 }
 0x2af   : > { %2356 = vrot.lane.b32.xlu1 %v6288_v23, %s4936_s28  ;;  %2284 = vrot.lane.b32.xlu0 %v6285_v17, %s4938_s16 }
 0x2b0   : > { %v2085_v31 = vpop.permute.xlu1 %2084  ;;  %v6316_v18 = vpop.permute.xlu0 %2788 }
 0x2b1   : > { %7974 = vst [vmem:[#allocation30_spill] sm:$0xff] %v6316_v18  ;;  %v2095_v55 = vrot.slane %v2085_v31, 4 }
 0x2b3   : > { %v2111_v12 = vsel %vm7954_vm0, %v2094_v9, %v2095_v55  ;;  %v2113_v24 = vsel %vm7884_vm7, %v2095_v55, %v2087_v10  ;;  %2282 = vrot.lane.b32.xlu1 %v6274_v5, %s4938_s16  ;;  %2728 = vrot.lane.b32.xlu0 %v6285_v17, %s4933_s18  ;;  %v6351_v55 = vcombine.high %v6137_v61, %v2110_v57  ;;  %v6378_v61 = vld [vmem:[%s7817_s6 + $0x4] ss:$12 sps:$4 sm:$0xff]   ;;  %vm7992_vm0 = vmmov %vm7989_vm4 }
 0x2b4   : > { %v2112_v30 = vsel %vm7884_vm7, %v2111_v12, %v2085_v31  ;;  %2137 = vst.msk [vmem:[#allocation2 + $0x98] sm:$0xf] %vm7883_vm11, %v2113_v24  ;;  %v6326_v1 = vpop.permute.xlu0 %2410  ;;  %2915 = vmatprep.mubr.bf16.mxu1 %v6378_v61 }
 0x2b5   : > { %7975 = vst [vmem:[#allocation31_spill] sm:$0xff] %v6326_v1  ;;  %v6406_v1 = vpop.permute.xlu1 %2478 }
 0x2b6   : > { %7978 = vst [vmem:[#allocation34_spill] sm:$0xff] %v6406_v1  ;;  %v6427_v1 = vcombine.low %v6305_v39, %v2112_v30 }
 0x2b7   : > { %2286 = vrot.lane.b32.xlu1 %v6288_v23, %s4938_s16  ;;  %2652 = vrot.lane.b32.xlu0 %v6285_v17, %s4932_s15 }
 0x2b8   : > { %v6332_v9 = vpop.permute.xlu0 %2414 }
 0x2b9   : > { %7976 = vst [vmem:[#allocation32_spill] sm:$0xff] %v6332_v9  ;;  %v6418_v54 = vpop.permute.xlu1 %2786 }
 0x2ba   : > { %7979 = vst [vmem:[#allocation35_spill] sm:$0xff] %v6418_v54 }
 0x2bb   : > { %2726 = vrot.lane.b32.xlu1 %v6274_v5, %s4933_s18  ;;  %2564 = vrot.lane.b32.xlu0 %v6285_v17, %s4935_s24  ;;  %v6475_v37 = vld [vmem:[#allocation2 + $0x70] ss:$40 sps:$4 sm:$0xff]  }
 0x2bc   : > { %v6338_v10 = vpop.permute.xlu0 %2340 }
 0x2bd   : > { %7977 = vst [vmem:[#allocation33_spill] sm:$0xff] %v6338_v10  ;;  %v6392_v10 = vcombine.high %v6305_v39, %v2112_v30  ;;  %v6429_v28 = vpop.permute.xlu1 %2790 }
 0x2be   : > { %7980 = vst [vmem:[#allocation36_spill] sm:$0xff] %v6429_v28 }
 0x2bf   : > { %2730 = vrot.lane.b32.xlu1 %v6288_v23, %s4933_s18  ;;  %2494 = vrot.lane.b32.xlu0 %v6285_v17, %s4934_s23 }
 0x2c0   : > { %v6344_v31 = vpop.permute.xlu0 %2800 }
 0x2c1   : > { %v6441_v54 = vpop.permute.xlu1 %2412 }
 0x2c2   : > { %7981 = vst [vmem:[#allocation37_spill] sm:$0xff] %v6441_v54 }
 0x2c3   : > { %2650 = vrot.lane.b32.xlu1 %v6274_v5, %s4932_s15  ;;  %2804 = vrot.lane.b32.xlu0 %v6285_v17, %s4931_s14 }
 0x2c4   : > { %v6357_v12 = vpop.permute.xlu0 %2798 }
 0x2c5   : > { %v6449_v30 = vpop.permute.xlu1 %2416 }
 0x2c6   : > { %7982 = vst [vmem:[#allocation38_spill] sm:$0xff] %v6449_v30 }
 0x2c7   : > { %2654 = vrot.lane.b32.xlu1 %v6288_v23, %s4932_s15  ;;  %2808 = vrot.lane.b32.xlu0 %v6351_v55, %s4931_s14 }
 0x2c8   : > { %v6363_v24 = vpop.permute.xlu0 %2350 }
 0x2c9   : > { %v6461_v54 = vpop.permute.xlu1 %2342 }
 0x2ca   : > { %7984 = vst [vmem:[#allocation40_spill] sm:$0xff] %v6461_v54 }
 0x2cb   : > { %2562 = vrot.lane.b32.xlu1 %v6274_v5, %s4935_s24  ;;  %2428 = vrot.lane.b32.xlu0 %v6351_v55, %s4937_s13 }
 0x2cc   : > { %v6373_v57 = vpop.permute.xlu0 %2348 }
 0x2cd   : > { %v2421_v30 = vpop.permute.xlu1 %2420 }
 0x2cf   : > { %2566 = vrot.lane.b32.xlu1 %v6288_v23, %s4935_s24  ;;  %2358 = vrot.lane.b32.xlu0 %v6351_v55, %s4936_s28 }
 0x2d0   : > { %v6385_v63 = vpop.permute.xlu0 %2280 }
 0x2d1   : > { %v2419_v54 = vpop.permute.xlu1 %2418 }
 0x2d3   : > { %2492 = vrot.lane.b32.xlu1 %v6274_v5, %s4934_s23  ;;  %2288 = vrot.lane.b32.xlu0 %v6351_v55, %s4938_s16 }
 0x2d4   : > { %v6398_v9 = vpop.permute.xlu0 %2278 }
 0x2d7   : > { %2496 = vrot.lane.b32.xlu1 %v6288_v23, %s4934_s23  ;;  %2344 = vrot.lane.b32.xlu0 %v6143_v41, %s4936_s28 }
 0x2d8   : > { %v6408_v18 = vpop.permute.xlu0 %2724 }
 0x2db   : > { %2806 = vrot.lane.b32.xlu1 %v6288_v23, %s4931_s14  ;;  %2270 = vrot.lane.b32.xlu0 %v6120_v27, %s4938_s16  ;;  %v6404_v23 = vld [vmem:[#allocation2 + $0x70] ss:$40 sps:$4 sm:$0xff]  }
 0x2dc   : > { %v6420_v36 = vpop.permute.xlu0 %2722 }
 0x2df   : > { %2346 = vrot.lane.b32.xlu1 %v6163_v47, %s4936_s28  ;;  %2432 = vrot.lane.b32.xlu0 %v6392_v10, %s4937_s13 }
 0x2e0   : > { %v6431_v21 = vpop.permute.xlu0 %2648 }
 0x2e3   : > { %2272 = vrot.lane.b32.xlu1 %v6149_v26, %s4938_s16  ;;  %2362 = vrot.lane.b32.xlu0 %v6392_v10, %s4936_s28 }
 0x2e4   : > { %v6443_v39 = vpop.permute.xlu0 %2646 }
 0x2e7   : > { %2434 = vrot.lane.b32.xlu1 %v6404_v23, %s4937_s13  ;;  %2292 = vrot.lane.b32.xlu0 %v6392_v10, %s4938_s16 }
 0x2e8   : > { %v6451_v28 = vpop.permute.xlu0 %2560 }
 0x2e9   : > { %7983 = vst [vmem:[#allocation39_spill] sm:$0xff] %v6451_v28 }
 0x2eb   : > { %2364 = vrot.lane.b32.xlu1 %v6404_v23, %s4936_s28  ;;  %2274 = vrot.lane.b32.xlu0 %v6143_v41, %s4938_s16 }
 0x2ec   : > { %v6463_v2 = vpop.permute.xlu0 %2558 }
 0x2ed   : > { %7985 = vst [vmem:[#allocation41_spill] sm:$0xff] %v6463_v2  ;;  %v2444_v2 = vsel %vm7992_vm0, %v2419_v54, %v2421_v30 }
 0x2ef   : > { %2294 = vrot.lane.b32.xlu1 %v6404_v23, %s4938_s16  ;;  %2732 = vrot.lane.b32.xlu0 %v6351_v55, %s4933_s18 }
 0x2f0   : > { %v6469_v40 = vpop.permute.xlu0 %2490 }
 0x2f1   : > { %7986 = vst [vmem:[#allocation42_spill] sm:$0xff] %v6469_v40 }
 0x2f3   : > { %2712 = vrot.lane.b32.xlu0 %v6120_v27, %s4933_s18  ;;  %2810 = vrot.lane.b32.xlu1 %v6427_v1, %s4931_s14 }
 0x2f4   : > { %v6481_v15 = vpop.permute.xlu0 %2488 }
 0x2f5   : > { %7987 = vst [vmem:[#allocation43_spill] sm:$0xff] %v6481_v15  ;;  %v2827_v15 = vsel %vm7991_vm15, %v6357_v12, %v6344_v31  ;;  %vm7994_vm15 = vmmov %vm7992_vm0 }
 0x2f6   : > { %v2436_v54 = vsel %vm7994_vm15, %v6175_v49, %v6169_v48  ;;  %vm7996_vm15 = vcmask 1031168  }
 0x2f7   : > { %2736 = vrot.lane.b32.xlu0 %v6392_v10, %s4933_s18  ;;  %2430 = vrot.lane.b32.xlu1 %v6427_v1, %s4937_s13 }
 0x2fb   : > { %2656 = vrot.lane.b32.xlu0 %v6351_v55, %s4932_s15  ;;  %2360 = vrot.lane.b32.xlu1 %v6427_v1, %s4936_s28 }
 0x2ff   : > { %2716 = vrot.lane.b32.xlu0 %v6143_v41, %s4933_s18  ;;  %2290 = vrot.lane.b32.xlu1 %v6427_v1, %s4938_s16 }
 0x303   : > { %2636 = vrot.lane.b32.xlu0 %v6120_v27, %s4932_s15  ;;  %2276 = vrot.lane.b32.xlu1 %v6163_v47, %s4938_s16 }
 0x307   : > { %2660 = vrot.lane.b32.xlu0 %v6392_v10, %s4932_s15  ;;  %2734 = vrot.lane.b32.xlu1 %v6427_v1, %s4933_s18 }
 0x30b   : > { %2568 = vrot.lane.b32.xlu0 %v6351_v55, %s4935_s24  ;;  %2714 = vrot.lane.b32.xlu1 %v6149_v26, %s4933_s18 }
 0x30f   : > { %2640 = vrot.lane.b32.xlu0 %v6143_v41, %s4932_s15  ;;  %2738 = vrot.lane.b32.xlu1 %v6475_v37, %s4933_s18 }
 0x313   : > { %2550 = vrot.lane.b32.xlu0 %v6120_v27, %s4935_s24  ;;  %2658 = vrot.lane.b32.xlu1 %v6427_v1, %s4932_s15 }
 0x315   : > { %v6487_v40 = vpop.permute.xlu1 %2802  ;;  %v2423_v38 = vpop.permute.xlu0 %2422 }
 0x316   : > { %7988 = vst [vmem:[#allocation44_spill] sm:$0xff] %v6487_v40  ;;  %v2445_v25 = vsel %vm7989_vm4, %v2421_v30, %v2423_v38  ;;  %v2828_v53 = vsel %vm7990_vm5, %v6344_v31, %v6487_v40  ;;  %vm7993_vm4 = vmmov %vm7992_vm0 }
 0x317   : > { %2572 = vrot.lane.b32.xlu0 %v6392_v10, %s4935_s24  ;;  %2718 = vrot.lane.b32.xlu1 %v6489_v8, %s4933_s18  ;;  %v2437_v40 = vsel %vm7993_vm4, %v6169_v48, %v6209_v59  ;;  %vm7995_vm0 = vmmov %vm7990_vm5  ;;  %vm2879_vm5 = vcmask 261120  }
 0x318   : > { %2883 = vmatprep.subr.bf16.mxu1 %v2445_v25  ;;  %2938 = vmatprep.subr.bf16.mxu0 %v2828_v53  ;;  %v2818_v25 = vsel %vm7995_vm0, %v6203_v44, %v6197_v56  ;;  %vm7997_vm0 = vmmov %vm7996_vm15 }
 0x319   : > { %2884 = vmatpush1.bf16.msra.mxu1 %v2444_v2  ;;  %2939 = vmatpush1.bf16.msra.mxu0 %v2827_v15  ;;  %v6503_v28 = vpop.permute.xlu1 %2426  ;;  %v2425_v34 = vpop.permute.xlu0 %2424  ;;  %v6524_v15 = vld [vmem:[%s7817_s6 + $0x8] ss:$12 sps:$4 sm:$0xff]   ;;  %v2374_v49 = vsel %vm7997_vm0, %v6373_v57, %v6363_v24  ;;  %vm7999_vm11 = vmmov %vm7993_vm4 }
 0x31a   : > { %2885 = vmatprep.subr.bf16.mxu1 %v2437_v40  ;;  %2940 = vmatprep.subr.bf16.mxu0 %v2819_v62  ;;  %v2447_v53 = vsel %vm7993_vm4, %v2425_v34, %v6503_v28  ;;  %v2446_v56 = vsel %vm7993_vm4, %v2423_v38, %v2425_v34  ;;  %v2439_v31 = vsel %vm7999_vm11, %v6243_v13, %v6245_v46  ;;  %vm8000_vm11 = vmmov %vm7997_vm0 }
 0x31b   : > { %2638 = vrot.lane.b32.xlu1 %v6149_v26, %s4932_s15  ;;  %2498 = vrot.lane.b32.xlu0 %v6351_v55, %s4934_s23  ;;  %v2366_v34 = vsel %vm7997_vm0, %v6187_v29, %v6181_v50  ;;  %v2438_v38 = vsel %vm7993_vm4, %v6209_v59, %v6243_v13  ;;  %vm8003_vm4 = vmmov %vm8000_vm11 }
 0x31d   : > { %2886 = vmatpush1.bf16.msra.mxu1 %v2436_v54  ;;  %2941 = vmatpush1.bf16.msra.mxu0 %v2818_v25  ;;  %v2353_v62 = vpop.permute.xlu1 %2352  ;;  %v2355_v2 = vpop.permute.xlu0 %2354 }
 0x31e   : > { %2969 = vmatprep.subr.bf16.mxu0 %v2447_v53  ;;  %v2375_v48 = vsel %vm7996_vm15, %v6363_v24, %v2353_v62  ;;  %vm7998_vm15 = vmmov %vm7997_vm0  ;;  %v2376_v29 = vsel %vm8003_vm4, %v2353_v62, %v2355_v2 }
 0x31f   : > { %2662 = vrot.lane.b32.xlu1 %v6475_v37, %s4932_s15  ;;  %2554 = vrot.lane.b32.xlu0 %v6143_v41, %s4935_s24  ;;  %v2367_v40 = vsel %vm7998_vm15, %v6181_v50, %v6215_v60  ;;  %vm8001_vm15 = vcmask 1039360  }
 0x320   : > { %2887 = vmatprep.subr.bf16.mxu1 %v2375_v48  ;;  %4645 = vmatmul.mubr.msk.bf16.vlgmr.msra.gmra.mxu0 %vm2879_vm5, %v6524_v15  ;;  %vm8002_vm0 = vmmov %vm8001_vm15 }
 0x321   : > { %2888 = vmatpush1.bf16.msra.mxu1 %v2374_v49  ;;  %2970 = vmatpush1.bf16.msra.mxu0 %v2446_v56  ;;  %v6540_v44 = vpop.permute.xlu1 %2356  ;;  %v2285_v12 = vpop.permute.xlu0 %2284  ;;  %v2304_v50 = vsel %vm8002_vm0, %v6398_v9, %v6385_v63  ;;  %v2368_v9 = vsel %vm8003_vm4, %v6215_v60, %v6247_v22  ;;  %v2299_v60 = vsel %vm8002_vm0, %v6227_v14, %v6269_v11 }
 0x322   : > { %2889 = vmatprep.subr.bf16.mxu1 %v2367_v40  ;;  %2971 = vmatprep.subr.bf16.mxu0 %v2439_v31  ;;  %v2377_v57 = vsel %vm8000_vm11, %v2355_v2, %v6540_v44  ;;  %vm8004_vm11 = vmmov %vm8002_vm0 }
 0x323   : > { %2570 = vrot.lane.b32.xlu1 %v6427_v1, %s4935_s24  ;;  %2480 = vrot.lane.b32.xlu0 %v6120_v27, %s4934_s23  ;;  %v2297_v13 = vsel %vm8004_vm11, %v6191_v52, %v6221_v4  ;;  %vm8006_vm11 = vmmov %vm8002_vm0 }
 0x324   : > { %3001 = vmatprep.mubr.bf16.mxu0 %v6378_v61 }
 0x325   : > { %2890 = vmatpush1.bf16.msra.mxu1 %v2366_v34  ;;  %2972 = vmatpush1.bf16.msra.mxu0 %v2438_v38  ;;  %v2283_v24 = vpop.permute.xlu1 %2282  ;;  %v6561_v30 = vpop.permute.xlu0 %2728  ;;  %v8017_v34 = vld [vmem:[#allocation19_spill] sm:$0xff] }
 0x326   : > { %2973 = vmatprep.subr.bf16.mxu0 %v2377_v57  ;;  %v2305_v54 = vsel %vm8001_vm15, %v6385_v63, %v2283_v24  ;;  %vm8005_vm15 = vmmov %vm8003_vm4  ;;  %v2296_v63 = vsel %vm8002_vm0, %v6195_v42, %v6191_v52 }
 0x327   : > { %2642 = vrot.lane.b32.xlu1 %v6489_v8, %s4932_s15  ;;  %2502 = vrot.lane.b32.xlu0 %v6392_v10, %s4934_s23  ;;  %v2369_v25 = vsel %vm8005_vm15, %v6247_v22, %v6249_v19  ;;  %vm8007_vm15 = vmmov %vm8002_vm0 }
 0x328   : > { %2891 = vmatprep.subr.bf16.mxu1 %v2305_v54  ;;  %v2306_v52 = vsel %vm8007_vm15, %v2283_v24, %v2285_v12  ;;  %vm8008_vm4 = vmmov %vm8002_vm0  ;;  %v8020_v54 = vld [vmem:[#allocation39_spill] sm:$0xff] }
 0x329   : > { %2892 = vmatpush1.bf16.msra.mxu1 %v2304_v50  ;;  %2974 = vmatpush1.bf16.msra.mxu0 %v2376_v29  ;;  %v6573_v59 = vpop.permute.xlu1 %2286  ;;  %v6581_v53 = vpop.permute.xlu0 %2652 }
 0x32a   : > { %2893 = vmatprep.subr.bf16.mxu1 %v2297_v13  ;;  %2975 = vmatprep.subr.bf16.mxu0 %v2369_v25  ;;  %v2307_v2 = vsel %vm8006_vm11, %v2285_v12, %v6573_v59  ;;  %vm8009_vm11 = vcmask 482304  }
 0x32b   : > { %2552 = vrot.lane.b32.xlu1 %v6149_v26, %s4935_s24  ;;  %2812 = vrot.lane.b32.xlu0 %v6392_v10, %s4931_s14  ;;  %vm8010_vm15 = vmmov %vm8009_vm11 }
 0x32c   : > { %vm8011_vm0 = vmmov %vm8009_vm11 }
 0x32d   : > { %2894 = vmatpush1.bf16.msra.mxu1 %v2296_v63  ;;  %2976 = vmatpush1.bf16.msra.mxu0 %v2368_v9  ;;  %v2727_v62 = vpop.permute.xlu1 %2726  ;;  %v6595_v48 = vpop.permute.xlu0 %2564  ;;  %v8026_v63 = vld [vmem:[#allocation18_spill] sm:$0xff]  ;;  %v8027_v9 = vld [vmem:[#allocation16_spill] sm:$0xff] }
 0x32e   : > { %2895 = vmatprep.subr.bf16.mxu1 %v6155_v45  ;;  %2977 = vmatprep.subr.bf16.mxu0 %v2307_v2  ;;  %v2298_v45 = vsel %vm8008_vm4, %v6221_v4, %v6227_v14  ;;  %v2752_v49 = vsel %vm8009_vm11, %v6408_v18, %v2727_v62  ;;  %v2743_v14 = vsel %vm8011_vm0, %v6201_v3, %v6233_v35  ;;  %vm8012_vm4 = vmmov %vm8011_vm0  ;;  %vm8013_vm11 = vcmask 490496   ;;  %v8029_v2 = vld [vmem:[#allocation23_spill] sm:$0xff] }
 0x32f   : > { %2574 = vrot.lane.b32.xlu1 %v6404_v23, %s4935_s24  ;;  %2484 = vrot.lane.b32.xlu0 %v6143_v41, %s4934_s23  ;;  %v2744_v57 = vsel %vm8012_vm4, %v6233_v35, %v8017_v34 }
 0x331   : > { %2896 = vmatpush1.bf16.msra.mxu1 %v6161_v33  ;;  %2978 = vmatpush1.bf16.msra.mxu0 %v2306_v52  ;;  %v6604_v42 = vpop.permute.xlu1 %2730  ;;  %v6609_v22 = vpop.permute.xlu0 %2494  ;;  %v8030_v52 = vld [vmem:[#allocation21_spill] sm:$0xff] }
 0x332   : > { %2897 = vmatprep.subr.bf16.mxu1 %v5886_v7  ;;  %2979 = vmatprep.subr.bf16.mxu0 %v2299_v60  ;;  %v4898_v7 = vld [vmem:[#allocation2 + $0x74] ss:$40 sps:$4 sm:$0xff]  }
 0x333   : > { %2500 = vrot.lane.b32.xlu1 %v6427_v1, %s4934_s23  ;;  %2792 = vrot.lane.b32.xlu0 %v6143_v41, %s4931_s14 }
 0x335   : > { %2898 = vmatpush1.bf16.msra.mxu1 %v5890_v16  ;;  %2980 = vmatpush1.bf16.msra.mxu0 %v2298_v45  ;;  %v2651_v33 = vpop.permute.xlu1 %2650  ;;  %v6622_v56 = vpop.permute.xlu0 %2804  ;;  %v2751_v16 = vsel %vm8010_vm15, %v6420_v36, %v6408_v18  ;;  %vm8014_vm15 = vmmov %vm8011_vm0 }
 0x336   : > { %2899 = vmatprep.subr.bf16.mxu1 %v2752_v49  ;;  %2981 = vmatprep.subr.bf16.mxu0 %v6285_v17  ;;  %v2676_v17 = vsel %vm8013_vm11, %v6431_v21, %v2651_v33  ;;  %vm8015_vm0 = vmmov %vm8013_vm11 }
 0x337   : > { %2556 = vrot.lane.b32.xlu1 %v6163_v47, %s4935_s24  ;;  %2740 = vrot.lane.b32.xlu0 %v4898_v7, %s4933_s18  ;;  %vm8016_vm11 = vmmov %vm8015_vm0 }
 0x338   : > { %v2667_v12 = vsel %vm8016_vm11, %v6213_v32, %v6237_v20  ;;  %vm8021_vm11 = vcmask 752640  }
 0x339   : > { %2900 = vmatpush2.bf16.msra.mxu1 %v2751_v16  ;;  %2982 = vmatpush1.bf16.msra.mxu0 %v6274_v5  ;;  %v6632_v4 = vpop.permute.xlu1 %2654  ;;  %v6637_v40 = vpop.permute.xlu0 %2808  ;;  %v2742_v5 = vsel %vm8012_vm4, %v6207_v58, %v6201_v3  ;;  %v2753_v3 = vsel %vm8012_vm4, %v2727_v62, %v6561_v30  ;;  %v2142_v58 = vld [vmem:[%s7818_s7] sm:$0xff] }
 0x33a   : > { %2901 = vmatprep.subr.bf16.mxu1 %v2743_v14  ;;  %2983 = vmatprep.subr.bf16.mxu0 %v5970_v0  ;;  %v2754_v0 = vsel %vm8014_vm15, %v6561_v30, %v6604_v42  ;;  %vm8018_vm15 = vmmov %vm8012_vm4 }
 0x33b   : > { %2482 = vrot.lane.b32.xlu1 %v6149_v26, %s4934_s23  ;;  %2664 = vrot.lane.b32.xlu0 %v4898_v7, %s4932_s15  ;;  %v2745_v38 = vsel %vm8018_vm15, %v8017_v34, %v6259_v43  ;;  %vm8022_vm15 = vmmov %vm8015_vm0  ;;  %v8042_v34 = vld [vmem:[#allocation25_spill] sm:$0xff] }
 0x33c   : > { %v2678_v29 = vsel %vm8022_vm15, %v6581_v53, %v6632_v4  ;;  %vm8025_vm4 = vmmov %vm8022_vm15 }
 0x33d   : > { %2902 = vmatpush2.bf16.msra.mxu1 %v2742_v5  ;;  %2984 = vmatpush1.bf16.msra.mxu0 %v5943_v51  ;;  %v2563_v36 = vpop.permute.xlu1 %2562  ;;  %v6652_v18 = vpop.permute.xlu0 %2428  ;;  %v2675_v51 = vsel %vm8015_vm0, %v6443_v39, %v6431_v21  ;;  %v8019_v39 = vld [vmem:[#allocation15_spill] sm:$0xff]  ;;  %v2677_v13 = vsel %vm8025_vm4, %v2651_v33, %v6581_v53  ;;  %vm8031_vm15 = vmmov %vm8025_vm4  ;;  %v8032_v53 = vld [vmem:[#allocation17_spill] sm:$0xff]  ;;  %v2668_v33 = vsel %vm8025_vm4, %v6237_v20, %v8030_v52 }
 0x33e   : > { %2903 = vmatprep.subr.bf16.mxu1 %v2676_v17  ;;  %2985 = vmatprep.subr.bf16.mxu0 %v2754_v0  ;;  %v2666_v24 = vsel %vm8015_vm0, %v8019_v39, %v6213_v32  ;;  %v2585_v50 = vsel %vm8021_vm11, %v8020_v54, %v2563_v36  ;;  %v8023_v32 = vld [vmem:[#allocation41_spill] sm:$0xff]  ;;  %vm8024_vm0 = vmmov %vm8021_vm11  ;;  %v2669_v60 = vsel %vm8031_vm15, %v8030_v52, %v8029_v2  ;;  %v4899_v5 = vld [vmem:[#allocation2 + $0x24] ss:$40 sps:$4 sm:$0xff]  }
 0x33f   : > { %2504 = vrot.lane.b32.xlu1 %v6404_v23, %s4934_s23  ;;  %2816 = vrot.lane.b32.xlu0 %v4898_v7, %s4931_s14  ;;  %v2584_v35 = vsel %vm8024_vm0, %v8023_v32, %v8020_v54  ;;  %vm8028_vm11 = vmmov %vm8024_vm0  ;;  %v2576_v45 = vsel %vm8024_vm0, %v8032_v53, %v8027_v9  ;;  %v8033_v7 = vld [vmem:[#allocation42_spill] sm:$0xff]  ;;  %v8036_v20 = vld [vmem:[#allocation43_spill] sm:$0xff] }
 0x340   : > { %v2577_v62 = vsel %vm8028_vm11, %v8027_v9, %v8026_v63  ;;  %vm8034_vm11 = vcmask 760832   ;;  %vm8035_vm15 = vmmov %vm8024_vm0  ;;  %v6750_v54 = vld [vmem:[%s7817_s6] ss:$12 sps:$4 sm:$0xff]  }
 0x341   : > { %2904 = vmatpush2.bf16.msra.mxu1 %v2675_v51  ;;  %2986 = vmatpush2.bf16.msra.mxu0 %v2753_v3  ;;  %v6665_v31 = vpop.permute.xlu1 %2566  ;;  %v6673_v21 = vpop.permute.xlu0 %2358  ;;  %vm8037_vm0 = vmmov %vm8034_vm11  ;;  %v8039_v3 = vld [vmem:[#allocation20_spill] sm:$0xff]  ;;  %v8051_v53 = vld [vmem:[#allocation22_spill] sm:$0xff] }
 0x342   : > { %2905 = vmatprep.subr.bf16.mxu1 %v2667_v12  ;;  %2987 = vmatprep.subr.bf16.mxu0 %v2745_v38  ;;  %v2587_v14 = vsel %vm8035_vm15, %v6595_v48, %v6665_v31  ;;  %v2514_v17 = vsel %vm8037_vm0, %v8036_v20, %v8033_v7  ;;  %vm8038_vm4 = vmmov %vm8035_vm15  ;;  %v8043_v38 = vld [vmem:[#allocation24_spill] sm:$0xff] }
 0x343   : > { %2814 = vrot.lane.b32.xlu1 %v6475_v37, %s4931_s14  ;;  %2856 = vperm.xlu0 %4873, %v2142_v58   ;;  %v2586_v0 = vsel %vm8038_vm4, %v2563_v36, %v6595_v48  ;;  %v8040_v58 = vld [vmem:[#allocation27_spill] sm:$0xff]  ;;  %vm8044_vm15 = vmmov %vm8038_vm4  ;;  %v8045_v48 = vld [vmem:[#allocation28_spill] sm:$0xff] }
 0x344   : > { %v2579_v39 = vsel %vm8044_vm15, %v8043_v38, %v8042_v34  ;;  %v2506_v36 = vsel %vm8037_vm0, %v8045_v48, %v8040_v58  ;;  %vm8047_vm15 = vcmask 474112  }
 0x345   : > { %2906 = vmatpush2.bf16.msra.mxu1 %v2666_v24  ;;  %2988 = vmatpush2.bf16.msra.mxu0 %v2744_v57  ;;  %v2493_v30 = vpop.permute.xlu1 %2492  ;;  %v6688_v37 = vpop.permute.xlu0 %2288  ;;  %v2578_v57 = vsel %vm8038_vm4, %v8026_v63, %v8043_v38  ;;  %v8048_v63 = vld [vmem:[#allocation44_spill] sm:$0xff]  ;;  %vm8049_vm4 = vmmov %vm8047_vm15 }
 0x346   : > { %2907 = vmatprep.subr.bf16.mxu1 %v2585_v50  ;;  %2989 = vmatprep.subr.bf16.mxu0 %v2678_v29  ;;  %v2515_v16 = vsel %vm8034_vm11, %v8033_v7, %v2493_v30  ;;  %vm8041_vm11 = vmmov %vm8037_vm0  ;;  %v2829_v9 = vsel %vm8049_vm4, %v8048_v63, %v6622_v56  ;;  %v8054_v7 = vld [vmem:[#allocation29_spill] sm:$0xff]  ;;  %v8058_v38 = vld [vmem:[#allocation36_spill] sm:$0xff] }
 0x347   : > { %2486 = vrot.lane.b32.xlu1 %v6163_v47, %s4934_s23  ;;  %v2507_v12 = vsel %vm8041_vm11, %v8040_v58, %v8039_v3  ;;  %vm8046_vm11 = vmmov %vm8037_vm0 }
 0x349   : > { %2908 = vmatpush2.bf16.msra.mxu1 %v2584_v35  ;;  %2990 = vmatpush2.bf16.msra.mxu0 %v2677_v13  ;;  %v6697_v25 = vpop.permute.xlu1 %2496  ;;  %v6705_v47 = vpop.permute.xlu0 %2344  ;;  %v2516_v13 = vsel %vm8037_vm0, %v2493_v30, %v6609_v22 }
 0x34a   : > { %2909 = vmatprep.subr.bf16.mxu1 %v2577_v62  ;;  %2991 = vmatprep.subr.bf16.mxu0 %v2669_v60  ;;  %v2517_v29 = vsel %vm8046_vm11, %v6609_v22, %v6697_v25  ;;  %v2143_v62 = vld [vmem:[%s7818_s7 + $0x8] sm:$0xff]  ;;  %v8050_v60 = vld [vmem:[#allocation34_spill] sm:$0xff]  ;;  %vm8052_vm11 = vmmov %vm8037_vm0 }
 0x34b   : > { %2794 = vrot.lane.b32.xlu1 %v6489_v8, %s4931_s14 }
 0x34d   : > { %2910 = vmatpush2.bf16.msra.mxu1 %v2576_v45  ;;  %2992 = vmatpush2.bf16.msra.mxu0 %v2668_v33  ;;  %v6715_v49 = vpop.permute.xlu1 %2806  ;;  %v6722_v8 = vpop.permute.xlu0 %2270  ;;  %v2509_v45 = vsel %vm8052_vm11, %v8051_v53, %v8050_v60  ;;  %v8053_v33 = vld [vmem:[#allocation35_spill] sm:$0xff]  ;;  %vm8056_vm11 = vmmov %vm8049_vm4 }
 0x34e   : > { %2911 = vmatprep.subr.bf16.mxu1 %v2515_v16  ;;  %2993 = vmatprep.subr.bf16.mxu0 %v2587_v14  ;;  %v2830_v32 = vsel %vm8047_vm15, %v6622_v56, %v6715_v49  ;;  %vm8055_vm15 = vmmov %vm8049_vm4  ;;  %v6782_v56 = vld [vmem:[#allocation3] sm:$0xff]  ;;  %v2508_v16 = vsel %vm8037_vm0, %v8039_v3, %v8051_v53  ;;  %v2820_v14 = vsel %vm8049_vm4, %v6239_v6, %v8054_v7 }
 0x34f   : > { %2720 = vrot.lane.b32.xlu1 %v4899_v5, %s4933_s18  ;;  %v2821_v22 = vsel %vm8055_vm15, %v8054_v7, %v8053_v33  ;;  %vm8057_vm15 = vmmov %vm8049_vm4  ;;  %v8072_v7 = vld [vmem:[#allocation32_spill] sm:$0xff] }
 0x350   : > { %vm8060_vm0 = vmmov %vm8049_vm4  ;;  %vm8061_vm4 = vcmask 769024  }
 0x351   : > { %2912 = vmatpush2.bf16.msra.mxu1 %v2514_v17  ;;  %2994 = vmatpush2.bf16.msra.mxu0 %v2586_v0  ;;  %v6730_v51 = vpop.permute.xlu1 %2346  ;;  %v6738_v24 = vpop.permute.xlu0 %2432 }
 0x352   : > { %2913 = vmatprep.subr.bf16.mxu1 %v2507_v12  ;;  %2995 = vmatprep.subr.bf16.mxu0 %v2579_v39  ;;  %v2831_v12 = vsel %vm8057_vm15, %v6715_v49, %v6637_v40  ;;  %v8059_v39 = vld [vmem:[#allocation30_spill] sm:$0xff]  ;;  %vm8063_vm15 = vmmov %vm8060_vm0  ;;  %v8064_v49 = vld [vmem:[#allocation37_spill] sm:$0xff] }
 0x353   : > { %2644 = vrot.lane.b32.xlu1 %v4899_v5, %s4932_s15  ;;  %v2823_v48 = vsel %vm8060_vm0, %v8059_v39, %v8058_v38  ;;  %vm8066_vm0 = vmmov %vm8061_vm4 }
 0x354   : > { %vm8067_vm7 = vmmov %vm8066_vm0 }
 0x355   : > { %2914 = vmatpush2.bf16.msra.mxu1 %v2506_v36  ;;  %2996 = vmatpush2.bf16.msra.mxu0 %v2578_v57  ;;  %v6752_v50 = vpop.permute.xlu1 %2272  ;;  %v6760_v35 = vpop.permute.xlu0 %2362 }
 0x356   : > { %2997 = vmatprep.subr.bf16.mxu0 %v2517_v29  ;;  %3024 = vmatprep.subr.bf16.mxu1 %v2830_v32 }
 0x357   : > { %2796 = vrot.lane.b32.xlu1 %v4899_v5, %s4931_s14 }
 0x358   : > { %2916 = vmatmul.mubr.bf16.vlgmr.msra.gmra.mxu1 %v6750_v54 }
 0x359   : > { %2998 = vmatpush2.bf16.msra.mxu0 %v2516_v13  ;;  %3025 = vmatpush1.bf16.msra.mxu1 %v2829_v9  ;;  %v6772_v52 = vpop.permute.xlu1 %2434  ;;  %v6780_v30 = vpop.permute.xlu0 %2292  ;;  %v8065_v13 = vld [vmem:[#allocation31_spill] sm:$0xff] }
 0x35a   : > { %2999 = vmatprep.subr.bf16.mxu0 %v2509_v45  ;;  %3026 = vmatprep.subr.bf16.mxu1 %v2821_v22  ;;  %v2441_v63 = vsel %vm8066_vm0, %v8065_v13, %v8064_v49  ;;  %v2451_v9 = vsel %vm8067_vm7, %v6738_v24, %v6772_v52  ;;  %vm8073_vm7 = vmmov %vm8066_vm0 }
 0x35b   : > { %2861 = vperm.xlu1 %4872, %v2143_v62   ;;  %3044 = vmatprep.mubr.bf16.mxu1 %v6782_v56 }
 0x35d   : > { %3000 = vmatpush2.bf16.msra.mxu0 %v2508_v16  ;;  %3027 = vmatpush1.bf16.msra.mxu1 %v2820_v14  ;;  %v6791_v5 = vpop.permute.xlu1 %2364  ;;  %v6793_v20 = vpop.permute.xlu0 %2274 }
 0x360   : > { %3002 = vmatmul.mubr.bf16.vlgmr.msra.gmra.mxu0 %v6750_v54  ;;  %4646 = vmatmul.mubr.msk.bf16.vlgmr.msra.gmra.mxu1 %vm2879_vm5, %v6524_v15 }
 0x361   : > { %v6798_v17 = vpop.permute.xlu1 %2294  ;;  %v6800_v0 = vpop.permute.xlu0 %2732  ;;  %3130 = vmatprep.mubr.bf16.mxu0 %v6782_v56  ;;  %3087 = vmatprep.mubr.bf16.mxu1 %v6378_v61 }
 0x365   : > { %v6804_v6 = vpop.permute.xlu1 %2810  ;;  %v6806_v3 = vpop.permute.xlu0 %2712 }
 0x366   : > { %v2832_v58 = vsel %vm8056_vm11, %v6637_v40, %v6804_v6  ;;  %vm8062_vm11 = vmmov %vm8061_vm4  ;;  %v2822_v40 = vsel %vm8063_vm15, %v8053_v33, %v8059_v39  ;;  %vm8070_vm15 = vcmask 1031168   ;;  %v8071_v33 = vld [vmem:[#allocation38_spill] sm:$0xff] }
 0x367   : > { %3110 = vmatprep.subr.bf16.mxu0 %v2832_v58  ;;  %v2448_v32 = vsel %vm8062_vm11, %v6503_v28, %v6652_v18  ;;  %vm8069_vm11 = vmmov %vm8066_vm0  ;;  %v2443_v22 = vsel %vm8073_vm7, %v8072_v7, %v8071_v33  ;;  %v8075_v58 = vld [vmem:[#allocation40_spill] sm:$0xff] }
 0x368   : > { %3111 = vmatpush1.bf16.msra.mxu0 %v2831_v12  ;;  %v8076_v12 = vld [vmem:[#allocation33_spill] sm:$0xff] }
 0x369   : > { %v2431_v36 = vpop.permute.xlu1 %2430  ;;  %3112 = vmatprep.subr.bf16.mxu0 %v2823_v48  ;;  %v6817_v57 = vpop.permute.xlu0 %2736 }
 0x36a   : > { %v2449_v29 = vsel %vm8061_vm4, %v6652_v18, %v2431_v36  ;;  %vm8068_vm4 = vmmov %vm8066_vm0  ;;  %v2450_v18 = vsel %vm8069_vm11, %v2431_v36, %v6738_v24 }
 0x36b   : > { %3055 = vmatprep.subr.bf16.mxu1 %v2449_v29  ;;  %v2440_v28 = vsel %vm8068_vm4, %v6245_v46, %v8065_v13  ;;  %vm8074_vm0 = vmmov %vm8070_vm15  ;;  %v2442_v24 = vsel %vm8068_vm4, %v8064_v49, %v8072_v7  ;;  %vm8080_vm4 = vcmask 1039360  }
 0x36c   : > { %3056 = vmatpush1.bf16.msra.mxu1 %v2448_v32  ;;  %3113 = vmatpush1.bf16.msra.mxu0 %v2822_v40  ;;  %v2378_v46 = vsel %vm8074_vm0, %v6540_v44, %v6673_v21  ;;  %vm8077_vm11 = vmmov %vm8074_vm0 }
 0x36d   : > { %v2361_v62 = vpop.permute.xlu1 %2360  ;;  %3057 = vmatprep.subr.bf16.mxu1 %v2441_v63  ;;  %3141 = vmatprep.subr.bf16.mxu0 %v2451_v9  ;;  %v6833_v53 = vpop.permute.xlu0 %2656  ;;  %v2371_v39 = vsel %vm8077_vm11, %v8076_v12, %v8075_v58  ;;  %vm8079_vm7 = vmmov %vm8074_vm0 }
 0x36e   : > { %v2379_v45 = vsel %vm8070_vm15, %v6673_v21, %v2361_v62  ;;  %vm8078_vm15 = vmmov %vm8074_vm0  ;;  %v2370_v44 = vsel %vm8079_vm7, %v6249_v19, %v8076_v12  ;;  %v2380_v21 = vsel %vm8074_vm0, %v2361_v62, %v6760_v35 }
 0x36f   : > { %4647 = vmatmul.mubr.msk.bf16.vlgmr.msra.gmra.mxu0 %vm2879_vm5, %v6524_v15  ;;  %v2381_v48 = vsel %vm8078_vm15, %v6760_v35, %v6791_v5  ;;  %vm8081_vm11 = vmmov %vm8074_vm0 }
 0x370   : > { %3058 = vmatpush1.bf16.msra.mxu1 %v2440_v28  ;;  %3142 = vmatpush1.bf16.msra.mxu0 %v2450_v18  ;;  %v2373_v40 = vsel %vm8081_vm11, %v6705_v47, %v6730_v51  ;;  %vm8082_vm15 = vmmov %vm8080_vm4 }
 0x371   : > { %v2291_v16 = vpop.permute.xlu1 %2290  ;;  %3059 = vmatprep.subr.bf16.mxu1 %v2379_v45  ;;  %3143 = vmatprep.subr.bf16.mxu0 %v2443_v22  ;;  %v6847_v14 = vpop.permute.xlu0 %2716  ;;  %v2308_v19 = vsel %vm8082_vm15, %v6573_v59, %v6688_v37  ;;  %vm8083_vm7 = vmmov %vm8074_vm0  ;;  %v8090_v22 = vld [vmem:[#allocation11_spill] sm:$0xff] }
 0x372   : > { %3173 = vmatprep.mubr.bf16.mxu0 %v6378_v61  ;;  %v2309_v32 = vsel %vm8080_vm4, %v6688_v37, %v2291_v16  ;;  %v2372_v35 = vsel %vm8083_vm7, %v8075_v58, %v6705_v47  ;;  %vm8084_vm0 = vmmov %vm8080_vm4 }
 0x373   : > { %v2301_v63 = vsel %vm8084_vm0, %v6722_v8, %v6752_v50  ;;  %vm8085_vm4 = vmmov %vm8084_vm0  ;;  %v2302_v7 = vsel %vm8084_vm0, %v6752_v50, %v6793_v20 }
 0x374   : > { %3060 = vmatpush1.bf16.msra.mxu1 %v2378_v46  ;;  %3144 = vmatpush1.bf16.msra.mxu0 %v2442_v24  ;;  %v2311_v9 = vsel %vm8085_vm4, %v6780_v30, %v6798_v17  ;;  %vm8086_vm11 = vmmov %vm8084_vm0  ;;  %vm8091_vm4 = vcmask 482304  }
 0x375   : > { %v6862_v36 = vpop.permute.xlu1 %2276  ;;  %3061 = vmatprep.subr.bf16.mxu1 %v2371_v39  ;;  %3145 = vmatprep.subr.bf16.mxu0 %v2381_v48  ;;  %v6864_v29 = vpop.permute.xlu0 %2636  ;;  %v2300_v59 = vsel %vm8086_vm11, %v6269_v11, %v6722_v8  ;;  %vm8087_vm15 = vmmov %vm8084_vm0  ;;  %v8089_v11 = vld [vmem:[#allocation26_spill] sm:$0xff] }
 0x376   : > { %v2310_v37 = vsel %vm8087_vm15, %v2291_v16, %v6780_v30  ;;  %vm8088_vm7 = vmmov %vm8084_vm0 }
 0x377   : > { %v2303_v47 = vsel %vm8088_vm7, %v6793_v20, %v6862_v36  ;;  %vm8092_vm11 = vmmov %vm8091_vm4 }
 0x378   : > { %3062 = vmatpush1.bf16.msra.mxu1 %v2370_v44  ;;  %3146 = vmatpush1.bf16.msra.mxu0 %v2380_v21  ;;  %vm8093_vm15 = vmmov %vm8091_vm4 }
 0x379   : > { %v2735_v49 = vpop.permute.xlu1 %2734  ;;  %3063 = vmatprep.subr.bf16.mxu1 %v2309_v32  ;;  %3147 = vmatprep.subr.bf16.mxu0 %v2373_v40  ;;  %v6876_v13 = vpop.permute.xlu0 %2660  ;;  %vm8094_vm7 = vmmov %vm8091_vm4 }
 0x37a   : > { %vm8095_vm0 = vmmov %vm8091_vm4 }
 0x37c   : > { %3064 = vmatpush1.bf16.msra.mxu1 %v2308_v19  ;;  %3148 = vmatpush1.bf16.msra.mxu0 %v2372_v35 }
 0x37d   : > { %v2715_v62 = vpop.permute.xlu1 %2714  ;;  %3065 = vmatprep.subr.bf16.mxu1 %v2301_v63  ;;  %3149 = vmatprep.subr.bf16.mxu0 %v2311_v9  ;;  %v6890_v28 = vpop.permute.xlu0 %2568 }
 0x380   : > { %3066 = vmatpush1.bf16.msra.mxu1 %v2300_v59  ;;  %3150 = vmatpush1.bf16.msra.mxu0 %v2310_v37 }
 0x381   : > { %v6900_v18 = vpop.permute.xlu1 %2738  ;;  %3067 = vmatprep.subr.bf16.mxu1 %v6351_v55  ;;  %3151 = vmatprep.subr.bf16.mxu0 %v2303_v47  ;;  %v2641_v45 = vpop.permute.xlu0 %2640  ;;  %v2756_v55 = vsel %vm8091_vm4, %v6800_v0, %v2735_v49  ;;  %vm8096_vm4 = vmmov %vm8095_vm0 }
 0x384   : > { %3068 = vmatpush1.bf16.msra.mxu1 %v8089_v11  ;;  %3152 = vmatpush1.bf16.msra.mxu0 %v2302_v7 }
 0x385   : > { %v2659_v8 = vpop.permute.xlu1 %2658  ;;  %3069 = vmatprep.subr.bf16.mxu1 %v6120_v27  ;;  %3153 = vmatprep.subr.bf16.mxu0 %v6392_v10  ;;  %v2551_v30 = vpop.permute.xlu0 %2550  ;;  %v2755_v27 = vsel %vm8092_vm11, %v6604_v42, %v6800_v0  ;;  %v2747_v10 = vsel %vm8093_vm15, %v6806_v3, %v2715_v62  ;;  %v2757_v42 = vsel %vm8096_vm4, %v2735_v49, %v6817_v57  ;;  %vm8097_vm11 = vcmask 490496   ;;  %vm8098_vm15 = vmmov %vm8095_vm0 }
 0x388   : > { %3070 = vmatpush1.bf16.msra.mxu1 %v8090_v22  ;;  %3154 = vmatpush1.bf16.msra.mxu0 %v6427_v1  ;;  %v2758_v1 = vsel %vm8094_vm7, %v6817_v57, %v6900_v18  ;;  %vm8099_vm7 = vmmov %vm8097_vm11 }
 0x389   : > { %v6913_v16 = vpop.permute.xlu1 %2718  ;;  %3071 = vmatprep.subr.bf16.mxu1 %v2756_v55  ;;  %3155 = vmatprep.subr.bf16.mxu0 %v6143_v41  ;;  %v2573_v50 = vpop.permute.xlu0 %2572  ;;  %v2746_v41 = vsel %vm8095_vm0, %v6259_v43, %v6806_v3  ;;  %v2679_v43 = vsel %vm8099_vm7, %v6632_v4, %v6833_v53  ;;  %v2748_v3 = vsel %vm8095_vm0, %v2715_v62, %v6847_v14  ;;  %vm8100_vm4 = vmmov %vm8099_vm7  ;;  %vm8104_vm0 = vcmask 752640  }
 0x38a   : > { %v2749_v0 = vsel %vm8098_vm15, %v6847_v14, %v6913_v16  ;;  %vm8102_vm15 = vmmov %vm8100_vm4 }
 0x38b   : > { %v2670_v4 = vsel %vm8102_vm15, %v8029_v2, %v6864_v29  ;;  %vm8103_vm7 = vmmov %vm8100_vm4 }
 0x38c   : > { %3072 = vmatpush2.bf16.msra.mxu1 %v2755_v27  ;;  %3156 = vmatpush1.bf16.msra.mxu0 %v6149_v26  ;;  %v2680_v26 = vsel %vm8097_vm11, %v6833_v53, %v2659_v8  ;;  %vm8101_vm11 = vmmov %vm8100_vm4  ;;  %v2681_v53 = vsel %vm8103_vm7, %v2659_v8, %v6876_v13 }
 0x38d   : > { %v2639_v20 = vpop.permute.xlu1 %2638  ;;  %3073 = vmatprep.subr.bf16.mxu1 %v2747_v10  ;;  %3157 = vmatprep.subr.bf16.mxu0 %v2758_v1  ;;  %v2499_v46 = vpop.permute.xlu0 %2498  ;;  %vm8106_vm15 = vmmov %vm8100_vm4 }
 0x38e   : > { %v2671_v57 = vsel %vm8100_vm4, %v6864_v29, %v2639_v20  ;;  %v2672_v29 = vsel %vm8106_vm15, %v2639_v20, %v2641_v45  ;;  %vm8107_vm7 = vmmov %vm8104_vm0  ;;  %vm8110_vm15 = vcmask 760832  }
 0x390   : > { %3074 = vmatpush2.bf16.msra.mxu1 %v2746_v41  ;;  %3158 = vmatpush2.bf16.msra.mxu0 %v2757_v42  ;;  %v8120_v42 = vmov 0.0  }
 0x391   : > { %v6935_v24 = vpop.permute.xlu1 %2662  ;;  %3075 = vmatprep.subr.bf16.mxu1 %v2680_v26  ;;  %3159 = vmatprep.subr.bf16.mxu0 %v2749_v0  ;;  %v2555_v58 = vpop.permute.xlu0 %2554 }
 0x392   : > { %v2682_v12 = vsel %vm8101_vm11, %v6876_v13, %v6935_v24  ;;  %vm8105_vm11 = vmmov %vm8104_vm0  ;;  %v2580_v13 = vsel %vm8104_vm0, %v8042_v34, %v2551_v30 }
 0x393   : > { %v2588_v2 = vsel %vm8105_vm11, %v6665_v31, %v6890_v28  ;;  %vm8109_vm11 = vmmov %vm8104_vm0 }
 0x394   : > { %3076 = vmatpush2.bf16.msra.mxu1 %v2679_v43  ;;  %3160 = vmatpush2.bf16.msra.mxu0 %v2748_v3 }
 0x395   : > { %v2571_v39 = vpop.permute.xlu1 %2570  ;;  %3077 = vmatprep.subr.bf16.mxu1 %v2671_v57  ;;  %3161 = vmatprep.subr.bf16.mxu0 %v2682_v12  ;;  %v2481_v48 = vpop.permute.xlu0 %2480 }
 0x396   : > { %v2589_v14 = vsel %vm8104_vm0, %v6890_v28, %v2571_v39  ;;  %v2590_v31 = vsel %vm8109_vm11, %v2571_v39, %v2573_v50 }
 0x398   : > { %3078 = vmatpush2.bf16.msra.mxu1 %v2670_v4  ;;  %3162 = vmatpush2.bf16.msra.mxu0 %v2681_v53 }
 0x399   : > { %v6954_v44 = vpop.permute.xlu1 %2642  ;;  %3079 = vmatprep.subr.bf16.mxu1 %v2589_v14  ;;  %v2503_v21 = vpop.permute.xlu0 %2502 }
 0x39a   : > { %v2673_v32 = vsel %vm8100_vm4, %v2641_v45, %v6954_v44  ;;  %vm8108_vm4 = vmmov %vm8104_vm0 }
 0x39b   : > { %3163 = vmatprep.subr.bf16.mxu0 %v2673_v32 }
 0x39c   : > { %3080 = vmatpush2.bf16.msra.mxu1 %v2588_v2  ;;  %3164 = vmatpush2.bf16.msra.mxu0 %v2672_v29 }
 0x39d   : > { %v2553_v40 = vpop.permute.xlu1 %2552  ;;  %v2813_v19 = vpop.permute.xlu0 %2812 }
 0x39e   : > { %v2581_v49 = vsel %vm8107_vm7, %v2551_v30, %v2553_v40  ;;  %vm8111_vm7 = vmmov %vm8110_vm15 }
 0x39f   : > { %3081 = vmatprep.subr.bf16.mxu1 %v2581_v49  ;;  %v2518_v59 = vsel %vm8111_vm7, %v6697_v25, %v2499_v46  ;;  %vm8113_vm11 = vmmov %vm8111_vm7 }
 0x3a0   : > { %3082 = vmatpush2.bf16.msra.mxu1 %v2580_v13 }
 0x3a1   : > { %v6965_v35 = vpop.permute.xlu1 %2574  ;;  %v2485_v62 = vpop.permute.xlu0 %2484 }
 0x3a2   : > { %v2591_v63 = vsel %vm8108_vm4, %v2573_v50, %v6965_v35  ;;  %vm8112_vm4 = vmmov %vm8104_vm0 }
 0x3a3   : > { %3165 = vmatprep.subr.bf16.mxu0 %v2591_v63  ;;  %v2582_v47 = vsel %vm8112_vm4, %v2553_v40, %v2555_v58  ;;  %vm8116_vm4 = vcmask 474112  }
 0x3a4   : > { %3166 = vmatpush2.bf16.msra.mxu0 %v2590_v31 }
 0x3a5   : > { %v2501_v9 = vpop.permute.xlu1 %2500  ;;  %v2793_v45 = vpop.permute.xlu0 %2792 }
 0x3a6   : > { %v2519_v28 = vsel %vm8110_vm15, %v2499_v46, %v2501_v9  ;;  %vm8114_vm15 = vmmov %vm8111_vm7 }
 0x3a7   : > { %3083 = vmatprep.subr.bf16.mxu1 %v2519_v28  ;;  %v2510_v8 = vsel %vm8114_vm15, %v8050_v60, %v2481_v48 }
 0x3a8   : > { %3084 = vmatpush2.bf16.msra.mxu1 %v2518_v59 }
 0x3a9   : > { %v6973_v34 = vpop.permute.xlu1 %2556  ;;  %v2741_v30 = vpop.permute.xlu0 %2740 }
 0x3aa   : > { %v2583_v37 = vsel %vm8104_vm0, %v2555_v58, %v6973_v34  ;;  %vm8115_vm0 = vmmov %vm8111_vm7 }
 0x3ab   : > { %3167 = vmatprep.subr.bf16.mxu0 %v2583_v37  ;;  %v2520_v55 = vsel %vm8115_vm0, %v2501_v9, %v2503_v21  ;;  %vm8118_vm15 = vmmov %vm8115_vm0 }
 0x3ac   : > { %3168 = vmatpush2.bf16.msra.mxu0 %v2582_v47 }
 0x3ad   : > { %v2483_v7 = vpop.permute.xlu1 %2482  ;;  %v2665_v10 = vpop.permute.xlu0 %2664 }
 0x3ae   : > { %v2511_v11 = vsel %vm8113_vm11, %v2481_v48, %v2483_v7  ;;  %vm8117_vm11 = vmmov %vm8116_vm4 }
 0x3af   : > { %3085 = vmatprep.subr.bf16.mxu1 %v2511_v11  ;;  %v2833_v60 = vsel %vm8117_vm11, %v6804_v6, %v2813_v19 }
 0x3b0   : > { %3086 = vmatpush2.bf16.msra.mxu1 %v2510_v8 }
 0x3b1   : > { %v2505_v25 = vpop.permute.xlu1 %2504  ;;  %v2817_v26 = vpop.permute.xlu0 %2816 }
 0x3b2   : > { %v2521_v22 = vsel %vm8111_vm7, %v2503_v21, %v2505_v25  ;;  %vm8119_vm7 = vmmov %vm8115_vm0 }
 0x3b3   : > { %3088 = vmatmul.mubr.bf16.vlgmr.msra.gmra.mxu1 %v6750_v54  ;;  %3169 = vmatprep.subr.bf16.mxu0 %v2521_v22  ;;  %v2512_v46 = vsel %vm8119_vm7, %v2483_v7, %v2485_v62  ;;  %vm8121_vm0 = vmmov %vm8116_vm4  ;;  %vm8125_vm7 = vmmov 0  }
 0x3b4   : > { %3170 = vmatpush2.bf16.msra.mxu0 %v2520_v55  ;;  %3216 = vmatprep.mubr.bf16.mxu1 %v6782_v56  ;;  %vm8123_vm11 = vmmov %vm8121_vm0 }
 0x3b5   : > { %v2815_v50 = vpop.permute.xlu1 %2814 }
 0x3b6   : > { %v2834_v27 = vsel %vm8116_vm4, %v2813_v19, %v2815_v50  ;;  %vm8122_vm4 = vmmov %vm8121_vm0  ;;  %v2835_v58 = vsel %vm8123_vm11, %v2815_v50, %v2817_v26 }
 0x3b7   : > { %3196 = vmatprep.subr.bf16.mxu1 %v2834_v27  ;;  %v2824_v6 = vsel %vm8122_vm4, %v8058_v38, %v2793_v45  ;;  %vm8127_vm4 = vcmask 490496  }
 0x3b8   : > { %3197 = vmatpush1.bf16.msra.mxu1 %v2833_v60 }
 0x3b9   : > { %v2487_v1 = vpop.permute.xlu1 %2486 }
 0x3ba   : > { %v2513_v20 = vsel %vm8118_vm15, %v2485_v62, %v2487_v1  ;;  %vm8124_vm15 = vcmask 482304  }
 0x3bb   : > { %3171 = vmatprep.subr.bf16.mxu0 %v2513_v20  ;;  %v2759_v43 = vsel %vm8124_vm15, %v6900_v18, %v2741_v30  ;;  %v2683_v18 = vsel %vm8127_vm4, %v6935_v24, %v2665_v10 }
 0x3bc   : > { %3172 = vmatpush2.bf16.msra.mxu0 %v2512_v46 }
 0x3bd   : > { %v2795_v41 = vpop.permute.xlu1 %2794  ;;  %4765 = vmatprep.subr.bf16.mxu0 %v8120_v42 }
 0x3be   : > { %v2825_v0 = vsel %vm8121_vm0, %v2793_v45, %v2795_v41  ;;  %vm8126_vm0 = vmmov %vm8124_vm15 }
 0x3bf   : > { %3174 = vmatmul.mubr.bf16.vlgmr.msra.gmra.mxu0 %v6750_v54  ;;  %3198 = vmatprep.subr.bf16.mxu1 %v2825_v0  ;;  %vm8128_vm15 = vmmov %vm8127_vm4  ;;  %vm8140_vm4 = vcmask 1043456  }
 0x3c0   : > { %3199 = vmatpush1.bf16.msra.mxu1 %v2824_v6  ;;  %4766 = vmatpush3.bf16.msra.mxu0 %v2835_v58 }
 0x3c1   : > { %v2721_v3 = vpop.permute.xlu1 %2720  ;;  %4726 = vmatprep.subr.bf16.mxu1 %v2759_v43  ;;  %4767 = vmatprep.subr.bf16.mxu0 %v8120_v42 }
 0x3c2   : > { %4769 = vmatprep.mubr.msk.bf16.mxu0 %vm8125_vm7, %v8120_v42  ;;  %v2750_v38 = vsel %vm8126_vm0, %v6913_v16, %v2721_v3  ;;  %vm8137_vm7 = vcmask 285696  }
 0x3c3   : > { %4648 = vmatmul.mubr.msk.bf16.vlgmr.msra.gmra.mxu1 %vm2879_vm5, %v6524_v15  ;;  %vm8139_vm0 = vmmov %vm8137_vm7 }
 0x3c4   : > { %4727 = vmatpush3.bf16.msra.mxu1 %v6772_v52  ;;  %3259 = vmatprep.mubr.bf16.mxu1 %v6378_v61  ;;  %v4920_v61 = vld [vmem:[#allocation2 + $0x20] ss:$40 sps:$4 sm:$0xff]  }
 0x3c5   : > { %v2645_v57 = vpop.permute.xlu1 %2644  ;;  %4728 = vmatprep.subr.bf16.mxu1 %v2750_v38 }
 0x3c6   : > { %v2674_v52 = vsel %vm8128_vm15, %v6954_v44, %v2645_v57  ;;  %vm8142_vm15 = vmmov %vm8140_vm4 }
 0x3c8   : > { %4729 = vmatpush3.bf16.msra.mxu1 %v8071_v33  ;;  %v7023_v33 = vpop.permute.xlu0 %2856 }
 0x3c9   : > { %v2797_v12 = vpop.permute.xlu1 %2796  ;;  %4730 = vmatprep.subr.bf16.mxu1 %v2683_v18 }
 0x3ca   : > { %v2826_v39 = vsel %vm8123_vm11, %v2795_v41, %v2797_v12  ;;  %vm8141_vm11 = vmmov %vm8139_vm0 }
 0x3cb   : > { %4768 = vmatpush3.bf16.msra.mxu0 %v2826_v39 }
 0x3cc   : > { %4731 = vmatpush3.bf16.msra.mxu1 %v6791_v5 }
 0x3cd   : > { %4732 = vmatprep.subr.bf16.mxu1 %v2674_v52 }
 0x3ce   : > { %4770 = vmatmul.mubr.msk.bf16.vlgmr.msra.gmra.mxu0 %vm2879_vm5, %v6524_v15 }
 0x3d0   : > { %4733 = vmatpush3.bf16.msra.mxu1 %v6730_v51 }
 0x3d1   : > { %4734 = vmatprep.subr.bf16.mxu1 %v6965_v35 }
 0x3d4   : > { %4735 = vmatpush3.bf16.msra.mxu1 %v6798_v17 }
 0x3d5   : > { %4736 = vmatprep.subr.bf16.mxu1 %v6973_v34 }
 0x3d6   : > { %v7027_v4 = vpop.permute.xlu1 %2861 }
 0x3d8   : > { %4737 = vmatpush3.bf16.msra.mxu1 %v6862_v36 }
 0x3d9   : > { %4738 = vmatprep.subr.bf16.mxu1 %v2505_v25 }
 0x3dc   : > { %4739 = vmatpush3.bf16.msra.mxu1 %v6404_v23 }
 0x3dd   : > { %4740 = vmatprep.subr.bf16.mxu1 %v2487_v1 }
 0x3e0   : > { %4741 = vmatpush3.bf16.msra.mxu1 %v4920_v61  ;;  %v2960_v5 = vpop.f32.mrf.mxu0 }
 0x3e2   : > { %v2962_v15 = vpop.f32.mrf.mxu0 }
 0x3e3   : > { %3260 = vmatmul.mubr.bf16.vlgmr.msra.gmra.mxu1 %v6750_v54 }
 0x3e4   : > { %v2964_v17 = vpop.f32.mrf.mxu0 }
 0x3e6   : > { %v2966_v54 = vpop.f32.mrf.mxu0 }
 0x418   : > { %v2917_v51 = vpop.f32.mrf.mxu1 }
 0x419   : > { %v2918_v16 = vadd.f32 %v2917_v51, %v7023_v33 }
 0x41a   : > { %v2919_v24 = vpop.f32.mrf.mxu1 }
 0x41b   : > { %v2961_v48 = vadd.f32 %v2960_v5, %v2918_v16  ;;  %v2920_v36 = vadd.f32 %v2919_v24, %v7023_v33 }
 0x41c   : > { %v2921_v23 = vpop.f32.mrf.mxu1 }
 0x41d   : > { %v3309_v53 = vmax.f32 %v2961_v48, 0.0  ;;  %v2963_v14 = vadd.f32 %v2962_v15, %v2920_v36  ;;  %v2922_v44 = vadd.f32 %v2921_v23, %v7027_v4 }
 0x41e   : > { %v2923_v21 = vpop.f32.mrf.mxu1 }
 0x41f   : > { %v3310_v32 = vmax.f32 %v2963_v14, 0.0  ;;  %v2965_v2 = vadd.f32 %v2964_v17, %v2922_v44  ;;  %v2924_v29 = vadd.f32 %v2923_v21, %v7027_v4  ;;  %v3327_v49 = vsel %vm5725_vm6, %v3309_v53, 0.0 }
 0x420   : > { %v3003_v13 = vpop.f32.mrf.mxu0  ;;  %v3046_v19 = vpop.f32.mrf.mxu1 }
 0x421   : > { %v3328_v63 = vsel %vm5716_vm12, %v3310_v32, 0.0  ;;  %v3318_v31 = vmax.f32 %v2965_v2, 0.0  ;;  %v2967_v9 = vadd.f32 %v2966_v54, %v2924_v29  ;;  %v3004_v62 = vadd.f32 %v3003_v13, %v7023_v33 }
 0x422   : > { %v4710_v28 = vpack.c.bf16 %v3328_v63, %v3327_v49  ;;  %v3005_v59 = vpop.f32.mrf.mxu0  ;;  %v3048_v34 = vpop.f32.mrf.mxu1 }
 0x423   : > { %v3319_v37 = vmax.f32 %v2967_v9, 0.0  ;;  %v3006_v47 = vadd.f32 %v3005_v59, %v7023_v33  ;;  %v3047_v45 = vadd.f32 %v3046_v19, %v3004_v62  ;;  %v3336_v7 = vsel %vm5725_vm6, %v3318_v31, 0.0 }
 0x424   : > { %v3007_v11 = vpop.f32.mrf.mxu0  ;;  %3391 = vrot.lane.b32.xlu0 %v4710_v28, %s4942_s20  ;;  %v3050_v8 = vpop.f32.mrf.mxu1 }
 0x425   : > { %v3337_v25 = vsel %vm5716_vm12, %v3319_v37, 0.0  ;;  %v3311_v30 = vmax.f32 %v3047_v45, 0.0  ;;  %v3008_v22 = vadd.f32 %v3007_v11, %v7027_v4  ;;  %v3049_v55 = vadd.f32 %v3048_v34, %v3006_v47 }
 0x426   : > { %v4715_v50 = vpack.c.bf16 %v3337_v25, %v3336_v7  ;;  %v3009_v27 = vpop.f32.mrf.mxu0  ;;  %v3052_v60 = vpop.f32.mrf.mxu1 }
 0x427   : > { %v3312_v10 = vmax.f32 %v3049_v55, 0.0  ;;  %v3010_v1 = vadd.f32 %v3009_v27, %v7027_v4  ;;  %v3051_v20 = vadd.f32 %v3050_v8, %v3008_v22  ;;  %v3329_v41 = vsel %vm5866_vm10, %v3311_v30, 0.0 }
 0x428   : > { %3401 = vrot.lane.b32.xlu0 %v4715_v50, %s4942_s20 }
 0x429   : > { %v3330_v26 = vsel %vm5854_vm8, %v3312_v10, 0.0  ;;  %v3320_v0 = vmax.f32 %v3051_v20, 0.0  ;;  %v3053_v6 = vadd.f32 %v3052_v60, %v3010_v1  ;;  %v4095_v20 = vld [vmem:[%s7821_s10 + $0x8] sm:$0xff] }
 0x42a   : > { %v4711_v58 = vpack.c.bf16 %v3330_v26, %v3329_v41 }
 0x42b   : > { %v3321_v43 = vmax.f32 %v3053_v6, 0.0  ;;  %v3338_v3 = vsel %vm5866_vm10, %v3320_v0, 0.0 }
 0x42c   : > { %3393 = vrot.lane.b32.xlu1 %v4711_v58, %s4942_s20 }
 0x42d   : > { %v3339_v38 = vsel %vm5854_vm8, %v3321_v43, 0.0 }
 0x42e   : > { %v4716_v57 = vpack.c.bf16 %v3339_v38, %v3338_v3 }
 0x42f   : > { %v3132_v18 = vpop.f32.mrf.mxu0 }
 0x430   : > { %3403 = vrot.lane.b32.xlu1 %v4716_v57, %s4942_s20 }
 0x431   : > { %v3134_v12 = vpop.f32.mrf.mxu0 }
 0x433   : > { %v3136_v51 = vpop.f32.mrf.mxu0 }
 0x435   : > { %v3138_v44 = vpop.f32.mrf.mxu0 }
 0x473   : > { %v3089_v39 = vpop.f32.mrf.mxu1 }
 0x474   : > { %v3090_v52 = vadd.f32 %v3089_v39, %v7023_v33 }
 0x475   : > { %v3091_v61 = vpop.f32.mrf.mxu1 }
 0x476   : > { %v3133_v5 = vadd.f32 %v3132_v18, %v3090_v52  ;;  %v3092_v15 = vadd.f32 %v3091_v61, %v7023_v33 }
 0x477   : > { %v3093_v16 = vpop.f32.mrf.mxu1 }
 0x478   : > { %v3313_v17 = vmax.f32 %v3133_v5, 0.0  ;;  %v3135_v24 = vadd.f32 %v3134_v12, %v3092_v15  ;;  %v3094_v48 = vadd.f32 %v3093_v16, %v7027_v4 }
 0x479   : > { %v3095_v36 = vpop.f32.mrf.mxu1 }
 0x47a   : > { %v3314_v23 = vmax.f32 %v3135_v24, 0.0  ;;  %v3137_v53 = vadd.f32 %v3136_v51, %v3094_v48  ;;  %v3096_v14 = vadd.f32 %v3095_v36, %v7027_v4  ;;  %v3331_v21 = vsel %vm5817_vm9, %v3313_v17, 0.0 }
 0x47c   : > { %v3332_v2 = vsel %vm5822_vm13, %v3314_v23, 0.0  ;;  %v3322_v29 = vmax.f32 %v3137_v53, 0.0  ;;  %v3139_v49 = vadd.f32 %v3138_v44, %v3096_v14 }
 0x47d   : > { %v4712_v13 = vpack.c.bf16 %v3332_v2, %v3331_v21 }
 0x47e   : > { %v3323_v19 = vmax.f32 %v3139_v49, 0.0  ;;  %v3340_v31 = vsel %vm5817_vm9, %v3322_v29, 0.0 }
 0x47f   : > { %v3175_v63 = vpop.f32.mrf.mxu0  ;;  %3395 = vrot.lane.b32.xlu0 %v4712_v13, %s4942_s20 }
 0x480   : > { %v3341_v9 = vsel %vm5822_vm13, %v3323_v19, 0.0  ;;  %v3176_v59 = vadd.f32 %v3175_v63, %v7023_v33 }
 0x481   : > { %v4717_v62 = vpack.c.bf16 %v3341_v9, %v3340_v31  ;;  %v3177_v28 = vpop.f32.mrf.mxu0 }
 0x482   : > { %v3178_v47 = vadd.f32 %v3177_v28, %v7023_v33 }
 0x483   : > { %v3179_v34 = vpop.f32.mrf.mxu0  ;;  %v3218_v37 = vpop.f32.mrf.mxu1  ;;  %3405 = vrot.lane.b32.xlu1 %v4717_v62, %s4942_s20 }
 0x484   : > { %v3219_v45 = vadd.f32 %v3218_v37, %v3176_v59  ;;  %v3180_v8 = vadd.f32 %v3179_v34, %v7027_v4 }
 0x485   : > { %v3181_v7 = vpop.f32.mrf.mxu0  ;;  %v3220_v11 = vpop.f32.mrf.mxu1 }
 0x486   : > { %v3315_v25 = vmax.f32 %v3219_v45, 0.0  ;;  %v3221_v30 = vadd.f32 %v3220_v11, %v3178_v47  ;;  %v3182_v55 = vadd.f32 %v3181_v7, %v7027_v4 }
 0x487   : > { %v3222_v22 = vpop.f32.mrf.mxu1 }
 0x488   : > { %v3316_v50 = vmax.f32 %v3221_v30, 0.0  ;;  %v3223_v27 = vadd.f32 %v3222_v22, %v3180_v8  ;;  %v3333_v1 = vsel %vm6080_vm2, %v3315_v25, 0.0 }
 0x489   : > { %v3224_v60 = vpop.f32.mrf.mxu1 }
 0x48a   : > { %v3334_v41 = vsel %vm6071_vm3, %v3316_v50, 0.0  ;;  %v3324_v26 = vmax.f32 %v3223_v27, 0.0  ;;  %v3225_v0 = vadd.f32 %v3224_v60, %v3182_v55  ;;  %v7180_v55 = vld [vmem:[%s7819_s8 + $0x4] ss:$8 sps:$4 sm:$0xff]  }
 0x48b   : > { %v4713_v6 = vpack.c.bf16 %v3334_v41, %v3333_v1 }
 0x48c   : > { %v3325_v58 = vmax.f32 %v3225_v0, 0.0  ;;  %v3342_v43 = vsel %vm6080_vm2, %v3324_v26, 0.0 }
 0x48d   : > { %3397 = vrot.lane.b32.xlu0 %v4713_v6, %s4942_s20 }
 0x48e   : > { %v3343_v3 = vsel %vm6071_vm3, %v3325_v58, 0.0  ;;  %v3302_v38 = vpop.f32.mrf.mxu0 }
 0x48f   : > { %v4718_v57 = vpack.c.bf16 %v3343_v3, %v3342_v43 }
 0x490   : > { %v4771_v18 = vpop.f32.mrf.mxu0 }
 0x491   : > { %3407 = vrot.lane.b32.xlu1 %v4718_v57, %s4942_s20 }
 0x492   : > { %v3305_v12 = vpop.f32.mrf.mxu0 }
 0x494   : > { %v4772_v39 = vpop.f32.mrf.mxu0 }
 0x496   : > { %v3392_v52 = vpop.permute.xlu0 %3391 }
 0x497   : > { %v3411_v61 = vrot.slane %v3392_v52, 4 }
 0x499   : > { %v3419_v5 = vsel %vm8137_vm7, %v3411_v61, %v3392_v52  ;;  %vm3833_vm7 = vcmask 130048  }
 0x49a   : > { %3445 = vst.msk [vmem:[#allocation3] sm:$0xff] %vm6037_vm1, %v3419_v5  ;;  %v3402_v51 = vpop.permute.xlu0 %3401  ;;  %4673 = vmatprep.mubr.msk.bf16.mxu0 %vm3833_vm7, %v7180_v55  ;;  %4674 = vmatprep.mubr.msk.bf16.mxu1 %vm3833_vm7, %v7180_v55 }
 0x49b   : > { %v3415_v16 = vrot.slane %v3402_v51, 4 }
 0x49d   : > { %v3427_v17 = vsel %vm8139_vm0, %v3415_v16, %v3402_v51 }
 0x49e   : > { %3450 = vst.msk [vmem:[#allocation3 + $0x28] sm:$0xff] %vm6037_vm1, %v3427_v17  ;;  %v7089_v24 = vpop.permute.xlu1 %3393  ;;  %vm8143_vm1 = vmmov %vm8139_vm0 }
 0x49f   : > { %v3412_v48 = vrot.slane %v7089_v24, 4  ;;  %vm8145_vm0 = vmmov %vm8140_vm4 }
 0x4a1   : > { %v3420_v36 = vsel %vm8140_vm4, %v3411_v61, %v3412_v48  ;;  %v3459_v11 = vld [vmem:[#allocation3] sm:$0xff]  ;;  %vm8146_vm4 = vmmov %vm8143_vm1 }
 0x4a2   : > { %v3421_v23 = vsel %vm8141_vm11, %v3420_v36, %v7089_v24  ;;  %v7097_v53 = vpop.permute.xlu1 %3403  ;;  %vm8147_vm11 = vmmov %vm8145_vm0 }
 0x4a3   : > { %v3416_v14 = vrot.slane %v7097_v53, 4  ;;  %v4742_v44 = vpop.f32.mrf.mxu1 }
 0x4a5   : > { %v3428_v21 = vsel %vm8142_vm15, %v3415_v16, %v3416_v14  ;;  %v4743_v2 = vpop.f32.mrf.mxu1  ;;  %v3464_v45 = vld [vmem:[#allocation3 + $0x28] sm:$0xff]  ;;  %vm8148_vm15 = vmmov %vm8143_vm1 }
 0x4a6   : > { %v3429_v29 = vsel %vm8143_vm1, %v3428_v21, %v7097_v53  ;;  %v4744_v49 = vadd.f32 %v4743_v2, %v4742_v44  ;;  %vm8149_vm1 = vmmov %vm8145_vm0  ;;  %v4903_v44 = vld [vmem:[#allocation3 + $0x24] ss:$40 sps:$4 sm:$0xff]  }
 0x4a7   : > { %v4745_v13 = vpop.f32.mrf.mxu1  ;;  %v7147_v30 = vcombine.low %v3421_v23, %v3429_v29  ;;  %v7165_v22 = vcombine.high %v3421_v23, %v3429_v29 }
 0x4a8   : > { %v3262_v19 = vadd.f32 %v4744_v49, %v7023_v33  ;;  %v7112_v33 = vcombine.high %v3459_v11, %v3464_v45 }
 0x4a9   : > { %v4746_v63 = vpop.f32.mrf.mxu1 }
 0x4aa   : > { %v4747_v31 = vadd.f32 %v4746_v63, %v4745_v13  ;;  %v3303_v9 = vadd.f32 %v3302_v38, %v3262_v19 }
 0x4ac   : > { %v3317_v62 = vmax.f32 %v3303_v9, 0.0  ;;  %v3265_v28 = vadd.f32 %v4747_v31, %v7027_v4  ;;  %v7117_v4 = vcombine.low %v3459_v11, %v3464_v45 }
 0x4ae   : > { %v3335_v34 = vsel %vm5907_vm14, %v3317_v62, 0.0  ;;  %v3306_v37 = vadd.f32 %v3305_v12, %v3265_v28 }
 0x4af   : > { %v4714_v47 = vpack.c.bf16 %v3335_v34, %v3335_v34 }
 0x4b0   : > { %v3326_v7 = vmax.f32 %v3306_v37, 0.0 }
 0x4b1   : > { %3399 = vrot.lane.b32.xlu0 %v4714_v47, %s4942_s20 }
 0x4b2   : > { %v3344_v8 = vsel %vm5907_vm14, %v3326_v7, 0.0 }
 0x4b3   : > { %v4719_v25 = vpack.c.bf16 %v3344_v8, %v3344_v8 }
 0x4b5   : > { %3409 = vrot.lane.b32.xlu1 %v4719_v25, %s4942_s20  ;;  %3740 = vrot.lane.b32.xlu0 %v7112_v33, %s4933_s18  ;;  %s4981_s20 = smov 108  }
 0x4b9   : > { %3702 = vrot.lane.b32.xlu1 %v7112_v33, %s4932_s15  ;;  %3738 = vrot.lane.b32.xlu0 %v7117_v4, %s4933_s18 }
 0x4bd   : > { %3700 = vrot.lane.b32.xlu1 %v7117_v4, %s4932_s15  ;;  %3659 = vrot.lane.b32.xlu0 %v7112_v33, %s4935_s24 }
 0x4c1   : > { %3624 = vrot.lane.b32.xlu1 %v7112_v33, %s4934_s23  ;;  %3657 = vrot.lane.b32.xlu0 %v7117_v4, %s4935_s24 }
 0x4c5   : > { %3622 = vrot.lane.b32.xlu1 %v7117_v4, %s4934_s23  ;;  %3589 = vrot.lane.b32.xlu0 %v7112_v33, %s4937_s13 }
 0x4c9   : > { %3554 = vrot.lane.b32.xlu1 %v7112_v33, %s4936_s28  ;;  %3587 = vrot.lane.b32.xlu0 %v7117_v4, %s4937_s13 }
 0x4cd   : > { %3552 = vrot.lane.b32.xlu1 %v7117_v4, %s4936_s28  ;;  %3519 = vrot.lane.b32.xlu0 %v7112_v33, %s4938_s16 }
 0x4d1   : > { %3778 = vrot.lane.b32.xlu1 %v7112_v33, %s4931_s14  ;;  %3517 = vrot.lane.b32.xlu0 %v7117_v4, %s4938_s16 }
 0x4d5   : > { %3776 = vrot.lane.b32.xlu1 %v7117_v4, %s4931_s14  ;;  %3704 = vrot.lane.b32.xlu0 %v7147_v30, %s4932_s15 }
 0x4d9   : > { %3742 = vrot.lane.b32.xlu1 %v7147_v30, %s4933_s18  ;;  %3626 = vrot.lane.b32.xlu0 %v7147_v30, %s4934_s23 }
 0x4dd   : > { %3661 = vrot.lane.b32.xlu1 %v7147_v30, %s4935_s24  ;;  %3556 = vrot.lane.b32.xlu0 %v7147_v30, %s4936_s28 }
 0x4e1   : > { %3591 = vrot.lane.b32.xlu1 %v7147_v30, %s4937_s13  ;;  %3780 = vrot.lane.b32.xlu0 %v7147_v30, %s4931_s14 }
 0x4e5   : > { %3521 = vrot.lane.b32.xlu1 %v7147_v30, %s4938_s16  ;;  %3706 = vrot.lane.b32.xlu0 %v7165_v22, %s4932_s15 }
 0x4e9   : > { %3744 = vrot.lane.b32.xlu1 %v7165_v22, %s4933_s18  ;;  %3663 = vrot.lane.b32.xlu0 %v7165_v22, %s4935_s24 }
 0x4ed   : > { %3628 = vrot.lane.b32.xlu0 %v7165_v22, %s4934_s23 }
 0x4f1   : > { %3593 = vrot.lane.b32.xlu0 %v7165_v22, %s4937_s13  ;;  %v3396_v50 = vpop.permute.xlu0 %3395 }
 0x4f2   : > { %v3413_v27 = vrot.slane %v3396_v50, 4 }
 0x4f4   : > { %v3422_v60 = vsel %vm8145_vm0, %v3412_v48, %v3413_v27  ;;  %vm8150_vm0 = vmmov %vm8146_vm4 }
 0x4f5   : > { %v3423_v1 = vsel %vm8146_vm4, %v3422_v60, %v3396_v50  ;;  %v3406_v41 = vpop.permute.xlu1 %3405  ;;  %3558 = vrot.lane.b32.xlu0 %v7165_v22, %s4936_s28  ;;  %vm8151_vm4 = vmmov %vm8149_vm1  ;;  %v3458_v60 = vld [vmem:[%s7820_s9 + $0x8] sm:$0xff] }
 0x4f6   : > { %v3417_v26 = vrot.slane %v3406_v41, 4 }
 0x4f8   : > { %v3430_v0 = vsel %vm8147_vm11, %v3416_v14, %v3417_v26  ;;  %vm8152_vm11 = vmmov %vm8150_vm0 }
 0x4f9   : > { %v3431_v6 = vsel %vm8148_vm15, %v3430_v0, %v3406_v41  ;;  %3523 = vrot.lane.b32.xlu0 %v7165_v22, %s4938_s16  ;;  %vm8153_vm15 = vmmov %vm8150_vm0 }
 0x4fa   : > { %v7200_v58 = vcombine.low %v3423_v1, %v3431_v6  ;;  %v7211_v57 = vcombine.high %v3423_v1, %v3431_v6 }
 0x4fc   : > { %3708 = vrot.lane.b32.xlu1 %v7200_v58, %s4932_s15 }
 0x4fd   : > { %3782 = vrot.lane.b32.xlu0 %v7165_v22, %s4931_s14 }
 0x4ff   : > { %v3398_v43 = vpop.permute.xlu0 %3397 }
 0x500   : > { %v3414_v3 = vrot.slane %v3398_v43, 4  ;;  %3665 = vrot.lane.b32.xlu1 %v7200_v58, %s4935_s24 }
 0x501   : > { %3746 = vrot.lane.b32.xlu0 %v7200_v58, %s4933_s18 }
 0x502   : > { %v3424_v38 = vsel %vm8149_vm1, %v3413_v27, %v3414_v3  ;;  %vm8154_vm1 = vcmask 805888  }
 0x503   : > { %v3425_v18 = vsel %vm8150_vm0, %v3424_v38, %v3398_v43  ;;  %v3408_v12 = vpop.permute.xlu1 %3407 }
 0x504   : > { %v3418_v39 = vrot.slane %v3408_v12, 4  ;;  %3630 = vrot.lane.b32.xlu1 %v7200_v58, %s4934_s23 }
 0x505   : > { %3748 = vrot.lane.b32.xlu0 %v7211_v57, %s4933_s18 }
 0x506   : > { %v3432_v52 = vsel %vm8151_vm4, %v3417_v26, %v3418_v39  ;;  %vm8155_vm4 = vmmov %vm8154_vm1 }
 0x507   : > { %v3433_v61 = vsel %vm8152_vm11, %v3432_v52, %v3408_v12  ;;  %vm8156_vm11 = vcmask 482304  }
 0x508   : > { %3595 = vrot.lane.b32.xlu1 %v7200_v58, %s4937_s13  ;;  %v7236_v5 = vcombine.low %v3425_v18, %v3433_v61  ;;  %v7250_v15 = vcombine.high %v3425_v18, %v3433_v61  ;;  %v3457_v18 = vld [vmem:[%s7820_s9] sm:$0xff] }
 0x509   : > { %3710 = vrot.lane.b32.xlu0 %v7211_v57, %s4932_s15 }
 0x50c   : > { %3560 = vrot.lane.b32.xlu1 %v7200_v58, %s4936_s28 }
 0x50d   : > { %3667 = vrot.lane.b32.xlu0 %v7211_v57, %s4935_s24 }
 0x510   : > { %3525 = vrot.lane.b32.xlu1 %v7200_v58, %s4938_s16 }
 0x511   : > { %3632 = vrot.lane.b32.xlu0 %v7211_v57, %s4934_s23 }
 0x514   : > { %3784 = vrot.lane.b32.xlu1 %v7200_v58, %s4931_s14 }
 0x515   : > { %3597 = vrot.lane.b32.xlu0 %v7211_v57, %s4937_s13 }
 0x518   : > { %3750 = vrot.lane.b32.xlu1 %v7236_v5, %s4933_s18 }
 0x519   : > { %3562 = vrot.lane.b32.xlu0 %v7211_v57, %s4936_s28 }
 0x51c   : > { %3712 = vrot.lane.b32.xlu1 %v7236_v5, %s4932_s15 }
 0x51d   : > { %3527 = vrot.lane.b32.xlu0 %v7211_v57, %s4938_s16 }
 0x520   : > { %3669 = vrot.lane.b32.xlu1 %v7236_v5, %s4935_s24 }
 0x521   : > { %3786 = vrot.lane.b32.xlu0 %v7211_v57, %s4931_s14 }
 0x523   : > { %v3400_v51 = vpop.permute.xlu0 %3399 }
 0x524   : > { %v3426_v16 = vsel %vm8153_vm15, %v3414_v3, %v3400_v51  ;;  %3634 = vrot.lane.b32.xlu1 %v7236_v5, %s4934_s23  ;;  %vm8157_vm15 = vmmov %vm8156_vm11 }
 0x525   : > { %3449 = vst.msk [vmem:[#allocation3 + $0x20] sm:$0xf] %vm8154_vm1, %v3426_v16  ;;  %3752 = vrot.lane.b32.xlu0 %v7250_v15, %s4933_s18  ;;  %vm8158_vm1 = vcmask 490496  }
 0x527   : > { %v3410_v17 = vpop.permute.xlu1 %3409  ;;  %v3741_v24 = vpop.permute.xlu0 %3740 }
 0x528   : > { %v3434_v48 = vsel %vm8150_vm0, %v3418_v39, %v3410_v17  ;;  %3599 = vrot.lane.b32.xlu1 %v7236_v5, %s4937_s13  ;;  %vm8159_vm0 = vmmov %vm8158_vm1 }
 0x529   : > { %3454 = vst.msk [vmem:[#allocation3 + $0x48] sm:$0xf] %vm8155_vm4, %v3434_v48  ;;  %3714 = vrot.lane.b32.xlu0 %v7250_v15, %s4932_s15  ;;  %vm8160_vm4 = vcmask 752640  }
 0x52b   : > { %v3703_v36 = vpop.permute.xlu1 %3702  ;;  %v3739_v23 = vpop.permute.xlu0 %3738 }
 0x52c   : > { %3564 = vrot.lane.b32.xlu1 %v7236_v5, %s4936_s28  ;;  %v3758_v8 = vsel %vm8157_vm15, %v3739_v23, %v3741_v24  ;;  %vm8162_vm15 = vcmask 760832  }
 0x52d   : > { %3756 = vrot.lane.b32.xlu0 %v4903_v44, %s4933_s18 }
 0x52f   : > { %v3701_v53 = vpop.permute.xlu1 %3700  ;;  %v3660_v14 = vpop.permute.xlu0 %3659 }
 0x530   : > { %3529 = vrot.lane.b32.xlu1 %v7236_v5, %s4938_s16  ;;  %v7269_v29 = vld [vmem:[#allocation3 + $0x20] ss:$40 sps:$4 sm:$0xff]   ;;  %v3720_v1 = vsel %vm8159_vm0, %v3701_v53, %v3703_v36  ;;  %vm8164_vm0 = vcmask 769024  }
 0x531   : > { %3673 = vrot.lane.b32.xlu0 %v7269_v29, %s4935_s24  ;;  %v4906_v19 = vld [vmem:[#allocation3 + $0x20] ss:$40 sps:$4 sm:$0xff]  }
 0x533   : > { %v3625_v21 = vpop.permute.xlu1 %3624  ;;  %v3658_v2 = vpop.permute.xlu0 %3657 }
 0x534   : > { %3788 = vrot.lane.b32.xlu1 %v7236_v5, %s4931_s14 }
 0x535   : > { %3636 = vrot.lane.b32.xlu0 %v7250_v15, %s4934_s23 }
 0x537   : > { %v3623_v49 = vpop.permute.xlu1 %3622  ;;  %v3590_v13 = vpop.permute.xlu0 %3589 }
 0x538   : > { %3671 = vrot.lane.b32.xlu1 %v7250_v15, %s4935_s24 }
 0x539   : > { %3601 = vrot.lane.b32.xlu0 %v7250_v15, %s4937_s13 }
 0x53b   : > { %v3555_v63 = vpop.permute.xlu1 %3554  ;;  %v3588_v31 = vpop.permute.xlu0 %3587 }
 0x53c   : > { %3754 = vrot.lane.b32.xlu1 %v4906_v19, %s4933_s18  ;;  %s4683_s18 = sshll.u32 %s8226_s22, 7  ;;  %s4973_s22 = smov 124  }
 0x53d   : > { %3566 = vrot.lane.b32.xlu0 %v7250_v15, %s4936_s28 }
 0x53f   : > { %v3553_v9 = vpop.permute.xlu1 %3552  ;;  %v3520_v62 = vpop.permute.xlu0 %3519 }
 0x540   : > { %3716 = vrot.lane.b32.xlu1 %v4906_v19, %s4932_s15 }
 0x541   : > { %3531 = vrot.lane.b32.xlu0 %v7250_v15, %s4938_s16 }
 0x543   : > { %v7285_v28 = vpop.permute.xlu1 %3778  ;;  %v3518_v34 = vpop.permute.xlu0 %3517 }
 0x544   : > { %3718 = vrot.lane.b32.xlu1 %v4903_v44, %s4932_s15  ;;  %s4983_s15 = smov 104  }
 0x545   : > { %3790 = vrot.lane.b32.xlu0 %v7250_v15, %s4931_s14 }
 0x547   : > { %v3777_v37 = vpop.permute.xlu1 %3776  ;;  %v7290_v47 = vpop.permute.xlu0 %3704 }
 0x548   : > { %3638 = vrot.lane.b32.xlu1 %v7269_v29, %s4934_s23  ;;  %v3721_v25 = vsel %vm8158_vm1, %v3703_v36, %v7290_v47  ;;  %vm8163_vm1 = vmmov %vm8162_vm15  ;;  %s4985_s23 = smov 100  }
 0x549   : > { %3794 = vrot.lane.b32.xlu0 %v4903_v44, %s4931_s14  ;;  %v3640_v38 = vsel %vm8163_vm1, %v3623_v49, %v3625_v21  ;;  %vm8168_vm1 = vcmask 1039360  }
 0x54b   : > { %v7296_v45 = vpop.permute.xlu1 %3742  ;;  %v7298_v7 = vpop.permute.xlu0 %3626 }
 0x54c   : > { %v3759_v11 = vsel %vm8156_vm11, %v3741_v24, %v7296_v45  ;;  %3603 = vrot.lane.b32.xlu1 %v7269_v29, %s4937_s13  ;;  %vm8161_vm11 = vmmov %vm8160_vm4  ;;  %v3641_v6 = vsel %vm8162_vm15, %v3625_v21, %v7298_v7 }
 0x54d   : > { %3837 = vmatprep.subr.bf16.mxu0 %v3759_v11  ;;  %3821 = vperm.xlu0 %4873, %v3458_v60   ;;  %v3675_v0 = vsel %vm8161_vm11, %v3658_v2, %v3660_v14  ;;  %vm8166_vm11 = vcmask 1031168   ;;  %v7355_v2 = vld [vmem:[%s7819_s8] ss:$8 sps:$4 sm:$0xff]  }
 0x54e   : > { %3838 = vmatpush1.bf16.msra.mxu0 %v3758_v8  ;;  %vm8167_vm15 = vmmov %vm8166_vm11 }
 0x54f   : > { %v7308_v50 = vpop.permute.xlu1 %3661  ;;  %3839 = vmatprep.subr.bf16.mxu0 %v3721_v25  ;;  %v7310_v27 = vpop.permute.xlu0 %3556  ;;  %v3570_v17 = vsel %vm8167_vm15, %v3553_v9, %v3555_v63  ;;  %vm8172_vm15 = vcmask 482304  }
 0x550   : > { %3568 = vrot.lane.b32.xlu1 %v7269_v29, %s4936_s28  ;;  %v3676_v41 = vsel %vm8160_vm4, %v3660_v14, %v7308_v50  ;;  %vm8165_vm4 = vmmov %vm8164_vm0  ;;  %v3571_v61 = vsel %vm8166_vm11, %v3555_v63, %v7310_v27 }
 0x551   : > { %v3605_v52 = vsel %vm8165_vm4, %v3588_v31, %v3590_v13  ;;  %vm8170_vm4 = vcmask 474112  }
 0x552   : > { %3840 = vmatpush1.bf16.msra.mxu0 %v3720_v1  ;;  %vm8171_vm11 = vmmov %vm8170_vm4 }
 0x553   : > { %3841 = vmatprep.subr.bf16.mxu0 %v3676_v41  ;;  %v7320_v26 = vpop.permute.xlu0 %3780  ;;  %v7327_v43 = vpop.permute.xlu1 %3591  ;;  %v3796_v21 = vsel %vm8171_vm11, %v3777_v37, %v7285_v28  ;;  %vm8176_vm11 = vcmask 752640  }
 0x554   : > { %3533 = vrot.lane.b32.xlu1 %v7269_v29, %s4938_s16  ;;  %v3606_v12 = vsel %vm8164_vm0, %v3590_v13, %v7327_v43  ;;  %vm8169_vm0 = vmmov %vm8168_vm1  ;;  %v3797_v14 = vsel %vm8170_vm4, %v7285_v28, %v7320_v26  ;;  %s4974_s16 = smov 122  }
 0x555   : > { %v3535_v36 = vsel %vm8169_vm0, %v3518_v34, %v3520_v62  ;;  %vm8174_vm0 = vcmask 490496  }
 0x556   : > { %3842 = vmatpush1.bf16.msra.mxu0 %v3675_v0  ;;  %vm8175_vm4 = vmmov %vm8174_vm0 }
 0x557   : > { %3843 = vmatprep.subr.bf16.mxu0 %v3641_v6  ;;  %v3707_v3 = vpop.permute.xlu0 %3706  ;;  %v7339_v51 = vpop.permute.xlu1 %3521 }
 0x558   : > { %3792 = vrot.lane.b32.xlu1 %v4906_v19, %s4931_s14  ;;  %v3536_v24 = vsel %vm8168_vm1, %v3520_v62, %v7339_v51  ;;  %vm8173_vm1 = vmmov %vm8172_vm15  ;;  %v3722_v28 = vsel %vm8175_vm4, %v7290_v47, %v3707_v3  ;;  %vm8180_vm4 = vcmask 769024   ;;  %s7591_s14 = scalar_lea.vmem %s7823_s12, %s4683_s18  ;;  %s4984_s18 = smov 102  }
 0x55a   : > { %3844 = vmatpush1.bf16.msra.mxu0 %v3640_v38 }
 0x55b   : > { %3845 = vmatprep.subr.bf16.mxu0 %v3606_v12  ;;  %v3664_v39 = vpop.permute.xlu0 %3663  ;;  %v3745_v53 = vpop.permute.xlu1 %3744 }
 0x55c   : > { %3816 = vperm.xlu1 %4872, %v3457_v18   ;;  %v3760_v63 = vsel %vm8173_vm1, %v7296_v45, %v3745_v53  ;;  %vm8178_vm1 = vcmask 760832  }
 0x55e   : > { %3846 = vmatpush1.bf16.msra.mxu0 %v3605_v52 }
 0x55f   : > { %3847 = vmatprep.subr.bf16.mxu0 %v3571_v61  ;;  %v3629_v16 = vpop.permute.xlu0 %3628 }
 0x562   : > { %3848 = vmatpush1.bf16.msra.mxu0 %v3570_v17 }
 0x563   : > { %3849 = vmatprep.subr.bf16.mxu0 %v3536_v24  ;;  %v3594_v48 = vpop.permute.xlu0 %3593 }
 0x566   : > { %3850 = vmatpush1.bf16.msra.mxu0 %v3535_v36 }
 0x567   : > { %3851 = vmatprep.subr.bf16.mxu0 %v7112_v33  ;;  %v3559_v23 = vpop.permute.xlu0 %3558 }
 0x56a   : > { %3852 = vmatpush1.bf16.msra.mxu0 %v7117_v4 }
 0x56b   : > { %3867 = vmatprep.subr.bf16.mxu0 %v3797_v14  ;;  %v3524_v44 = vpop.permute.xlu0 %3523 }
 0x56e   : > { %3868 = vmatpush2.bf16.msra.mxu0 %v3796_v21  ;;  %v3709_v33 = vpop.permute.xlu1 %3708 }
 0x56f   : > { %v7357_v49 = vpop.permute.xlu0 %3782  ;;  %v3723_v31 = vsel %vm8174_vm0, %v3707_v3, %v3709_v33  ;;  %vm8179_vm0 = vmmov %vm8178_vm1 }
 0x570   : > { %v3642_v1 = vsel %vm8179_vm0, %v7298_v7, %v3629_v16  ;;  %vm8184_vm0 = vcmask 1039360  }
 0x571   : > { %3870 = vmatmul.mubr.bf16.vlgmr.msra.gmra.mxu0 %v7355_v2 }
 0x572   : > { %v3666_v4 = vpop.permute.xlu1 %3665  ;;  %4675 = vmatprep.mubr.msk.bf16.mxu0 %vm3833_vm7, %v7180_v55 }
 0x573   : > { %v3747_v13 = vpop.permute.xlu0 %3746  ;;  %v3678_v34 = vsel %vm8176_vm11, %v3664_v39, %v3666_v4 }
 0x574   : > { %v3761_v19 = vsel %vm8172_vm15, %v3745_v53, %v3747_v13  ;;  %vm8177_vm15 = vmmov %vm8176_vm11 }
 0x575   : > { %3880 = vmatprep.subr.bf16.mxu1 %v3761_v19  ;;  %v3677_v8 = vsel %vm8177_vm15, %v7308_v50, %v3664_v39  ;;  %vm8181_vm11 = vmmov %vm8180_vm4  ;;  %vm8182_vm15 = vcmask 1031168  }
 0x576   : > { %3881 = vmatpush1.bf16.msra.mxu1 %v3760_v63  ;;  %v3631_v9 = vpop.permute.xlu1 %3630  ;;  %v3607_v6 = vsel %vm8181_vm11, %v7327_v43, %v3594_v48 }
 0x577   : > { %3882 = vmatprep.subr.bf16.mxu1 %v3723_v31  ;;  %v3749_v62 = vpop.permute.xlu0 %3748  ;;  %v3643_v45 = vsel %vm8178_vm1, %v3629_v16, %v3631_v9  ;;  %vm8183_vm1 = vmmov %vm8182_vm15 }
 0x578   : > { %v3572_v18 = vsel %vm8183_vm1, %v7310_v27, %v3559_v23  ;;  %vm8188_vm1 = vcmask 490496  }
 0x57a   : > { %3883 = vmatpush1.bf16.msra.mxu1 %v3722_v28  ;;  %v3596_v37 = vpop.permute.xlu1 %3595 }
 0x57b   : > { %3884 = vmatprep.subr.bf16.mxu1 %v3678_v34  ;;  %v3711_v11 = vpop.permute.xlu0 %3710  ;;  %v3608_v47 = vsel %vm8180_vm4, %v3594_v48, %v3596_v37  ;;  %vm8185_vm4 = vcmask 482304  }
 0x57c   : > { %vm8186_vm11 = vmmov %vm8185_vm4 }
 0x57d   : > { %v3762_v52 = vsel %vm8186_vm11, %v3747_v13, %v3749_v62  ;;  %vm8191_vm11 = vcmask 752640  }
 0x57e   : > { %3885 = vmatpush1.bf16.msra.mxu1 %v3677_v8  ;;  %v3561_v25 = vpop.permute.xlu1 %3560 }
 0x57f   : > { %3886 = vmatprep.subr.bf16.mxu1 %v3643_v45  ;;  %v3668_v60 = vpop.permute.xlu0 %3667  ;;  %v3573_v50 = vsel %vm8182_vm15, %v3559_v23, %v3561_v25  ;;  %vm8187_vm15 = vmmov %vm8184_vm0 }
 0x580   : > { %v3537_v61 = vsel %vm8187_vm15, %v7339_v51, %v3524_v44  ;;  %vm8192_vm15 = vmmov %vm8191_vm11 }
 0x581   : > { %v3679_v36 = vsel %vm8192_vm15, %v3666_v4, %v3668_v60 }
 0x582   : > { %3887 = vmatpush1.bf16.msra.mxu1 %v3642_v1  ;;  %v3526_v41 = vpop.permute.xlu1 %3525 }
 0x583   : > { %3888 = vmatprep.subr.bf16.mxu1 %v3608_v47  ;;  %v3633_v0 = vpop.permute.xlu0 %3632  ;;  %v3538_v7 = vsel %vm8184_vm0, %v3524_v44, %v3526_v41  ;;  %vm8189_vm0 = vmmov %vm8188_vm1 }
 0x584   : > { %v3724_v17 = vsel %vm8189_vm0, %v3709_v33, %v3711_v11  ;;  %vm8194_vm0 = vcmask 760832  }
 0x586   : > { %3889 = vmatpush1.bf16.msra.mxu1 %v3607_v6  ;;  %v7378_v3 = vpop.permute.xlu1 %3784 }
 0x587   : > { %3890 = vmatprep.subr.bf16.mxu1 %v3573_v50  ;;  %v3598_v38 = vpop.permute.xlu0 %3597 }
 0x58a   : > { %3891 = vmatpush1.bf16.msra.mxu1 %v3572_v18  ;;  %v7383_v12 = vpop.permute.xlu1 %3750 }
 0x58b   : > { %3892 = vmatprep.subr.bf16.mxu1 %v3538_v7  ;;  %v3563_v39 = vpop.permute.xlu0 %3562  ;;  %v3763_v43 = vsel %vm8185_vm4, %v3749_v62, %v7383_v12  ;;  %vm8190_vm4 = vcmask 474112  }
 0x58c   : > { %3923 = vmatprep.subr.bf16.mxu0 %v3763_v43  ;;  %v3799_v51 = vsel %vm8190_vm4, %v7357_v49, %v7378_v3 }
 0x58d   : > { %3924 = vmatpush1.bf16.msra.mxu0 %v3762_v52 }
 0x58e   : > { %3893 = vmatpush1.bf16.msra.mxu1 %v3537_v61  ;;  %v7390_v16 = vpop.permute.xlu1 %3712 }
 0x58f   : > { %3894 = vmatprep.subr.bf16.mxu1 %v7165_v22  ;;  %v3725_v27 = vsel %vm8188_vm1, %v3711_v11, %v7390_v16  ;;  %v3528_v24 = vpop.permute.xlu0 %3527  ;;  %vm8193_vm1 = vmmov %vm8190_vm4 }
 0x590   : > { %3925 = vmatprep.subr.bf16.mxu0 %v3725_v27  ;;  %v3798_v23 = vsel %vm8193_vm1, %v7320_v26, %v7357_v49  ;;  %vm8195_vm4 = vmmov %vm8194_vm0  ;;  %vm8198_vm1 = vcmask 1031168  }
 0x591   : > { %3926 = vmatpush1.bf16.msra.mxu0 %v3724_v17  ;;  %v3644_v44 = vsel %vm8195_vm4, %v3631_v9, %v3633_v0  ;;  %vm8200_vm4 = vcmask 1039360  }
 0x592   : > { %3895 = vmatpush1.bf16.msra.mxu1 %v7147_v30  ;;  %v7400_v48 = vpop.permute.xlu1 %3669 }
 0x593   : > { %3910 = vmatprep.subr.bf16.mxu1 %v3799_v51  ;;  %v3680_v22 = vsel %vm8191_vm11, %v3668_v60, %v7400_v48  ;;  %v3787_v53 = vpop.permute.xlu0 %3786  ;;  %vm8196_vm11 = vcmask 769024  }
 0x594   : > { %3927 = vmatprep.subr.bf16.mxu0 %v3680_v22  ;;  %vm8197_vm15 = vmmov %vm8196_vm11 }
 0x595   : > { %3928 = vmatpush1.bf16.msra.mxu0 %v3679_v36  ;;  %v3609_v33 = vsel %vm8197_vm15, %v3596_v37, %v3598_v38  ;;  %vm8202_vm15 = vcmask 474112  }
 0x596   : > { %3911 = vmatpush2.bf16.msra.mxu1 %v3798_v23  ;;  %v7408_v30 = vpop.permute.xlu1 %3634 }
 0x597   : > { %v3645_v14 = vsel %vm8194_vm0, %v3633_v0, %v7408_v30  ;;  %v3753_v49 = vpop.permute.xlu0 %3752  ;;  %vm8199_vm0 = vmmov %vm8198_vm1 }
 0x598   : > { %3929 = vmatprep.subr.bf16.mxu0 %v3645_v14  ;;  %v3574_v19 = vsel %vm8199_vm0, %v3561_v25, %v3563_v39  ;;  %vm8204_vm0 = vcmask 482304  }
 0x599   : > { %3913 = vmatmul.mubr.bf16.vlgmr.msra.gmra.mxu1 %v7355_v2  ;;  %3930 = vmatpush1.bf16.msra.mxu0 %v3644_v44 }
 0x59a   : > { %v7414_v21 = vpop.permute.xlu1 %3599  ;;  %4676 = vmatprep.mubr.msk.bf16.mxu1 %vm3833_vm7, %v7180_v55 }
 0x59b   : > { %v3610_v26 = vsel %vm8196_vm11, %v3598_v38, %v7414_v21  ;;  %v3715_v31 = vpop.permute.xlu0 %3714  ;;  %vm8201_vm11 = vmmov %vm8200_vm4 }
 0x59c   : > { %3931 = vmatprep.subr.bf16.mxu0 %v3610_v26  ;;  %v3539_v62 = vsel %vm8201_vm11, %v3526_v41, %v3528_v24  ;;  %vm8206_vm11 = vmmov %vm8204_vm0 }
 0x59d   : > { %3932 = vmatpush1.bf16.msra.mxu0 %v3609_v33 }
 0x59e   : > { %v7421_v4 = vpop.permute.xlu1 %3564 }
 0x59f   : > { %v3575_v13 = vsel %vm8198_vm1, %v3563_v39, %v7421_v4  ;;  %v3757_v34 = vpop.permute.xlu0 %3756  ;;  %vm8203_vm1 = vmmov %vm8202_vm15 }
 0x5a0   : > { %3933 = vmatprep.subr.bf16.mxu0 %v3575_v13  ;;  %v3800_v8 = vsel %vm8203_vm1, %v7378_v3, %v3787_v53 }
 0x5a1   : > { %3934 = vmatpush1.bf16.msra.mxu0 %v3574_v19 }
 0x5a2   : > { %v7426_v63 = vpop.permute.xlu1 %3529 }
 0x5a3   : > { %v3540_v9 = vsel %vm8200_vm4, %v3528_v24, %v7426_v63  ;;  %v3674_v45 = vpop.permute.xlu0 %3673  ;;  %vm8205_vm4 = vmmov %vm8204_vm0 }
 0x5a4   : > { %3935 = vmatprep.subr.bf16.mxu0 %v3540_v9 }
 0x5a5   : > { %3936 = vmatpush1.bf16.msra.mxu0 %v3539_v62 }
 0x5a6   : > { %v7431_v28 = vpop.permute.xlu1 %3788  ;;  %3937 = vmatprep.subr.bf16.mxu0 %v7211_v57 }
 0x5a7   : > { %v3801_v37 = vsel %vm8202_vm15, %v3787_v53, %v7431_v28  ;;  %v3637_v47 = vpop.permute.xlu0 %3636  ;;  %vm8207_vm15 = vcmask 490496  }
 0x5a8   : > { %vm8208_vm1 = vmmov %vm8207_vm15 }
 0x5a9   : > { %3938 = vmatpush1.bf16.msra.mxu0 %v7200_v58  ;;  %v3764_v58 = vsel %vm8206_vm11, %v7383_v12, %v3753_v49  ;;  %v3726_v0 = vsel %vm8208_vm1, %v7390_v16, %v3715_v31 }
 0x5aa   : > { %v3672_v11 = vpop.permute.xlu1 %3671  ;;  %3953 = vmatprep.subr.bf16.mxu0 %v3801_v37 }
 0x5ab   : > { %v3602_v18 = vpop.permute.xlu0 %3601 }
 0x5ad   : > { %3954 = vmatpush2.bf16.msra.mxu0 %v3800_v8 }
 0x5ae   : > { %v3755_v25 = vpop.permute.xlu1 %3754  ;;  %4009 = vmatprep.subr.bf16.mxu0 %v6782_v56 }
 0x5af   : > { %v3765_v60 = vsel %vm8204_vm0, %v3753_v49, %v3755_v25  ;;  %v3766_v57 = vsel %vm8205_vm4, %v3755_v25, %v3757_v34  ;;  %vm8209_vm0 = vcmask 752640   ;;  %vm8210_vm4 = vmmov %vm8208_vm1  ;;  %v3567_v43 = vpop.permute.xlu0 %3566  ;;  %vm8214_vm1 = vcmask 769024  }
 0x5b0   : > { %3956 = vmatmul.mubr.bf16.vlgmr.msra.gmra.mxu0 %v7355_v2  ;;  %3966 = vmatprep.subr.bf16.mxu1 %v3765_v60  ;;  %v3682_v6 = vsel %vm8209_vm0, %v3672_v11, %v3674_v45  ;;  %vm8211_vm11 = vmmov %vm8209_vm0 }
 0x5b1   : > { %3967 = vmatpush1.bf16.msra.mxu1 %v3764_v58  ;;  %4010 = vmatpush1.bf16.msra.mxu0 %v3766_v57  ;;  %v3681_v38 = vsel %vm8211_vm11, %v7400_v48, %v3672_v11  ;;  %vm8215_vm0 = vmmov %vm8214_vm1 }
 0x5b2   : > { %v3717_v1 = vpop.permute.xlu1 %3716  ;;  %4011 = vmatprep.subr.bf16.mxu0 %v6782_v56  ;;  %4677 = vmatprep.mubr.msk.bf16.mxu0 %vm3833_vm7, %v7180_v55  ;;  %vm8212_vm7 = vcmask 760832   ;;  %v3611_v61 = vsel %vm8215_vm0, %v7414_v21, %v3602_v18 }
 0x5b3   : > { %v3727_v41 = vsel %vm8207_vm15, %v3715_v31, %v3717_v1  ;;  %vm8213_vm15 = vmmov %vm8212_vm7  ;;  %v3532_v24 = vpop.permute.xlu0 %3531 }
 0x5b4   : > { %3968 = vmatprep.subr.bf16.mxu1 %v3727_v41  ;;  %v3646_v12 = vsel %vm8213_vm15, %v7408_v30, %v3637_v47 }
 0x5b5   : > { %3969 = vmatpush1.bf16.msra.mxu1 %v3726_v0 }
 0x5b6   : > { %v3719_v50 = vpop.permute.xlu1 %3718  ;;  %3970 = vmatprep.subr.bf16.mxu1 %v3682_v6 }
 0x5b7   : > { %v3728_v3 = vsel %vm8210_vm4, %v3717_v1, %v3719_v50  ;;  %vm8216_vm4 = vcmask 1031168   ;;  %v3791_v23 = vpop.permute.xlu0 %3790 }
 0x5b8   : > { %4012 = vmatpush1.bf16.msra.mxu0 %v3728_v3  ;;  %vm8217_vm11 = vmmov %vm8216_vm4 }
 0x5b9   : > { %3971 = vmatpush1.bf16.msra.mxu1 %v3681_v38  ;;  %4013 = vmatprep.subr.bf16.mxu0 %v6782_v56  ;;  %v3576_v17 = vsel %vm8217_vm11, %v7421_v4, %v3567_v43  ;;  %vm8223_vm11 = vcmask 752640  }
 0x5ba   : > { %v3639_v55 = vpop.permute.xlu1 %3638 }
 0x5bb   : > { %v3647_v7 = vsel %vm8212_vm7, %v3637_v47, %v3639_v55  ;;  %vm8218_vm7 = vcmask 1039360   ;;  %v3795_v14 = vpop.permute.xlu0 %3794 }
 0x5bc   : > { %3972 = vmatprep.subr.bf16.mxu1 %v3647_v7  ;;  %4014 = vmatpush1.bf16.msra.mxu0 %v3674_v45  ;;  %vm8219_vm15 = vmmov %vm8218_vm7 }
 0x5bd   : > { %3973 = vmatpush1.bf16.msra.mxu1 %v3646_v12  ;;  %4015 = vmatprep.subr.bf16.mxu0 %v6782_v56  ;;  %v3541_v22 = vsel %vm8219_vm15, %v7426_v63, %v3532_v24  ;;  %vm4385_vm15 = vcmask 687104  }
 0x5be   : > { %v3604_v39 = vpop.permute.xlu1 %3603 }
 0x5bf   : > { %v3612_v52 = vsel %vm8214_vm1, %v3602_v18, %v3604_v39  ;;  %vm8220_vm1 = vcmask 474112  }
 0x5c0   : > { %3974 = vmatprep.subr.bf16.mxu1 %v3612_v52  ;;  %4016 = vmatpush1.bf16.msra.mxu0 %v3639_v55  ;;  %vm8221_vm0 = vmmov %vm8220_vm1 }
 0x5c1   : > { %3975 = vmatpush1.bf16.msra.mxu1 %v3611_v61  ;;  %4017 = vmatprep.subr.bf16.mxu0 %v6782_v56  ;;  %v3802_v53 = vsel %vm8221_vm0, %v7431_v28, %v3791_v23 }
 0x5c2   : > { %v3569_v16 = vpop.permute.xlu1 %3568 }
 0x5c3   : > { %v3577_v27 = vsel %vm8216_vm4, %v3567_v43, %v3569_v16  ;;  %vm8222_vm4 = vmmov %vm8221_vm0 }
 0x5c4   : > { %3976 = vmatprep.subr.bf16.mxu1 %v3577_v27  ;;  %4018 = vmatpush1.bf16.msra.mxu0 %v3604_v39 }
 0x5c5   : > { %3977 = vmatpush1.bf16.msra.mxu1 %v3576_v17  ;;  %4019 = vmatprep.subr.bf16.mxu0 %v6782_v56 }
 0x5c6   : > { %v3534_v51 = vpop.permute.xlu1 %3533 }
 0x5c7   : > { %v3542_v48 = vsel %vm8218_vm7, %v3532_v24, %v3534_v51  ;;  %vm8224_vm7 = vmmov %vm8223_vm11 }
 0x5c8   : > { %3978 = vmatprep.subr.bf16.mxu1 %v3542_v48  ;;  %4020 = vmatpush1.bf16.msra.mxu0 %v3569_v16  ;;  %v3822_v63 = vpop.permute.xlu0 %3821 }
 0x5c9   : > { %3979 = vmatpush1.bf16.msra.mxu1 %v3541_v22  ;;  %4021 = vmatprep.subr.bf16.mxu0 %v6782_v56 }
 0x5ca   : > { %v3793_v36 = vpop.permute.xlu1 %3792  ;;  %3980 = vmatprep.subr.bf16.mxu1 %v7250_v15 }
 0x5cb   : > { %v3803_v30 = vsel %vm8220_vm1, %v3791_v23, %v3793_v36  ;;  %v3804_v15 = vsel %vm8222_vm4, %v3793_v36, %v3795_v14  ;;  %vm4467_vm1 = vcmask 556032  }
 0x5cc   : > { %4022 = vmatpush1.bf16.msra.mxu0 %v3534_v51 }
 0x5cd   : > { %3981 = vmatpush1.bf16.msra.mxu1 %v7236_v5  ;;  %4023 = vmatprep.subr.bf16.mxu0 %v6782_v56 }
 0x5ce   : > { %3996 = vmatprep.subr.bf16.mxu1 %v3803_v30 }
 0x5d0   : > { %4024 = vmatpush1.bf16.msra.mxu0 %v7269_v29 }
 0x5d1   : > { %3997 = vmatpush2.bf16.msra.mxu1 %v3802_v53  ;;  %4039 = vmatprep.subr.bf16.mxu0 %v6782_v56 }
 0x5d4   : > { %3999 = vmatmul.mubr.bf16.vlgmr.msra.gmra.mxu1 %v7355_v2  ;;  %4040 = vmatpush2.bf16.msra.mxu0 %v3804_v15 }
 0x5d7   : > { %4042 = vmatmul.mubr.bf16.vlgmr.msra.gmra.mxu0 %v7355_v2  ;;  %v3817_v33 = vpop.permute.xlu1 %3816 }
 0x631   : > { %v3871_v5 = vpop.f32.mrf.mxu0 }
 0x632   : > { %v7485_v29 = vadd.f32 %v3871_v5, %v3817_v33 }
 0x633   : > { %v3873_v44 = vpop.f32.mrf.mxu0 }
 0x634   : > { %v7483_v13 = vadd.f32 %v3873_v44, %v3817_v33  ;;  %v4050_v62 = vsel %vm5725_vm6, %v7485_v29, 0.0 }
 0x635   : > { %v3875_v21 = vpop.f32.mrf.mxu0 }
 0x636   : > { %v4051_v2 = vsel %vm5716_vm12, %v7483_v13, 0.0  ;;  %v7497_v34 = vadd.f32 %v3875_v21, %v3822_v63 }
 0x637   : > { %v3877_v49 = vpop.f32.mrf.mxu0  ;;  %v4068_v45 = vadd.f32 %v4051_v2, %v4050_v62 }
 0x638   : > { %v7492_v9 = vadd.f32 %v3877_v49, %v3822_v63  ;;  %v4059_v47 = vsel %vm5725_vm6, %v7497_v34, 0.0  ;;  %vm4165_vm6 = vcmask 523520  }
 0x63a   : > { %v4060_v60 = vsel %vm5716_vm12, %v7492_v9, 0.0  ;;  %vm4075_vm12 = vcmask 523264  }
 0x63b   : > { %v4080_v35 = vadd.f32 %v4060_v60, %v4059_v47 }
 0x659   : > { %v3914_v26 = vpop.f32.mrf.mxu1 }
 0x65a   : > { %v7487_v19 = vadd.f32 %v3914_v26, %v3817_v33 }
 0x65b   : > { %v3916_v4 = vpop.f32.mrf.mxu1 }
 0x65c   : > { %v4052_v37 = vsel %vm5866_vm10, %v7487_v19, 0.0  ;;  %v7502_v11 = vadd.f32 %v3916_v4, %v3817_v33 }
 0x65d   : > { %v3918_v31 = vpop.f32.mrf.mxu1  ;;  %v4069_v58 = vadd.f32 %v4068_v45, %v4052_v37 }
 0x65e   : > { %v7504_v8 = vadd.f32 %v3918_v31, %v3822_v63  ;;  %v4053_v41 = vsel %vm5854_vm8, %v7502_v11, 0.0 }
 0x65f   : > { %v3920_v25 = vpop.f32.mrf.mxu1  ;;  %v4070_v40 = vadd.f32 %v4069_v58, %v4053_v41 }
 0x660   : > { %v4061_v0 = vsel %vm5866_vm10, %v7504_v8, 0.0  ;;  %v7520_v6 = vadd.f32 %v3920_v25, %v3822_v63  ;;  %vm4229_vm10 = vcmask 932864  }
 0x661   : > { %v4081_v18 = vadd.f32 %v4080_v35, %v4061_v0 }
 0x662   : > { %v4062_v7 = vsel %vm5854_vm8, %v7520_v6, 0.0  ;;  %vm4192_vm8 = vcmask 1048320  }
 0x663   : > { %v4082_v52 = vadd.f32 %v4081_v18, %v4062_v7 }
 0x670   : > { %v3957_v56 = vpop.f32.mrf.mxu0 }
 0x671   : > { %v7509_v57 = vadd.f32 %v3957_v56, %v3817_v33 }
 0x672   : > { %v3959_v28 = vpop.f32.mrf.mxu0 }
 0x673   : > { %v4054_v50 = vsel %vm5817_vm9, %v7509_v57, 0.0  ;;  %v7525_v3 = vadd.f32 %v3959_v28, %v3817_v33 }
 0x674   : > { %v3961_v1 = vpop.f32.mrf.mxu0  ;;  %v4071_v46 = vadd.f32 %v4070_v40, %v4054_v50 }
 0x675   : > { %v7527_v38 = vadd.f32 %v3961_v1, %v3822_v63  ;;  %v4055_v12 = vsel %vm5822_vm13, %v7525_v3, 0.0 }
 0x676   : > { %v3963_v55 = vpop.f32.mrf.mxu0  ;;  %v4072_v27 = vadd.f32 %v4071_v46, %v4055_v12  ;;  %v4109_v12 = vld [vmem:[%s7822_s11] sm:$0xff] }
 0x677   : > { %v4063_v39 = vsel %vm5817_vm9, %v7527_v38, 0.0  ;;  %v7538_v43 = vadd.f32 %v3963_v55, %v3822_v63  ;;  %vm4174_vm9 = vcmask 785920  }
 0x678   : > { %v4083_v17 = vadd.f32 %v4082_v52, %v4063_v39  ;;  %v4110_v39 = vld [vmem:[%s7822_s11 + $0x8] sm:$0xff] }
 0x679   : > { %v4064_v42 = vsel %vm5822_vm13, %v7538_v43, 0.0  ;;  %vm4187_vm13 = vcmask 998400  }
 0x67a   : > { %v4084_v14 = vadd.f32 %v4083_v17, %v4064_v42 }
 0x694   : > { %v4000_v61 = vpop.f32.mrf.mxu1 }
 0x695   : > { %v7540_v16 = vadd.f32 %v4000_v61, %v3817_v33 }
 0x696   : > { %v4002_v24 = vpop.f32.mrf.mxu1 }
 0x697   : > { %v4056_v51 = vsel %vm6080_vm2, %v7540_v16, 0.0  ;;  %v7548_v48 = vadd.f32 %v4002_v24, %v3817_v33  ;;  %v4043_v54 = vpop.f32.mrf.mxu0 }
 0x698   : > { %v4073_v22 = vadd.f32 %v4072_v27, %v4056_v51  ;;  %v7550_v36 = vadd.f32 %v4043_v54, %v3817_v33  ;;  %v4004_v23 = vpop.f32.mrf.mxu1 }
 0x699   : > { %v4057_v30 = vsel %vm6071_vm3, %v7548_v48, 0.0  ;;  %v7555_v53 = vadd.f32 %v4004_v23, %v3822_v63  ;;  %v4045_v32 = vpop.f32.mrf.mxu0 }
 0x69a   : > { %v4074_v15 = vadd.f32 %v4073_v22, %v4057_v30  ;;  %v4058_v5 = vsel %vm5907_vm14, %v7550_v36, 0.0  ;;  %v4006_v44 = vpop.f32.mrf.mxu1 }
 0x69b   : > { %v4076_v21 = vsel %vm4075_vm12, %v4058_v5, 0.0  ;;  %v4065_v26 = vsel %vm6080_vm2, %v7555_v53, 0.0  ;;  %v7564_v33 = vadd.f32 %v4006_v44, %v3822_v63  ;;  %v4046_v49 = vpop.f32.mrf.mxu0  ;;  %vm4311_vm2 = vcmask 801792  }
 0x69c   : > { %v4085_v4 = vadd.f32 %v4084_v14, %v4065_v26  ;;  %v7566_v56 = vadd.f32 %v4046_v49, %v3822_v63  ;;  %v4077_v31 = vadd.f32 %v4076_v21, %v4074_v15  ;;  %v4094_v63 = vld [vmem:[%s7821_s10] sm:$0xff] }
 0x69d   : > { %v4066_v2 = vsel %vm6071_vm3, %v7564_v33, 0.0  ;;  %v4048_v62 = vpop.f32.mrf.mxu0  ;;  %vm4098_vm3 = vcmask 7168  }
 0x69e   : > { %v4086_v28 = vadd.f32 %v4085_v4, %v4066_v2  ;;  %v4067_v37 = vsel %vm5907_vm14, %v7566_v56, 0.0  ;;  %4078 = vadd.xlane.f32.xlu1 %v4077_v31  ;;  %vm4270_vm14 = vcmask 867328  }
 0x69f   : > { %v4087_v10 = vsel %vm4075_vm12, %v4067_v37, 0.0 }
 0x6a0   : > { %v4088_v45 = vadd.f32 %v4087_v10, %v4086_v28 }
 0x6a2   : > { %4089 = vadd.xlane.f32.xlu0 %v4088_v45 }
 0x727   : > { %v4079_v25 = vpop.xlane.xlu1 %4078 }
 0x728   : > { %v4092_v60 = vmul.f32 0.0009765625, %v4079_v25 }
 0x72a   : > { %v4096_v1 = vmul.f32 %v4094_v63, %v4092_v60 }
 0x72b   : > { %v4090_v58 = vpop.xlane.xlu0 %4089 }
 0x72c   : > { %v4093_v47 = vmul.f32 0.0009765625, %v4090_v58  ;;  %v4099_v41 = vsel %vm4098_vm3, %v4096_v1, 0.0 }
 0x72e   : > { %v4097_v59 = vmul.f32 %v4095_v20, %v4093_v47 }
 0x730   : > { %v4100_v0 = vsel %vm4098_vm3, %v4097_v59, 0.0 }
 0x731   : > { %v4101_v35 = vadd.f32 %v4100_v0, %v4099_v41 }
 0x733   : > { %v4102_v50 = vrot.slane %v4101_v35, 4 }
 0x735   : > { %v4103_v40 = vadd.f32 %v4102_v50, %v4101_v35 }
 0x737   : > { %v4104_v18 = vrot.slane %v4103_v40, 2 }
 0x739   : > { %v4105_v55 = vadd.f32 %v4104_v18, %v4103_v40 }
 0x73b   : > { %v4106_v7 = vrot.slane %v4105_v55, 1 }
 0x73d   : > { %v4107_v46 = vadd.f32 %v4106_v7, %v4105_v55 }
 0x73f   : > { %v4108_v52 = vmax.f32 %v4107_v46, 0.0 }
 0x741   : > { %v4111_v61 = vmul.f32 %v4109_v12, %v4108_v52  ;;  %v4112_v27 = vmul.f32 %v4110_v39, %v4108_v52 }
 0x743   : > { %v4678_v17 = vmul.f32 -1.442695, %v4111_v61  ;;  %v4679_v24 = vmul.f32 -1.442695, %v4112_v27 }
 0x745   : > { %4910 = vpow2.f32 %v4678_v17 }
 0x746   : > { %4912 = vpow2.f32 %v4679_v24 }
 0x752   : > { %v4911_v42 = vpop.eup %4910 }
 0x753   : > { %v4913_v51 = vpop.eup %4912  ;;  %v4121_v54 = vadd.f32 1.0, %v4911_v42 }
 0x754   : > { %v4122_v22 = vadd.f32 1.0, %v4913_v51 }
 0x755   : > { %4914 = vrcp.f32 %v4121_v54 }
 0x756   : > { %4916 = vrcp.f32 %v4122_v22 }
 0x762   : > { %v4915_v23 = vpop.eup %4914 }
 0x763   : > { %v4917_v30 = vpop.eup %4916  ;;  %4129 = vperm.xlu0 %4873, %v4915_v23  }
 0x764   : > { %4134 = vperm.xlu1 %4872, %v4917_v30  }
 0x7de   : > { %v7593_v32 = vpop.permute.xlu0 %4129 }
 0x7df   : > { %v7595_v14 = vpop.permute.xlu1 %4134  ;;  %v4137_v15 = vmul.f32 %v7593_v32, %v7485_v29  ;;  %v4138_v44 = vmul.f32 %v7593_v32, %v7483_v13  ;;  %v4139_v13 = vmul.f32 %v7593_v32, %v7487_v19  ;;  %v4140_v19 = vmul.f32 %v7593_v32, %v7502_v11 }
 0x7e0   : > { %v4146_v5 = vmul.f32 %v7595_v14, %v7497_v34  ;;  %v4147_v29 = vmul.f32 %v7595_v14, %v7492_v9  ;;  %v4148_v9 = vmul.f32 %v7595_v14, %v7504_v8  ;;  %v4149_v34 = vmul.f32 %v7595_v14, %v7520_v6 }
 0x7e1   : > { %4159 = vrot.lane.b32.xlu1 %v4137_v15, %s4936_s28  ;;  %4155 = vst.msk [vmem:[%s7591_s14] sm:$0xff] %vm2879_vm5, %v4137_v15  ;;  %v4141_v11 = vmul.f32 %v7593_v32, %v7509_v57  ;;  %v4150_v8 = vmul.f32 %v7595_v14, %v7527_v38  ;;  %v4142_v6 = vmul.f32 %v7593_v32, %v7525_v3 }
 0x7e2   : > { %4161 = vrot.lane.b32.xlu0 %v4146_v5, %s4936_s28  ;;  %4156 = vst.msk [vmem:[%s7591_s14 + $0x40] sm:$0xff] %vm2879_vm5, %v4146_v5  ;;  %s4976_s28 = smov 118   ;;  %v7631_v57 = vmul.f32 %v7595_v14, %v7538_v43  ;;  %v7639_v3 = vmul.f32 %v7593_v32, %v7540_v16  ;;  %v7645_v38 = vmul.f32 %v7595_v14, %v7555_v53 }
 0x7e3   : > { %v7649_v43 = vmul.f32 %v7593_v32, %v7548_v48  ;;  %v7655_v16 = vmul.f32 %v7595_v14, %v7564_v33  ;;  %v4145_v45 = vmul.f32 %v7593_v32, %v7550_v36  ;;  %v4154_v63 = vmul.f32 %v7595_v14, %v7566_v56 }
 0x7e5   : > { %4168 = vrot.lane.b32.xlu1 %v4137_v15, %s4973_s22 }
 0x7e6   : > { %4170 = vrot.lane.b32.xlu0 %v4146_v5, %s4973_s22  ;;  %s4987_s22 = smov 96  }
 0x7e9   : > { %4179 = vrot.lane.b32.xlu1 %v4137_v15, %s4974_s16 }
 0x7ea   : > { %4181 = vrot.lane.b32.xlu0 %v4138_v44, %s4974_s16 }
 0x7ed   : > { %4183 = vrot.lane.b32.xlu1 %v4146_v5, %s4974_s16 }
 0x7ee   : > { %4185 = vrot.lane.b32.xlu0 %v4147_v29, %s4974_s16  ;;  %s4988_s16 = smov 90  }
 0x7f1   : > { %4195 = vrot.lane.b32.xlu1 %v4138_v44, %s4975_s25 }
 0x7f2   : > { %4197 = vrot.lane.b32.xlu0 %v4147_v29, %s4975_s25  ;;  %s4990_s25 = smov 80  }
 0x7f5   : > { %4203 = vrot.lane.b32.xlu1 %v4138_v44, %s4976_s28 }
 0x7f6   : > { %4205 = vrot.lane.b32.xlu0 %v4147_v29, %s4976_s28  ;;  %s4992_s28 = smov 86  }
 0x7f9   : > { %4211 = vrot.lane.b32.xlu1 %v4138_v44, %s4977_s26 }
 0x7fa   : > { %4213 = vrot.lane.b32.xlu0 %v4147_v29, %s4977_s26  ;;  %s4993_s26 = smov 84  }
 0x7fd   : > { %4221 = vrot.lane.b32.xlu1 %v4138_v44, %s4978_s29 }
 0x7fe   : > { %4223 = vrot.lane.b32.xlu0 %v4139_v13, %s4978_s29 }
 0x801   : > { %4225 = vrot.lane.b32.xlu1 %v4147_v29, %s4978_s29 }
 0x802   : > { %4227 = vrot.lane.b32.xlu0 %v4148_v9, %s4978_s29  ;;  %s4994_s29 = smov 78  }
 0x805   : > { %4236 = vrot.lane.b32.xlu1 %v4139_v13, %s4979_s30 }
 0x806   : > { %4238 = vrot.lane.b32.xlu0 %v4148_v9, %s4979_s30  ;;  %s4995_s30 = smov 76  }
 0x809   : > { %4244 = vrot.lane.b32.xlu1 %v4139_v13, %s4980_s27 }
 0x80a   : > { %4246 = vrot.lane.b32.xlu0 %v4148_v9, %s4980_s27  ;;  %s4996_s27 = smov 70  }
 0x80d   : > { %4252 = vrot.lane.b32.xlu1 %v4139_v13, %s4981_s20 }
 0x80e   : > { %4254 = vrot.lane.b32.xlu0 %v4148_v9, %s4981_s20  ;;  %s4997_s20 = smov 68  }
 0x811   : > { %4262 = vrot.lane.b32.xlu1 %v4139_v13, %s4982_s17 }
 0x812   : > { %4264 = vrot.lane.b32.xlu0 %v4140_v19, %s4982_s17 }
 0x815   : > { %4266 = vrot.lane.b32.xlu1 %v4148_v9, %s4982_s17 }
 0x816   : > { %4268 = vrot.lane.b32.xlu0 %v4149_v34, %s4982_s17  ;;  %s4998_s17 = smov 82  }
 0x819   : > { %4277 = vrot.lane.b32.xlu1 %v4140_v19, %s4983_s15 }
 0x81a   : > { %4279 = vrot.lane.b32.xlu0 %v4149_v34, %s4983_s15  ;;  %s4999_s15 = smov 74  }
 0x81d   : > { %4285 = vrot.lane.b32.xlu1 %v4140_v19, %s4984_s18 }
 0x81e   : > { %4287 = vrot.lane.b32.xlu0 %v4149_v34, %s4984_s18  ;;  %s5000_s18 = smov 66  }
 0x821   : > { %4293 = vrot.lane.b32.xlu1 %v4140_v19, %s4985_s23 }
 0x822   : > { %4295 = vrot.lane.b32.xlu0 %v4149_v34, %s4985_s23 }
 0x825   : > { %4303 = vrot.lane.b32.xlu1 %v4140_v19, %s4986_s19 }
 0x826   : > { %4305 = vrot.lane.b32.xlu0 %v4141_v11, %s4986_s19 }
 0x829   : > { %4307 = vrot.lane.b32.xlu1 %v4149_v34, %s4986_s19 }
 0x82a   : > { %4309 = vrot.lane.b32.xlu0 %v4150_v8, %s4986_s19 }
 0x82d   : > { %4318 = vrot.lane.b32.xlu1 %v4141_v11, %s4987_s22 }
 0x82e   : > { %4320 = vrot.lane.b32.xlu0 %v4150_v8, %s4987_s22 }
 0x831   : > { %4326 = vrot.lane.b32.xlu1 %v4141_v11, %s4937_s13 }
 0x832   : > { %4328 = vrot.lane.b32.xlu0 %v4150_v8, %s4937_s13  ;;  %s4989_s13 = smov 88  }
 0x835   : > { %4336 = vrot.lane.b32.xlu1 %v4141_v11, %s4935_s24 }
 0x836   : > { %4338 = vrot.lane.b32.xlu0 %v4142_v6, %s4935_s24 }
 0x839   : > { %4340 = vrot.lane.b32.xlu1 %v4150_v8, %s4935_s24 }
 0x83a   : > { %4342 = vrot.lane.b32.xlu0 %v7631_v57, %s4935_s24  ;;  %s4991_s24 = smov 72  }
 0x83d   : > { %4351 = vrot.lane.b32.xlu1 %v4142_v6, %s4988_s16 }
 0x83e   : > { %4359 = vrot.lane.b32.xlu0 %v4142_v6, %s4989_s13 }
 0x841   : > { %4361 = vrot.lane.b32.xlu1 %v7631_v57, %s4989_s13 }
 0x842   : > { %4400 = vrot.lane.b32.xlu0 %v7639_v3, %s4990_s25 }
 0x845   : > { %4402 = vrot.lane.b32.xlu1 %v7645_v38, %s4990_s25 }
 0x846   : > { %4441 = vrot.lane.b32.xlu0 %v7649_v43, %s4991_s24 }
 0x849   : > { %4443 = vrot.lane.b32.xlu1 %v7655_v16, %s4991_s24 }
 0x84a   : > { %4367 = vrot.lane.b32.xlu0 %v4142_v6, %s4992_s28 }
 0x84d   : > { %4369 = vrot.lane.b32.xlu1 %v7631_v57, %s4992_s28 }
 0x84e   : > { %4377 = vrot.lane.b32.xlu0 %v4142_v6, %s4993_s26 }
 0x851   : > { %4379 = vrot.lane.b32.xlu1 %v7639_v3, %s4993_s26 }
 0x852   : > { %4381 = vrot.lane.b32.xlu0 %v7631_v57, %s4993_s26 }
 0x853   : > { %v4160_v48 = vpop.permute.xlu1 %4159 }
 0x854   : > { %4166 = vst.msk [vmem:[%s7591_s14] sm:$0xff] %vm4165_vm6, %v4160_v48  ;;  %v4162_v53 = vpop.permute.xlu0 %4161 }
 0x855   : > { %4167 = vst.msk [vmem:[%s7591_s14 + $0x40] sm:$0xff] %vm4165_vm6, %v4162_v53  ;;  %4383 = vrot.lane.b32.xlu1 %v7645_v38, %s4993_s26 }
 0x856   : > { %4408 = vrot.lane.b32.xlu0 %v7639_v3, %s4994_s29 }
 0x857   : > { %v4169_v21 = vpop.permute.xlu1 %4168 }
 0x858   : > { %4175 = vst.msk [vmem:[%s7591_s14] sm:$0xff] %vm4174_vm9, %v4169_v21  ;;  %v4171_v26 = vpop.permute.xlu0 %4170 }
 0x859   : > { %4176 = vst.msk [vmem:[%s7591_s14 + $0x40] sm:$0xff] %vm4174_vm9, %v4171_v26  ;;  %4410 = vrot.lane.b32.xlu1 %v7645_v38, %s4994_s29 }
 0x85a   : > { %4418 = vrot.lane.b32.xlu0 %v7639_v3, %s4995_s30 }
 0x85b   : > { %v4180_v33 = vpop.permute.xlu1 %4179 }
 0x85c   : > { %v4182_v49 = vpop.permute.xlu0 %4181 }
 0x85d   : > { %v4188_v4 = vsel %vm4187_vm13, %v4180_v33, %v4182_v49  ;;  %4420 = vrot.lane.b32.xlu1 %v7649_v43, %s4995_s30 }
 0x85e   : > { %4193 = vst.msk [vmem:[%s7591_s14] sm:$0xff] %vm4192_vm8, %v4188_v4  ;;  %4422 = vrot.lane.b32.xlu0 %v7645_v38, %s4995_s30 }
 0x85f   : > { %v4184_v31 = vpop.permute.xlu1 %4183 }
 0x860   : > { %v4186_v2 = vpop.permute.xlu0 %4185 }
 0x861   : > { %v4189_v62 = vsel %vm4187_vm13, %v4184_v31, %v4186_v2  ;;  %4424 = vrot.lane.b32.xlu1 %v7655_v16, %s4995_s30 }
 0x862   : > { %4194 = vst.msk [vmem:[%s7591_s14 + $0x40] sm:$0xff] %vm4192_vm8, %v4189_v62  ;;  %4449 = vrot.lane.b32.xlu0 %v7649_v43, %s4996_s27 }
 0x863   : > { %v4196_v28 = vpop.permute.xlu1 %4195 }
 0x864   : > { %4201 = vst.msk [vmem:[%s7591_s14 + $0x8] sm:$0xff] %vm2879_vm5, %v4196_v28  ;;  %v4198_v37 = vpop.permute.xlu0 %4197 }
 0x865   : > { %4202 = vst.msk [vmem:[%s7591_s14 + $0x48] sm:$0xff] %vm2879_vm5, %v4198_v37  ;;  %4451 = vrot.lane.b32.xlu1 %v7655_v16, %s4996_s27 }
 0x866   : > { %4459 = vrot.lane.b32.xlu0 %v7649_v43, %s4997_s20 }
 0x867   : > { %v4204_v10 = vpop.permute.xlu1 %4203 }
 0x868   : > { %4209 = vst.msk [vmem:[%s7591_s14 + $0x8] sm:$0xff] %vm4165_vm6, %v4204_v10  ;;  %v4206_v25 = vpop.permute.xlu0 %4205 }
 0x869   : > { %4210 = vst.msk [vmem:[%s7591_s14 + $0x48] sm:$0xff] %vm4165_vm6, %v4206_v25  ;;  %4461 = vrot.lane.b32.xlu1 %v4145_v45, %s4997_s20 }
 0x86a   : > { %4463 = vrot.lane.b32.xlu0 %v7655_v16, %s4997_s20 }
 0x86b   : > { %v4212_v60 = vpop.permute.xlu1 %4211 }
 0x86c   : > { %4217 = vst.msk [vmem:[%s7591_s14 + $0x8] sm:$0xff] %vm4174_vm9, %v4212_v60  ;;  %v4214_v20 = vpop.permute.xlu0 %4213 }
 0x86d   : > { %4218 = vst.msk [vmem:[%s7591_s14 + $0x48] sm:$0xff] %vm4174_vm9, %v4214_v20  ;;  %4465 = vrot.lane.b32.xlu1 %v4154_v63, %s4997_s20 }
 0x86e   : > { %4353 = vrot.lane.b32.xlu0 %v7631_v57, %s4988_s16 }
 0x86f   : > { %v4222_v36 = vpop.permute.xlu1 %4221 }
 0x870   : > { %v4224_v58 = vpop.permute.xlu0 %4223 }
 0x871   : > { %v4230_v1 = vsel %vm4229_vm10, %v4222_v36, %v4224_v58  ;;  %4392 = vrot.lane.b32.xlu1 %v7639_v3, %s4998_s17 }
 0x872   : > { %4234 = vst.msk [vmem:[%s7591_s14 + $0x8] sm:$0xff] %vm4192_vm8, %v4230_v1  ;;  %4394 = vrot.lane.b32.xlu0 %v7645_v38, %s4998_s17 }
 0x873   : > { %v4226_v56 = vpop.permute.xlu1 %4225 }
 0x874   : > { %v4228_v47 = vpop.permute.xlu0 %4227 }
 0x875   : > { %v4231_v59 = vsel %vm4229_vm10, %v4226_v56, %v4228_v47  ;;  %4433 = vrot.lane.b32.xlu1 %v7649_v43, %s4999_s15 }
 0x876   : > { %4235 = vst.msk [vmem:[%s7591_s14 + $0x48] sm:$0xff] %vm4192_vm8, %v4231_v59  ;;  %4435 = vrot.lane.b32.xlu0 %v7655_v16, %s4999_s15 }
 0x877   : > { %v4237_v41 = vpop.permute.xlu1 %4236 }
 0x878   : > { %4242 = vst.msk [vmem:[%s7591_s14 + $0x10] sm:$0xff] %vm2879_vm5, %v4237_v41  ;;  %v4239_v0 = vpop.permute.xlu0 %4238 }
 0x879   : > { %4243 = vst.msk [vmem:[%s7591_s14 + $0x50] sm:$0xff] %vm2879_vm5, %v4239_v0  ;;  %4474 = vrot.lane.b32.xlu1 %v4145_v45, %s5000_s18 }
 0x87a   : > { %4476 = vrot.lane.b32.xlu0 %v4154_v63, %s5000_s18 }
 0x87b   : > { %v4245_v35 = vpop.permute.xlu1 %4244 }
 0x87c   : > { %4250 = vst.msk [vmem:[%s7591_s14 + $0x10] sm:$0xff] %vm4165_vm6, %v4245_v35  ;;  %v4247_v50 = vpop.permute.xlu0 %4246 }
 0x87d   : > { %4251 = vst.msk [vmem:[%s7591_s14 + $0x50] sm:$0xff] %vm4165_vm6, %v4247_v50 }
 0x87f   : > { %v4253_v40 = vpop.permute.xlu1 %4252 }
 0x880   : > { %4258 = vst.msk [vmem:[%s7591_s14 + $0x10] sm:$0xff] %vm4174_vm9, %v4253_v40  ;;  %v4255_v18 = vpop.permute.xlu0 %4254 }
 0x881   : > { %4259 = vst.msk [vmem:[%s7591_s14 + $0x50] sm:$0xff] %vm4174_vm9, %v4255_v18 }
 0x883   : > { %v4263_v55 = vpop.permute.xlu1 %4262 }
 0x884   : > { %v4265_v7 = vpop.permute.xlu0 %4264 }
 0x885   : > { %v4271_v46 = vsel %vm4270_vm14, %v4263_v55, %v4265_v7 }
 0x886   : > { %4275 = vst.msk [vmem:[%s7591_s14 + $0x10] sm:$0xff] %vm4192_vm8, %v4271_v46 }
 0x887   : > { %v4267_v12 = vpop.permute.xlu1 %4266 }
 0x888   : > { %v4269_v39 = vpop.permute.xlu0 %4268 }
 0x889   : > { %v4272_v52 = vsel %vm4270_vm14, %v4267_v12, %v4269_v39 }
 0x88a   : > { %4276 = vst.msk [vmem:[%s7591_s14 + $0x50] sm:$0xff] %vm4192_vm8, %v4272_v52 }
 0x88b   : > { %v4278_v61 = vpop.permute.xlu1 %4277 }
 0x88c   : > { %4283 = vst.msk [vmem:[%s7591_s14 + $0x18] sm:$0xff] %vm2879_vm5, %v4278_v61  ;;  %v4280_v27 = vpop.permute.xlu0 %4279 }
 0x88d   : > { %4284 = vst.msk [vmem:[%s7591_s14 + $0x58] sm:$0xff] %vm2879_vm5, %v4280_v27 }
 0x88f   : > { %v4286_v17 = vpop.permute.xlu1 %4285 }
 0x890   : > { %4291 = vst.msk [vmem:[%s7591_s14 + $0x18] sm:$0xff] %vm4165_vm6, %v4286_v17  ;;  %v4288_v24 = vpop.permute.xlu0 %4287 }
 0x891   : > { %4292 = vst.msk [vmem:[%s7591_s14 + $0x58] sm:$0xff] %vm4165_vm6, %v4288_v24 }
 0x893   : > { %v4294_v42 = vpop.permute.xlu1 %4293 }
 0x894   : > { %4299 = vst.msk [vmem:[%s7591_s14 + $0x18] sm:$0xff] %vm4174_vm9, %v4294_v42  ;;  %v4296_v51 = vpop.permute.xlu0 %4295 }
 0x895   : > { %4300 = vst.msk [vmem:[%s7591_s14 + $0x58] sm:$0xff] %vm4174_vm9, %v4296_v51 }
 0x897   : > { %v4304_v54 = vpop.permute.xlu1 %4303 }
 0x898   : > { %v4306_v22 = vpop.permute.xlu0 %4305 }
 0x899   : > { %v4312_v23 = vsel %vm4311_vm2, %v4304_v54, %v4306_v22 }
 0x89a   : > { %4316 = vst.msk [vmem:[%s7591_s14 + $0x18] sm:$0xff] %vm4192_vm8, %v4312_v23 }
 0x89b   : > { %v4308_v30 = vpop.permute.xlu1 %4307 }
 0x89c   : > { %v4310_v32 = vpop.permute.xlu0 %4309 }
 0x89d   : > { %v4313_v14 = vsel %vm4311_vm2, %v4308_v30, %v4310_v32 }
 0x89e   : > { %4317 = vst.msk [vmem:[%s7591_s14 + $0x58] sm:$0xff] %vm4192_vm8, %v4313_v14 }
 0x89f   : > { %v4319_v15 = vpop.permute.xlu1 %4318 }
 0x8a0   : > { %4324 = vst.msk [vmem:[%s7591_s14 + $0x20] sm:$0xff] %vm2879_vm5, %v4319_v15  ;;  %v4321_v5 = vpop.permute.xlu0 %4320 }
 0x8a1   : > { %4325 = vst.msk [vmem:[%s7591_s14 + $0x60] sm:$0xff] %vm2879_vm5, %v4321_v5 }
 0x8a3   : > { %v4327_v44 = vpop.permute.xlu1 %4326 }
 0x8a4   : > { %4332 = vst.msk [vmem:[%s7591_s14 + $0x20] sm:$0xff] %vm4165_vm6, %v4327_v44  ;;  %v4329_v29 = vpop.permute.xlu0 %4328 }
 0x8a5   : > { %4333 = vst.msk [vmem:[%s7591_s14 + $0x60] sm:$0xff] %vm4165_vm6, %v4329_v29 }
 0x8a7   : > { %v4337_v13 = vpop.permute.xlu1 %4336 }
 0x8a8   : > { %v4339_v9 = vpop.permute.xlu0 %4338 }
 0x8a9   : > { %v4345_v19 = vsel %vm8223_vm11, %v4337_v13, %v4339_v9 }
 0x8aa   : > { %4349 = vst.msk [vmem:[%s7591_s14 + $0x20] sm:$0xff] %vm4174_vm9, %v4345_v19 }
 0x8ab   : > { %v4341_v34 = vpop.permute.xlu1 %4340 }
 0x8ac   : > { %v4343_v11 = vpop.permute.xlu0 %4342 }
 0x8ad   : > { %v4346_v8 = vsel %vm8224_vm7, %v4341_v34, %v4343_v11 }
 0x8ae   : > { %4350 = vst.msk [vmem:[%s7591_s14 + $0x60] sm:$0xff] %vm4174_vm9, %v4346_v8 }
 0x8af   : > { %v4352_v6 = vpop.permute.xlu1 %4351 }
 0x8b0   : > { %4357 = vst.msk [vmem:[%s7591_s14 + $0x20] sm:$0xff] %vm4192_vm8, %v4352_v6  ;;  %v4360_v57 = vpop.permute.xlu0 %4359 }
 0x8b1   : > { %4365 = vst.msk [vmem:[%s7591_s14 + $0x28] sm:$0xff] %vm2879_vm5, %v4360_v57 }
 0x8b3   : > { %v4362_v3 = vpop.permute.xlu1 %4361 }
 0x8b4   : > { %4366 = vst.msk [vmem:[%s7591_s14 + $0x68] sm:$0xff] %vm2879_vm5, %v4362_v3  ;;  %v4401_v38 = vpop.permute.xlu0 %4400 }
 0x8b5   : > { %4406 = vst.msk [vmem:[%s7591_s14 + $0x30] sm:$0xff] %vm2879_vm5, %v4401_v38 }
 0x8b7   : > { %v4403_v43 = vpop.permute.xlu1 %4402 }
 0x8b8   : > { %4407 = vst.msk [vmem:[%s7591_s14 + $0x70] sm:$0xff] %vm2879_vm5, %v4403_v43  ;;  %v4442_v16 = vpop.permute.xlu0 %4441 }
 0x8b9   : > { %4447 = vst.msk [vmem:[%s7591_s14 + $0x38] sm:$0xff] %vm2879_vm5, %v4442_v16 }
 0x8bb   : > { %v4444_v48 = vpop.permute.xlu1 %4443 }
 0x8bc   : > { %4448 = vst.msk [vmem:[%s7591_s14 + $0x78] sm:$0xff] %vm2879_vm5, %v4444_v48  ;;  %v4368_v53 = vpop.permute.xlu0 %4367  ;;  %vm4426_vm5 = vcmask 621568  }
 0x8bd   : > { %4373 = vst.msk [vmem:[%s7591_s14 + $0x28] sm:$0xff] %vm4165_vm6, %v4368_v53 }
 0x8bf   : > { %v4370_v21 = vpop.permute.xlu1 %4369 }
 0x8c0   : > { %4374 = vst.msk [vmem:[%s7591_s14 + $0x68] sm:$0xff] %vm4165_vm6, %v4370_v21  ;;  %v4378_v26 = vpop.permute.xlu0 %4377 }
 0x8c3   : > { %v4380_v33 = vpop.permute.xlu1 %4379 }
 0x8c4   : > { %v4386_v49 = vsel %vm4385_vm15, %v4378_v26, %v4380_v33  ;;  %v4382_v4 = vpop.permute.xlu0 %4381 }
 0x8c5   : > { %4390 = vst.msk [vmem:[%s7591_s14 + $0x28] sm:$0xff] %vm4174_vm9, %v4386_v49 }
 0x8c7   : > { %v4384_v31 = vpop.permute.xlu1 %4383 }
 0x8c8   : > { %v4387_v2 = vsel %vm4385_vm15, %v4382_v4, %v4384_v31  ;;  %v4409_v62 = vpop.permute.xlu0 %4408 }
 0x8c9   : > { %4391 = vst.msk [vmem:[%s7591_s14 + $0x68] sm:$0xff] %vm4174_vm9, %v4387_v2 }
 0x8ca   : > { %4414 = vst.msk [vmem:[%s7591_s14 + $0x30] sm:$0xff] %vm4165_vm6, %v4409_v62 }
 0x8cb   : > { %v4411_v28 = vpop.permute.xlu1 %4410 }
 0x8cc   : > { %4415 = vst.msk [vmem:[%s7591_s14 + $0x70] sm:$0xff] %vm4165_vm6, %v4411_v28  ;;  %v4419_v37 = vpop.permute.xlu0 %4418 }
 0x8cf   : > { %v4421_v10 = vpop.permute.xlu1 %4420 }
 0x8d0   : > { %v4427_v45 = vsel %vm4426_vm5, %v4419_v37, %v4421_v10  ;;  %v4423_v25 = vpop.permute.xlu0 %4422 }
 0x8d1   : > { %4431 = vst.msk [vmem:[%s7591_s14 + $0x30] sm:$0xff] %vm4174_vm9, %v4427_v45 }
 0x8d3   : > { %v4425_v60 = vpop.permute.xlu1 %4424 }
 0x8d4   : > { %v4428_v63 = vsel %vm4426_vm5, %v4423_v25, %v4425_v60  ;;  %v4450_v20 = vpop.permute.xlu0 %4449 }
 0x8d5   : > { %4432 = vst.msk [vmem:[%s7591_s14 + $0x70] sm:$0xff] %vm4174_vm9, %v4428_v63 }
 0x8d6   : > { %4455 = vst.msk [vmem:[%s7591_s14 + $0x38] sm:$0xff] %vm4165_vm6, %v4450_v20 }
 0x8d7   : > { %v4452_v36 = vpop.permute.xlu1 %4451 }
 0x8d8   : > { %4456 = vst.msk [vmem:[%s7591_s14 + $0x78] sm:$0xff] %vm4165_vm6, %v4452_v36  ;;  %v4460_v58 = vpop.permute.xlu0 %4459 }
 0x8db   : > { %v4462_v1 = vpop.permute.xlu1 %4461 }
 0x8dc   : > { %v4468_v56 = vsel %vm4467_vm1, %v4460_v58, %v4462_v1  ;;  %v4464_v47 = vpop.permute.xlu0 %4463 }
 0x8dd   : > { %4472 = vst.msk [vmem:[%s7591_s14 + $0x38] sm:$0xff] %vm4174_vm9, %v4468_v56 }
 0x8df   : > { %v4466_v59 = vpop.permute.xlu1 %4465 }
 0x8e0   : > { %v4469_v41 = vsel %vm4467_vm1, %v4464_v47, %v4466_v59  ;;  %v4354_v0 = vpop.permute.xlu0 %4353 }
 0x8e1   : > { %4473 = vst.msk [vmem:[%s7591_s14 + $0x78] sm:$0xff] %vm4174_vm9, %v4469_v41 }
 0x8e2   : > { %4358 = vst.msk [vmem:[%s7591_s14 + $0x60] sm:$0xff] %vm4192_vm8, %v4354_v0 }
 0x8e3   : > { %v4393_v35 = vpop.permute.xlu1 %4392 }
 0x8e4   : > { %4398 = vst.msk [vmem:[%s7591_s14 + $0x28] sm:$0xff] %vm4192_vm8, %v4393_v35  ;;  %v4395_v50 = vpop.permute.xlu0 %4394 }
 0x8e5   : > { %4399 = vst.msk [vmem:[%s7591_s14 + $0x68] sm:$0xff] %vm4192_vm8, %v4395_v50 }
 0x8e7   : > { %v4434_v40 = vpop.permute.xlu1 %4433 }
 0x8e8   : > { %4439 = vst.msk [vmem:[%s7591_s14 + $0x30] sm:$0xff] %vm4192_vm8, %v4434_v40  ;;  %v4436_v18 = vpop.permute.xlu0 %4435 }
 0x8e9   : > { %4440 = vst.msk [vmem:[%s7591_s14 + $0x70] sm:$0xff] %vm4192_vm8, %v4436_v18 }
 0x8eb   : > { %v4475_v55 = vpop.permute.xlu1 %4474 }
 0x8ec   : > { %4480 = vst.msk [vmem:[%s7591_s14 + $0x38] sm:$0xff] %vm4192_vm8, %v4475_v55  ;;  %v4477_v7 = vpop.permute.xlu0 %4476 }
 0x8ed   : > { %4481 = vst.msk [vmem:[%s7591_s14 + $0x78] sm:$0xff] %vm4192_vm8, %v4477_v7 }
 0x8ee PF: > { %s22_s21 = sadd.s32 1, %s4927_s21  }
 0x8ef   : > { %p19_p4 = scmp.ge.s32.totalorder %s22_s21, 4  }
 0x8f1   :  { %21 = sbr.rel (!%p19_p4) target bundleno = 1 (0x1), region = 101 }

</bundles_post_ra>
